<compile_context>
chip_gen: v6e
topology: v6e:2x2x1
jax: 0.10.0
libtpu: 0.0.40
codegen_flags: <defaults>
</compile_context>

<pallas_src>
import jax
import jax.numpy as jnp
from jax.experimental import pallas as pl
from jax.experimental.pallas import tpu as pltpu


# ----------------------------- Pallas kernels -----------------------------

def conv_relu_pool_kernel(a_ref, w_ref, b_ref, o_ref):
    # a: (4, K, Mp) bf16 -- im2col patches for the 4 positions of every 2x2 pool window.
    # w: (Cout, K) bf16, b: (Cout, 1) f32.
    # o: (Cout, Mp) f32 = maxpool2x2(relu(conv + b)); Mp = N*Hp*Wp is on the lane axis.
    w = w_ref[...]
    d0 = jnp.dot(w, a_ref[0], preferred_element_type=jnp.float32)
    d1 = jnp.dot(w, a_ref[1], preferred_element_type=jnp.float32)
    d2 = jnp.dot(w, a_ref[2], preferred_element_type=jnp.float32)
    d3 = jnp.dot(w, a_ref[3], preferred_element_type=jnp.float32)
    m = jnp.maximum(jnp.maximum(d0, d1), jnp.maximum(d2, d3))
    o_ref[...] = jnp.maximum(m + b_ref[...], 0.0)     # bias/relu commute with the max


def make_bigru_fc_kernel(T, N, H):
    """Fused: input projection + bidirectional GRU + Linear + log_softmax (grid-less)."""

    def kernel(x_ref, wihf_ref, wihb_ref, bihf_ref, bihb_ref,
               whhf_ref, whhb_ref, bhhf_ref, bhhb_ref,
               fcw_ref, fcb_ref, o_ref):
        # Hoisted input projection: one (T*N, F) @ (F, 3H) GEMM per direction, gate order [r|z|n].
        x = x_ref[...]                                                    # (T*N, F) bf16
        gi_f = jnp.dot(x, wihf_ref[...], preferred_element_type=jnp.float32) + bihf_ref[...]
        gi_b = jnp.dot(x, wihb_ref[...], preferred_element_type=jnp.float32) + bihb_ref[...]

        whhf, whhb = whhf_ref[...], whhb_ref[...]
        bhhf, bhhb = bhhf_ref[...], bhhb_ref[...]
        fcw_f = fcw_ref[0:H, :]                                           # forward rows of fc_w
        fcw_b = fcw_ref[H:2 * H, :]                                       # backward rows of fc_w

        def gru_step(gi, h, whh, bhh):
            gh = jnp.dot(h, whh, preferred_element_type=jnp.float32) + bhh
            r = jax.nn.sigmoid(gi[:, 0:H] + gh[:, 0:H])
            z = jax.nn.sigmoid(gi[:, H:2 * H] + gh[:, H:2 * H])
            n = jnp.tanh(gi[:, 2 * H:3 * H] + r * gh[:, 2 * H:3 * H])
            return (1.0 - z) * n + z * h

        # Output buffer doubles as the FC-partial accumulator (pre-bias logits).
        o_ref[...] = jnp.zeros_like(o_ref)
        hf = jnp.zeros((N, H), jnp.float32)
        hb = jnp.zeros((N, H), jnp.float32)

        for t in range(T):                     # short static sequence -> fully unrolled
            tb = T - 1 - t                     # backward direction consumes time in reverse
            hf = gru_step(gi_f[t * N:(t + 1) * N, :], hf, whhf, bhhf)
            hb = gru_step(gi_b[tb * N:(tb + 1) * N, :], hb, whhb, bhhb)
            o_ref[t] += jnp.dot(hf, fcw_f, preferred_element_type=jnp.float32)
            o_ref[tb] += jnp.dot(hb, fcw_b, preferred_element_type=jnp.float32)

        logits = o_ref[...] + fcb_ref[...]                                # (T, N, V)
        m = jnp.max(logits, axis=-1, keepdims=True)
        s = logits - m
        lse = jnp.log(jnp.sum(jnp.exp(s), axis=-1, keepdims=True))
        o_ref[...] = s - lse

    return kernel


# ----------------------------- wrappers -----------------------------

def im2col_pooled(x_cnhw, k):
    # x: (C, N, H, W) channel-first -> (4, C*k*k, N*Hp*Wp); axis 0 enumerates the 4 positions of
    # each 2x2 pool window so that max over the 4 conv GEMMs is the pooled conv output.
    C, N, H, W = x_cnhw.shape
    OH, OW = H - k + 1, W - k + 1
    Hp, Wp = OH // 2, OW // 2
    patches = []
    for c in range(C):                      # column order matches torch weight.reshape(Cout, -1)
        for dh in range(k):
            for dw in range(k):
                patches.append(x_cnhw[c, :, dh:dh + OH, dw:dw + OW])
    p = jnp.stack(patches, axis=0)                                   # (K, N, OH, OW)
    views = [p[:, :, dy:2 * Hp:2, dx:2 * Wp:2] for dy in (0, 1) for dx in (0, 1)]
    a = jnp.stack(views, axis=0).reshape(4, C * k * k, N * Hp * Wp)
    return a, (N, Hp, Wp)


def conv_relu_pool(x_cnhw, w, b):
    Cout, Cin, k, _ = w.shape
    a, (N, Hp, Wp) = im2col_pooled(x_cnhw, k)
    a = a.astype(jnp.bfloat16)
    wmat = w.reshape(Cout, Cin * k * k).astype(jnp.bfloat16)
    bias = b.reshape(Cout, 1)
    out = pl.pallas_call(
        conv_relu_pool_kernel,
        out_shape=jax.ShapeDtypeStruct((Cout, N * Hp * Wp), jnp.float32),
    )(a, wmat, bias)
    return out.reshape(Cout, N, Hp, Wp)      # channel-first, feeds the next stage directly


def bigru_fc(x_tm, wih_f, wih_b, bih_f, bih_b, whh_f, whh_b, bhh_f, bhh_b, fc_w, fc_b):
    T, N, F = x_tm.shape
    H = whh_f.shape[0]
    V = fc_w.shape[-1]
    kernel = make_bigru_fc_kernel(T, N, H)
    return pl.pallas_call(
        kernel,
        out_shape=jax.ShapeDtypeStruct((T, N, V), jnp.float32),
    )(x_tm.reshape(T * N, F).astype(jnp.bfloat16),
      wih_f.astype(jnp.bfloat16), wih_b.astype(jnp.bfloat16),
      bih_f, bih_b, whh_f, whh_b, bhh_f, bhh_b, fc_w, fc_b)


def crnn_forward(x, p):
    # TODO(synk): dropout layers run in inference mode (identity); training-time RNG mask not implemented.
    y = conv_relu_pool(x.transpose(1, 0, 2, 3), p["conv1_w"], p["conv1_b"])   # (C1, N, H1, W1)
    y = conv_relu_pool(y, p["conv2_w"], p["conv2_b"])                          # (C2, N, 6, W)

    C, N, Hc, W = y.shape
    T, F = W, C * Hc
    # PyTorch: permute(0,3,1,2) + flatten(2) -> feats[n, w, c*Hc + h]; go straight to time-major.
    x_tm = y.transpose(3, 1, 0, 2).reshape(T, N, F)

    # Fused input-projection + bidirectional GRU + Linear + log_softmax.
    # Output is already (T, N, V) = the module's permute(1, 0, 2).
    return bigru_fc(x_tm,
                    p["gru_wih_f"], p["gru_wih_b"], p["gru_bih_f"], p["gru_bih_b"],
                    p["gru_whh_f"], p["gru_whh_b"], p["gru_bhh_f"], p["gru_bhh_b"],
                    p["fc_w"], p["fc_b"])


def init_params(key, cfg):
    c1, c2 = cfg["conv1_out"], cfg["conv2_out"]
    k1, k2 = cfg["conv1_kernel_size"], cfg["conv2_kernel_size"]
    H = cfg["rnn_hidden_size"]
    F = c2 * 6
    V = cfg["num_words"]
    ks = jax.random.split(key, 16)

    def u(k, shape, fan_in):
        bound = 1.0 / float(fan_in) ** 0.5
        return jax.random.uniform(k, shape, jnp.float32, -bound, bound)

    p = {
        "conv1_w": u(ks[0], (c1, 1, k1, k1), k1 * k1),
        "conv1_b": u(ks[1], (c1,), k1 * k1),
        "conv2_w": u(ks[2], (c2, c1, k2, k2), c1 * k2 * k2),
        "conv2_b": u(ks[3], (c2,), c1 * k2 * k2),
        "fc_w": u(ks[14], (2 * H, V), 2 * H),
        "fc_b": u(ks[15], (1, 1, V), 2 * H),
    }
    # GRU weights stored pre-fused per direction: wih (F, 3H), whh (H, 3H), biases (1, 3H);
    # gate (column-block) order is [r | z | n], matching the kernel's slicing.
    for i, d in enumerate(["f", "b"]):
        base = 4 + i * 5
        p[f"gru_wih_{d}"] = u(ks[base + 0], (F, 3 * H), H)
        p[f"gru_whh_{d}"] = u(ks[base + 1], (H, 3 * H), H)
        p[f"gru_bih_{d}"] = u(ks[base + 2], (1, 3 * H), H)
        p[f"gru_bhh_{d}"] = u(ks[base + 3], (1, 3 * H), H)
    return p


if __name__ == "__main__":
    crnn_params = dict(
        conv1_out=4, conv1_kernel_size=3,
        conv2_out=8, conv2_kernel_size=3,
        dropout_ratio=0.1,
        rnn_hidden_size=32, rnn_num_layers=1, rnn_bidirectional=True,
        num_words=16,
    )
    key = jax.random.PRNGKey(0)
    pkey, xkey = jax.random.split(key)
    params = init_params(pkey, crnn_params)

    # NCHW input: height 30 -> 6 after conv(3)+pool(2)+conv(3)+pool(2), matching the module's
    # hard-coded GRU input_size = conv2_out * 6; width 38 -> sequence length 8.
    x = jax.random.normal(xkey, (2, 1, 30, 38), jnp.float32)

    fwd = jax.jit(crnn_forward)
    out = jax.block_until_ready(fwd(x, params))
    assert out.shape == (8, 2, crnn_params["num_words"]), out.shape
    assert bool(jnp.all(jnp.isfinite(out)))
    print("KERNEL_OK")
</pallas_src>

<mosaic_0001>
module attributes {stable_mosaic.version = 11 : i64} {
  func.func @conv_relu_pool_kernel(%arg0: memref<4x9x504xbf16, #tpu.memory_space<vmem>>, %arg1: memref<4x9xbf16, #tpu.memory_space<vmem>>, %arg2: memref<4x1xf32, #tpu.memory_space<vmem>>, %arg3: memref<4x504xf32, #tpu.memory_space<vmem>>) attributes {dimension_semantics = [], scalar_prefetch = 0 : i64, scratch_operands = 0 : i64, tpu.core_type = #tpu.core_type<tc>} {
    %c0 = arith.constant 0 : index
    %c0_0 = arith.constant 0 : index
    %0 = vector.load %arg1[%c0, %c0_0] : memref<4x9xbf16, #tpu.memory_space<vmem>>, vector<4x9xbf16>
    %c0_1 = arith.constant 0 : index
    %c0_2 = arith.constant 0 : index
    %c0_3 = arith.constant 0 : index
    %1 = vector.load %arg0[%c0_1, %c0_2, %c0_3] : memref<4x9x504xbf16, #tpu.memory_space<vmem>>, vector<1x9x504xbf16>
    %2 = vector.shape_cast %1 : vector<1x9x504xbf16> to vector<9x504xbf16>
    %cst = arith.constant dense<0.000000e+00> : vector<4x504xf32>
    %3 = tpu.matmul %0, %2, %cst {dimension_numbers = #tpu.dot_dimension_numbers<[1], [0], [0], [1], [0, 0, 1, 1], [], []>} : vector<4x9xbf16>, vector<9x504xbf16>, vector<4x504xf32> -> vector<4x504xf32>
    %c1 = arith.constant 1 : index
    %c0_4 = arith.constant 0 : index
    %c0_5 = arith.constant 0 : index
    %4 = vector.load %arg0[%c1, %c0_4, %c0_5] : memref<4x9x504xbf16, #tpu.memory_space<vmem>>, vector<1x9x504xbf16>
    %5 = vector.shape_cast %4 : vector<1x9x504xbf16> to vector<9x504xbf16>
    %cst_6 = arith.constant dense<0.000000e+00> : vector<4x504xf32>
    %6 = tpu.matmul %0, %5, %cst_6 {dimension_numbers = #tpu.dot_dimension_numbers<[1], [0], [0], [1], [0, 0, 1, 1], [], []>} : vector<4x9xbf16>, vector<9x504xbf16>, vector<4x504xf32> -> vector<4x504xf32>
    %c2 = arith.constant 2 : index
    %c0_7 = arith.constant 0 : index
    %c0_8 = arith.constant 0 : index
    %7 = vector.load %arg0[%c2, %c0_7, %c0_8] : memref<4x9x504xbf16, #tpu.memory_space<vmem>>, vector<1x9x504xbf16>
    %8 = vector.shape_cast %7 : vector<1x9x504xbf16> to vector<9x504xbf16>
    %cst_9 = arith.constant dense<0.000000e+00> : vector<4x504xf32>
    %9 = tpu.matmul %0, %8, %cst_9 {dimension_numbers = #tpu.dot_dimension_numbers<[1], [0], [0], [1], [0, 0, 1, 1], [], []>} : vector<4x9xbf16>, vector<9x504xbf16>, vector<4x504xf32> -> vector<4x504xf32>
    %c3 = arith.constant 3 : index
    %c0_10 = arith.constant 0 : index
    %c0_11 = arith.constant 0 : index
    %10 = vector.load %arg0[%c3, %c0_10, %c0_11] : memref<4x9x504xbf16, #tpu.memory_space<vmem>>, vector<1x9x504xbf16>
    %11 = vector.shape_cast %10 : vector<1x9x504xbf16> to vector<9x504xbf16>
    %cst_12 = arith.constant dense<0.000000e+00> : vector<4x504xf32>
    %12 = tpu.matmul %0, %11, %cst_12 {dimension_numbers = #tpu.dot_dimension_numbers<[1], [0], [0], [1], [0, 0, 1, 1], [], []>} : vector<4x9xbf16>, vector<9x504xbf16>, vector<4x504xf32> -> vector<4x504xf32>
    %13 = arith.maximumf %3, %6 : vector<4x504xf32>
    %14 = arith.maximumf %9, %12 : vector<4x504xf32>
    %15 = arith.maximumf %13, %14 : vector<4x504xf32>
    %c0_13 = arith.constant 0 : index
    %c0_14 = arith.constant 0 : index
    %16 = vector.load %arg2[%c0_13, %c0_14] : memref<4x1xf32, #tpu.memory_space<vmem>>, vector<4x1xf32>
    %17 = vector.broadcast %16 : vector<4x1xf32> to vector<4x504xf32>
    %18 = arith.addf %15, %17 : vector<4x504xf32>
    %cst_15 = arith.constant 0.000000e+00 : f32
    %19 = vector.broadcast %cst_15 : f32 to vector<4x504xf32>
    %20 = arith.maximumf %18, %19 : vector<4x504xf32>
    %c0_16 = arith.constant 0 : index
    %c0_17 = arith.constant 0 : index
    %21 = vector.load %arg3[%c0_16, %c0_17] : memref<4x504xf32, #tpu.memory_space<vmem>>, vector<4x504xf32>
    tpu.vector_store %arg3[%c0_16, %c0_17], %20 {strides = array<i32>} : memref<4x504xf32, #tpu.memory_space<vmem>>, vector<4x504xf32>,
    return
  }
}

module attributes {stable_mosaic.version = 11 : i64} {
  func.func @conv_relu_pool_kernel(%arg0: memref<4x36x96xbf16, #tpu.memory_space<vmem>>, %arg1: memref<8x36xbf16, #tpu.memory_space<vmem>>, %arg2: memref<8x1xf32, #tpu.memory_space<vmem>>, %arg3: memref<8x96xf32, #tpu.memory_space<vmem>>) attributes {dimension_semantics = [], scalar_prefetch = 0 : i64, scratch_operands = 0 : i64, tpu.core_type = #tpu.core_type<tc>} {
    %c0 = arith.constant 0 : index
    %c0_0 = arith.constant 0 : index
    %0 = vector.load %arg1[%c0, %c0_0] : memref<8x36xbf16, #tpu.memory_space<vmem>>, vector<8x36xbf16>
    %c0_1 = arith.constant 0 : index
    %c0_2 = arith.constant 0 : index
    %c0_3 = arith.constant 0 : index
    %1 = vector.load %arg0[%c0_1, %c0_2, %c0_3] : memref<4x36x96xbf16, #tpu.memory_space<vmem>>, vector<1x36x96xbf16>
    %2 = vector.shape_cast %1 : vector<1x36x96xbf16> to vector<36x96xbf16>
    %cst = arith.constant dense<0.000000e+00> : vector<8x96xf32>
    %3 = tpu.matmul %0, %2, %cst {dimension_numbers = #tpu.dot_dimension_numbers<[1], [0], [0], [1], [0, 0, 1, 1], [], []>} : vector<8x36xbf16>, vector<36x96xbf16>, vector<8x96xf32> -> vector<8x96xf32>
    %c1 = arith.constant 1 : index
    %c0_4 = arith.constant 0 : index
    %c0_5 = arith.constant 0 : index
    %4 = vector.load %arg0[%c1, %c0_4, %c0_5] : memref<4x36x96xbf16, #tpu.memory_space<vmem>>, vector<1x36x96xbf16>
    %5 = vector.shape_cast %4 : vector<1x36x96xbf16> to vector<36x96xbf16>
    %cst_6 = arith.constant dense<0.000000e+00> : vector<8x96xf32>
    %6 = tpu.matmul %0, %5, %cst_6 {dimension_numbers = #tpu.dot_dimension_numbers<[1], [0], [0], [1], [0, 0, 1, 1], [], []>} : vector<8x36xbf16>, vector<36x96xbf16>, vector<8x96xf32> -> vector<8x96xf32>
    %c2 = arith.constant 2 : index
    %c0_7 = arith.constant 0 : index
    %c0_8 = arith.constant 0 : index
    %7 = vector.load %arg0[%c2, %c0_7, %c0_8] : memref<4x36x96xbf16, #tpu.memory_space<vmem>>, vector<1x36x96xbf16>
    %8 = vector.shape_cast %7 : vector<1x36x96xbf16> to vector<36x96xbf16>
    %cst_9 = arith.constant dense<0.000000e+00> : vector<8x96xf32>
    %9 = tpu.matmul %0, %8, %cst_9 {dimension_numbers = #tpu.dot_dimension_numbers<[1], [0], [0], [1], [0, 0, 1, 1], [], []>} : vector<8x36xbf16>, vector<36x96xbf16>, vector<8x96xf32> -> vector<8x96xf32>
    %c3 = arith.constant 3 : index
    %c0_10 = arith.constant 0 : index
    %c0_11 = arith.constant 0 : index
    %10 = vector.load %arg0[%c3, %c0_10, %c0_11] : memref<4x36x96xbf16, #tpu.memory_space<vmem>>, vector<1x36x96xbf16>
    %11 = vector.shape_cast %10 : vector<1x36x96xbf16> to vector<36x96xbf16>
    %cst_12 = arith.constant dense<0.000000e+00> : vector<8x96xf32>
    %12 = tpu.matmul %0, %11, %cst_12 {dimension_numbers = #tpu.dot_dimension_numbers<[1], [0], [0], [1], [0, 0, 1, 1], [], []>} : vector<8x36xbf16>, vector<36x96xbf16>, vector<8x96xf32> -> vector<8x96xf32>
    %13 = arith.maximumf %3, %6 : vector<8x96xf32>
    %14 = arith.maximumf %9, %12 : vector<8x96xf32>
    %15 = arith.maximumf %13, %14 : vector<8x96xf32>
    %c0_13 = arith.constant 0 : index
    %c0_14 = arith.constant 0 : index
    %16 = vector.load %arg2[%c0_13, %c0_14] : memref<8x1xf32, #tpu.memory_space<vmem>>, vector<8x1xf32>
    %17 = vector.broadcast %16 : vector<8x1xf32> to vector<8x96xf32>
    %18 = arith.addf %15, %17 : vector<8x96xf32>
    %cst_15 = arith.constant 0.000000e+00 : f32
    %19 = vector.broadcast %cst_15 : f32 to vector<8x96xf32>
    %20 = arith.maximumf %18, %19 : vector<8x96xf32>
    %c0_16 = arith.constant 0 : index
    %c0_17 = arith.constant 0 : index
    %21 = vector.load %arg3[%c0_16, %c0_17] : memref<8x96xf32, #tpu.memory_space<vmem>>, vector<8x96xf32>
    tpu.vector_store %arg3[%c0_16, %c0_17], %20 {strides = array<i32>} : memref<8x96xf32, #tpu.memory_space<vmem>>, vector<8x96xf32>,
    return
  }
}

module attributes {stable_mosaic.version = 11 : i64} {
  func.func @kernel(%arg0: memref<16x48xbf16, #tpu.memory_space<vmem>>, %arg1: memref<48x96xbf16, #tpu.memory_space<vmem>>, %arg2: memref<48x96xbf16, #tpu.memory_space<vmem>>, %arg3: memref<1x96xf32, #tpu.memory_space<vmem>>, %arg4: memref<1x96xf32, #tpu.memory_space<vmem>>, %arg5: memref<32x96xf32, #tpu.memory_space<vmem>>, %arg6: memref<32x96xf32, #tpu.memory_space<vmem>>, %arg7: memref<1x96xf32, #tpu.memory_space<vmem>>, %arg8: memref<1x96xf32, #tpu.memory_space<vmem>>, %arg9: memref<64x16xf32, #tpu.memory_space<vmem>>, %arg10: memref<1x1x16xf32, #tpu.memory_space<vmem>>, %arg11: memref<8x2x16xf32, #tpu.memory_space<vmem>>) attributes {dimension_semantics = [], scalar_prefetch = 0 : i64, scratch_operands = 0 : i64, tpu.core_type = #tpu.core_type<tc>} {
    %c0 = arith.constant 0 : index
    %c0_0 = arith.constant 0 : index
    %0 = vector.load %arg0[%c0, %c0_0] : memref<16x48xbf16, #tpu.memory_space<vmem>>, vector<16x48xbf16>
    %c0_1 = arith.constant 0 : index
    %c0_2 = arith.constant 0 : index
    %1 = vector.load %arg1[%c0_1, %c0_2] : memref<48x96xbf16, #tpu.memory_space<vmem>>, vector<48x96xbf16>
    %cst = arith.constant dense<0.000000e+00> : vector<16x96xf32>
    %2 = tpu.matmul %0, %1, %cst {dimension_numbers = #tpu.dot_dimension_numbers<[1], [0], [0], [1], [0, 0, 1, 1], [], []>} : vector<16x48xbf16>, vector<48x96xbf16>, vector<16x96xf32> -> vector<16x96xf32>
    %c0_3 = arith.constant 0 : index
    %c0_4 = arith.constant 0 : index
    %3 = vector.load %arg3[%c0_3, %c0_4] : memref<1x96xf32, #tpu.memory_space<vmem>>, vector<1x96xf32>
    %4 = vector.broadcast %3 : vector<1x96xf32> to vector<16x96xf32>
    %5 = arith.addf %2, %4 : vector<16x96xf32>
    %c0_5 = arith.constant 0 : index
    %c0_6 = arith.constant 0 : index
    %6 = vector.load %arg2[%c0_5, %c0_6] : memref<48x96xbf16, #tpu.memory_space<vmem>>, vector<48x96xbf16>
    %cst_7 = arith.constant dense<0.000000e+00> : vector<16x96xf32>
    %7 = tpu.matmul %0, %6, %cst_7 {dimension_numbers = #tpu.dot_dimension_numbers<[1], [0], [0], [1], [0, 0, 1, 1], [], []>} : vector<16x48xbf16>, vector<48x96xbf16>, vector<16x96xf32> -> vector<16x96xf32>
    %c0_8 = arith.constant 0 : index
    %c0_9 = arith.constant 0 : index
    %8 = vector.load %arg4[%c0_8, %c0_9] : memref<1x96xf32, #tpu.memory_space<vmem>>, vector<1x96xf32>
    %9 = vector.broadcast %8 : vector<1x96xf32> to vector<16x96xf32>
    %10 = arith.addf %7, %9 : vector<16x96xf32>
    %c0_10 = arith.constant 0 : index
    %c0_11 = arith.constant 0 : index
    %11 = vector.load %arg5[%c0_10, %c0_11] : memref<32x96xf32, #tpu.memory_space<vmem>>, vector<32x96xf32>
    %c0_12 = arith.constant 0 : index
    %c0_13 = arith.constant 0 : index
    %12 = vector.load %arg6[%c0_12, %c0_13] : memref<32x96xf32, #tpu.memory_space<vmem>>, vector<32x96xf32>
    %c0_14 = arith.constant 0 : index
    %c0_15 = arith.constant 0 : index
    %13 = vector.load %arg7[%c0_14, %c0_15] : memref<1x96xf32, #tpu.memory_space<vmem>>, vector<1x96xf32>
    %c0_16 = arith.constant 0 : index
    %c0_17 = arith.constant 0 : index
    %14 = vector.load %arg8[%c0_16, %c0_17] : memref<1x96xf32, #tpu.memory_space<vmem>>, vector<1x96xf32>
    %c0_18 = arith.constant 0 : index
    %c0_19 = arith.constant 0 : index
    %15 = vector.load %arg9[%c0_18, %c0_19] : memref<64x16xf32, #tpu.memory_space<vmem>>, vector<32x16xf32>
    %c32 = arith.constant 32 : index
    %c0_20 = arith.constant 0 : index
    %16 = vector.load %arg9[%c32, %c0_20] : memref<64x16xf32, #tpu.memory_space<vmem>>, vector<32x16xf32>
    %cst_21 = arith.constant 0.000000e+00 : f32
    %17 = vector.broadcast %cst_21 : f32 to vector<8x2x16xf32>
    %c0_22 = arith.constant 0 : index
    %c0_23 = arith.constant 0 : index
    %c0_24 = arith.constant 0 : index
    %18 = vector.load %arg11[%c0_22, %c0_23, %c0_24] : memref<8x2x16xf32, #tpu.memory_space<vmem>>, vector<8x2x16xf32>
    tpu.vector_store %arg11[%c0_22, %c0_23, %c0_24], %17 {strides = array<i32>} : memref<8x2x16xf32, #tpu.memory_space<vmem>>, vector<8x2x16xf32>,
    %cst_25 = arith.constant 0.000000e+00 : f32
    %19 = vector.broadcast %cst_25 : f32 to vector<2x32xf32>
    %cst_26 = arith.constant 0.000000e+00 : f32
    %20 = vector.broadcast %cst_26 : f32 to vector<2x32xf32>
    %21 = vector.extract_strided_slice %5 {offsets = [0, 0], sizes = [2, 96], strides = [1, 1]} : vector<16x96xf32> to vector<2x96xf32>
    %cst_27 = arith.constant dense<0.000000e+00> : vector<2x96xf32>
    %22 = tpu.matmul %19, %11, %cst_27 {dimension_numbers = #tpu.dot_dimension_numbers<[1], [0], [0], [1], [0, 0, 1, 1], [], []>} : vector<2x32xf32>, vector<32x96xf32>, vector<2x96xf32> -> vector<2x96xf32>
    %23 = vector.broadcast %13 : vector<1x96xf32> to vector<2x96xf32>
    %24 = arith.addf %22, %23 : vector<2x96xf32>
    %25 = vector.extract_strided_slice %21 {offsets = [0, 0], sizes = [2, 32], strides = [1, 1]} : vector<2x96xf32> to vector<2x32xf32>
    %26 = vector.extract_strided_slice %24 {offsets = [0, 0], sizes = [2, 32], strides = [1, 1]} : vector<2x96xf32> to vector<2x32xf32>
    %27 = arith.addf %25, %26 : vector<2x32xf32>
    %28 = arith.negf %27 : vector<2x32xf32>
    %29 = math.exp %28 : vector<2x32xf32>
    %cst_28 = arith.constant 1.000000e+00 : f32
    %30 = vector.broadcast %cst_28 : f32 to vector<2x32xf32>
    %31 = arith.addf %30, %29 : vector<2x32xf32>
    %32 = arith.divf %30, %31 : vector<2x32xf32>
    %33 = vector.extract_strided_slice %21 {offsets = [0, 32], sizes = [2, 32], strides = [1, 1]} : vector<2x96xf32> to vector<2x32xf32>
    %34 = vector.extract_strided_slice %24 {offsets = [0, 32], sizes = [2, 32], strides = [1, 1]} : vector<2x96xf32> to vector<2x32xf32>
    %35 = arith.addf %33, %34 : vector<2x32xf32>
    %36 = arith.negf %35 : vector<2x32xf32>
    %37 = math.exp %36 : vector<2x32xf32>
    %cst_29 = arith.constant 1.000000e+00 : f32
    %38 = vector.broadcast %cst_29 : f32 to vector<2x32xf32>
    %39 = arith.addf %38, %37 : vector<2x32xf32>
    %40 = arith.divf %38, %39 : vector<2x32xf32>
    %41 = vector.extract_strided_slice %21 {offsets = [0, 64], sizes = [2, 32], strides = [1, 1]} : vector<2x96xf32> to vector<2x32xf32>
    %42 = vector.extract_strided_slice %24 {offsets = [0, 64], sizes = [2, 32], strides = [1, 1]} : vector<2x96xf32> to vector<2x32xf32>
    %43 = arith.mulf %32, %42 : vector<2x32xf32>
    %44 = arith.addf %41, %43 : vector<2x32xf32>
    %45 = math.tanh %44 : vector<2x32xf32>
    %cst_30 = arith.constant 1.000000e+00 : f32
    %46 = vector.broadcast %cst_30 : f32 to vector<2x32xf32>
    %47 = arith.subf %46, %40 : vector<2x32xf32>
    %48 = arith.mulf %47, %45 : vector<2x32xf32>
    %49 = arith.mulf %40, %19 : vector<2x32xf32>
    %50 = arith.addf %48, %49 : vector<2x32xf32>
    %51 = vector.extract_strided_slice %10 {offsets = [14, 0], sizes = [2, 96], strides = [1, 1]} : vector<16x96xf32> to vector<2x96xf32>
    %cst_31 = arith.constant dense<0.000000e+00> : vector<2x96xf32>
    %52 = tpu.matmul %20, %12, %cst_31 {dimension_numbers = #tpu.dot_dimension_numbers<[1], [0], [0], [1], [0, 0, 1, 1], [], []>} : vector<2x32xf32>, vector<32x96xf32>, vector<2x96xf32> -> vector<2x96xf32>
    %53 = vector.broadcast %14 : vector<1x96xf32> to vector<2x96xf32>
    %54 = arith.addf %52, %53 : vector<2x96xf32>
    %55 = vector.extract_strided_slice %51 {offsets = [0, 0], sizes = [2, 32], strides = [1, 1]} : vector<2x96xf32> to vector<2x32xf32>
    %56 = vector.extract_strided_slice %54 {offsets = [0, 0], sizes = [2, 32], strides = [1, 1]} : vector<2x96xf32> to vector<2x32xf32>
    %57 = arith.addf %55, %56 : vector<2x32xf32>
    %58 = arith.negf %57 : vector<2x32xf32>
    %59 = math.exp %58 : vector<2x32xf32>
    %cst_32 = arith.constant 1.000000e+00 : f32
    %60 = vector.broadcast %cst_32 : f32 to vector<2x32xf32>
    %61 = arith.addf %60, %59 : vector<2x32xf32>
    %62 = arith.divf %60, %61 : vector<2x32xf32>
    %63 = vector.extract_strided_slice %51 {offsets = [0, 32], sizes = [2, 32], strides = [1, 1]} : vector<2x96xf32> to vector<2x32xf32>
    %64 = vector.extract_strided_slice %54 {offsets = [0, 32], sizes = [2, 32], strides = [1, 1]} : vector<2x96xf32> to vector<2x32xf32>
    %65 = arith.addf %63, %64 : vector<2x32xf32>
    %66 = arith.negf %65 : vector<2x32xf32>
    %67 = math.exp %66 : vector<2x32xf32>
    %cst_33 = arith.constant 1.000000e+00 : f32
    %68 = vector.broadcast %cst_33 : f32 to vector<2x32xf32>
    %69 = arith.addf %68, %67 : vector<2x32xf32>
    %70 = arith.divf %68, %69 : vector<2x32xf32>
    %71 = vector.extract_strided_slice %51 {offsets = [0, 64], sizes = [2, 32], strides = [1, 1]} : vector<2x96xf32> to vector<2x32xf32>
    %72 = vector.extract_strided_slice %54 {offsets = [0, 64], sizes = [2, 32], strides = [1, 1]} : vector<2x96xf32> to vector<2x32xf32>
    %73 = arith.mulf %62, %72 : vector<2x32xf32>
    %74 = arith.addf %71, %73 : vector<2x32xf32>
    %75 = math.tanh %74 : vector<2x32xf32>
    %cst_34 = arith.constant 1.000000e+00 : f32
    %76 = vector.broadcast %cst_34 : f32 to vector<2x32xf32>
    %77 = arith.subf %76, %70 : vector<2x32xf32>
    %78 = arith.mulf %77, %75 : vector<2x32xf32>
    %79 = arith.mulf %70, %20 : vector<2x32xf32>
    %80 = arith.addf %78, %79 : vector<2x32xf32>
    %c0_35 = arith.constant 0 : index
    %c0_36 = arith.constant 0 : index
    %c0_37 = arith.constant 0 : index
    %81 = vector.load %arg11[%c0_35, %c0_36, %c0_37] : memref<8x2x16xf32, #tpu.memory_space<vmem>>, vector<1x2x16xf32>
    %82 = vector.shape_cast %81 : vector<1x2x16xf32> to vector<2x16xf32>
    %cst_38 = arith.constant dense<0.000000e+00> : vector<2x16xf32>
    %83 = tpu.matmul %50, %15, %cst_38 {dimension_numbers = #tpu.dot_dimension_numbers<[1], [0], [0], [1], [0, 0, 1, 1], [], []>} : vector<2x32xf32>, vector<32x16xf32>, vector<2x16xf32> -> vector<2x16xf32>
    %84 = arith.addf %82, %83 : vector<2x16xf32>
    %c0_39 = arith.constant 0 : index
    %c0_40 = arith.constant 0 : index
    %c0_41 = arith.constant 0 : index
    %85 = vector.load %arg11[%c0_39, %c0_40, %c0_41] : memref<8x2x16xf32, #tpu.memory_space<vmem>>, vector<1x2x16xf32>
    %86 = vector.shape_cast %85 : vector<1x2x16xf32> to vector<2x16xf32>
    %87 = vector.shape_cast %84 : vector<2x16xf32> to vector<1x2x16xf32>
    tpu.vector_store %arg11[%c0_39, %c0_40, %c0_41], %87 {strides = array<i32>} : memref<8x2x16xf32, #tpu.memory_space<vmem>>, vector<1x2x16xf32>,
    %c7 = arith.constant 7 : index
    %c0_42 = arith.constant 0 : index
    %c0_43 = arith.constant 0 : index
    %88 = vector.load %arg11[%c7, %c0_42, %c0_43] : memref<8x2x16xf32, #tpu.memory_space<vmem>>, vector<1x2x16xf32>
    %89 = vector.shape_cast %88 : vector<1x2x16xf32> to vector<2x16xf32>
    %cst_44 = arith.constant dense<0.000000e+00> : vector<2x16xf32>
    %90 = tpu.matmul %80, %16, %cst_44 {dimension_numbers = #tpu.dot_dimension_numbers<[1], [0], [0], [1], [0, 0, 1, 1], [], []>} : vector<2x32xf32>, vector<32x16xf32>, vector<2x16xf32> -> vector<2x16xf32>
    %91 = arith.addf %89, %90 : vector<2x16xf32>
    %c7_45 = arith.constant 7 : index
    %c0_46 = arith.constant 0 : index
    %c0_47 = arith.constant 0 : index
    %92 = vector.load %arg11[%c7_45, %c0_46, %c0_47] : memref<8x2x16xf32, #tpu.memory_space<vmem>>, vector<1x2x16xf32>
    %93 = vector.shape_cast %92 : vector<1x2x16xf32> to vector<2x16xf32>
    %94 = vector.shape_cast %91 : vector<2x16xf32> to vector<1x2x16xf32>
    tpu.vector_store %arg11[%c7_45, %c0_46, %c0_47], %94 {strides = array<i32>} : memref<8x2x16xf32, #tpu.memory_space<vmem>>, vector<1x2x16xf32>,
    %95 = vector.extract_strided_slice %5 {offsets = [2, 0], sizes = [2, 96], strides = [1, 1]} : vector<16x96xf32> to vector<2x96xf32>
    %cst_48 = arith.constant dense<0.000000e+00> : vector<2x96xf32>
    %96 = tpu.matmul %50, %11, %cst_48 {dimension_numbers = #tpu.dot_dimension_numbers<[1], [0], [0], [1], [0, 0, 1, 1], [], []>} : vector<2x32xf32>, vector<32x96xf32>, vector<2x96xf32> -> vector<2x96xf32>
    %97 = vector.broadcast %13 : vector<1x96xf32> to vector<2x96xf32>
    %98 = arith.addf %96, %97 : vector<2x96xf32>
    %99 = vector.extract_strided_slice %95 {offsets = [0, 0], sizes = [2, 32], strides = [1, 1]} : vector<2x96xf32> to vector<2x32xf32>
    %100 = vector.extract_strided_slice %98 {offsets = [0, 0], sizes = [2, 32], strides = [1, 1]} : vector<2x96xf32> to vector<2x32xf32>
    %101 = arith.addf %99, %100 : vector<2x32xf32>
    %102 = arith.negf %101 : vector<2x32xf32>
    %103 = math.exp %102 : vector<2x32xf32>
    %cst_49 = arith.constant 1.000000e+00 : f32
    %104 = vector.broadcast %cst_49 : f32 to vector<2x32xf32>
    %105 = arith.addf %104, %103 : vector<2x32xf32>
    %106 = arith.divf %104, %105 : vector<2x32xf32>
    %107 = vector.extract_strided_slice %95 {offsets = [0, 32], sizes = [2, 32], strides = [1, 1]} : vector<2x96xf32> to vector<2x32xf32>
    %108 = vector.extract_strided_slice %98 {offsets = [0, 32], sizes = [2, 32], strides = [1, 1]} : vector<2x96xf32> to vector<2x32xf32>
    %109 = arith.addf %107, %108 : vector<2x32xf32>
    %110 = arith.negf %109 : vector<2x32xf32>
    %111 = math.exp %110 : vector<2x32xf32>
    %cst_50 = arith.constant 1.000000e+00 : f32
    %112 = vector.broadcast %cst_50 : f32 to vector<2x32xf32>
    %113 = arith.addf %112, %111 : vector<2x32xf32>
    %114 = arith.divf %112, %113 : vector<2x32xf32>
    %115 = vector.extract_strided_slice %95 {offsets = [0, 64], sizes = [2, 32], strides = [1, 1]} : vector<2x96xf32> to vector<2x32xf32>
    %116 = vector.extract_strided_slice %98 {offsets = [0, 64], sizes = [2, 32], strides = [1, 1]} : vector<2x96xf32> to vector<2x32xf32>
    %117 = arith.mulf %106, %116 : vector<2x32xf32>
    %118 = arith.addf %115, %117 : vector<2x32xf32>
    %119 = math.tanh %118 : vector<2x32xf32>
    %cst_51 = arith.constant 1.000000e+00 : f32
    %120 = vector.broadcast %cst_51 : f32 to vector<2x32xf32>
    %121 = arith.subf %120, %114 : vector<2x32xf32>
    %122 = arith.mulf %121, %119 : vector<2x32xf32>
    %123 = arith.mulf %114, %50 : vector<2x32xf32>
    %124 = arith.addf %122, %123 : vector<2x32xf32>
    %125 = vector.extract_strided_slice %10 {offsets = [12, 0], sizes = [2, 96], strides = [1, 1]} : vector<16x96xf32> to vector<2x96xf32>
    %cst_52 = arith.constant dense<0.000000e+00> : vector<2x96xf32>
    %126 = tpu.matmul %80, %12, %cst_52 {dimension_numbers = #tpu.dot_dimension_numbers<[1], [0], [0], [1], [0, 0, 1, 1], [], []>} : vector<2x32xf32>, vector<32x96xf32>, vector<2x96xf32> -> vector<2x96xf32>
    %127 = vector.broadcast %14 : vector<1x96xf32> to vector<2x96xf32>
    %128 = arith.addf %126, %127 : vector<2x96xf32>
    %129 = vector.extract_strided_slice %125 {offsets = [0, 0], sizes = [2, 32], strides = [1, 1]} : vector<2x96xf32> to vector<2x32xf32>
    %130 = vector.extract_strided_slice %128 {offsets = [0, 0], sizes = [2, 32], strides = [1, 1]} : vector<2x96xf32> to vector<2x32xf32>
    %131 = arith.addf %129, %130 : vector<2x32xf32>
    %132 = arith.negf %131 : vector<2x32xf32>
    %133 = math.exp %132 : vector<2x32xf32>
    %cst_53 = arith.constant 1.000000e+00 : f32
    %134 = vector.broadcast %cst_53 : f32 to vector<2x32xf32>
    %135 = arith.addf %134, %133 : vector<2x32xf32>
    %136 = arith.divf %134, %135 : vector<2x32xf32>
    %137 = vector.extract_strided_slice %125 {offsets = [0, 32], sizes = [2, 32], strides = [1, 1]} : vector<2x96xf32> to vector<2x32xf32>
    %138 = vector.extract_strided_slice %128 {offsets = [0, 32], sizes = [2, 32], strides = [1, 1]} : vector<2x96xf32> to vector<2x32xf32>
    %139 = arith.addf %137, %138 : vector<2x32xf32>
    %140 = arith.negf %139 : vector<2x32xf32>
    %141 = math.exp %140 : vector<2x32xf32>
    %cst_54 = arith.constant 1.000000e+00 : f32
    %142 = vector.broadcast %cst_54 : f32 to vector<2x32xf32>
    %143 = arith.addf %142, %141 : vector<2x32xf32>
    %144 = arith.divf %142, %143 : vector<2x32xf32>
    %145 = vector.extract_strided_slice %125 {offsets = [0, 64], sizes = [2, 32], strides = [1, 1]} : vector<2x96xf32> to vector<2x32xf32>
    %146 = vector.extract_strided_slice %128 {offsets = [0, 64], sizes = [2, 32], strides = [1, 1]} : vector<2x96xf32> to vector<2x32xf32>
    %147 = arith.mulf %136, %146 : vector<2x32xf32>
    %148 = arith.addf %145, %147 : vector<2x32xf32>
    %149 = math.tanh %148 : vector<2x32xf32>
    %cst_55 = arith.constant 1.000000e+00 : f32
    %150 = vector.broadcast %cst_55 : f32 to vector<2x32xf32>
    %151 = arith.subf %150, %144 : vector<2x32xf32>
    %152 = arith.mulf %151, %149 : vector<2x32xf32>
    %153 = arith.mulf %144, %80 : vector<2x32xf32>
    %154 = arith.addf %152, %153 : vector<2x32xf32>
    %c1 = arith.constant 1 : index
    %c0_56 = arith.constant 0 : index
    %c0_57 = arith.constant 0 : index
    %155 = vector.load %arg11[%c1, %c0_56, %c0_57] : memref<8x2x16xf32, #tpu.memory_space<vmem>>, vector<1x2x16xf32>
    %156 = vector.shape_cast %155 : vector<1x2x16xf32> to vector<2x16xf32>
    %cst_58 = arith.constant dense<0.000000e+00> : vector<2x16xf32>
    %157 = tpu.matmul %124, %15, %cst_58 {dimension_numbers = #tpu.dot_dimension_numbers<[1], [0], [0], [1], [0, 0, 1, 1], [], []>} : vector<2x32xf32>, vector<32x16xf32>, vector<2x16xf32> -> vector<2x16xf32>
    %158 = arith.addf %156, %157 : vector<2x16xf32>
    %c1_59 = arith.constant 1 : index
    %c0_60 = arith.constant 0 : index
    %c0_61 = arith.constant 0 : index
    %159 = vector.load %arg11[%c1_59, %c0_60, %c0_61] : memref<8x2x16xf32, #tpu.memory_space<vmem>>, vector<1x2x16xf32>
    %160 = vector.shape_cast %159 : vector<1x2x16xf32> to vector<2x16xf32>
    %161 = vector.shape_cast %158 : vector<2x16xf32> to vector<1x2x16xf32>
    tpu.vector_store %arg11[%c1_59, %c0_60, %c0_61], %161 {strides = array<i32>} : memref<8x2x16xf32, #tpu.memory_space<vmem>>, vector<1x2x16xf32>,
    %c6 = arith.constant 6 : index
    %c0_62 = arith.constant 0 : index
    %c0_63 = arith.constant 0 : index
    %162 = vector.load %arg11[%c6, %c0_62, %c0_63] : memref<8x2x16xf32, #tpu.memory_space<vmem>>, vector<1x2x16xf32>
    %163 = vector.shape_cast %162 : vector<1x2x16xf32> to vector<2x16xf32>
    %cst_64 = arith.constant dense<0.000000e+00> : vector<2x16xf32>
    %164 = tpu.matmul %154, %16, %cst_64 {dimension_numbers = #tpu.dot_dimension_numbers<[1], [0], [0], [1], [0, 0, 1, 1], [], []>} : vector<2x32xf32>, vector<32x16xf32>, vector<2x16xf32> -> vector<2x16xf32>
    %165 = arith.addf %163, %164 : vector<2x16xf32>
    %c6_65 = arith.constant 6 : index
    %c0_66 = arith.constant 0 : index
    %c0_67 = arith.constant 0 : index
    %166 = vector.load %arg11[%c6_65, %c0_66, %c0_67] : memref<8x2x16xf32, #tpu.memory_space<vmem>>, vector<1x2x16xf32>
    %167 = vector.shape_cast %166 : vector<1x2x16xf32> to vector<2x16xf32>
    %168 = vector.shape_cast %165 : vector<2x16xf32> to vector<1x2x16xf32>
    tpu.vector_store %arg11[%c6_65, %c0_66, %c0_67], %168 {strides = array<i32>} : memref<8x2x16xf32, #tpu.memory_space<vmem>>, vector<1x2x16xf32>,
    %169 = vector.extract_strided_slice %5 {offsets = [4, 0], sizes = [2, 96], strides = [1, 1]} : vector<16x96xf32> to vector<2x96xf32>
    %cst_68 = arith.constant dense<0.000000e+00> : vector<2x96xf32>
    %170 = tpu.matmul %124, %11, %cst_68 {dimension_numbers = #tpu.dot_dimension_numbers<[1], [0], [0], [1], [0, 0, 1, 1], [], []>} : vector<2x32xf32>, vector<32x96xf32>, vector<2x96xf32> -> vector<2x96xf32>
    %171 = vector.broadcast %13 : vector<1x96xf32> to vector<2x96xf32>
    %172 = arith.addf %170, %171 : vector<2x96xf32>
    %173 = vector.extract_strided_slice %169 {offsets = [0, 0], sizes = [2, 32], strides = [1, 1]} : vector<2x96xf32> to vector<2x32xf32>
    %174 = vector.extract_strided_slice %172 {offsets = [0, 0], sizes = [2, 32], strides = [1, 1]} : vector<2x96xf32> to vector<2x32xf32>
    %175 = arith.addf %173, %174 : vector<2x32xf32>
    %176 = arith.negf %175 : vector<2x32xf32>
    %177 = math.exp %176 : vector<2x32xf32>
    %cst_69 = arith.constant 1.000000e+00 : f32
    %178 = vector.broadcast %cst_69 : f32 to vector<2x32xf32>
    %179 = arith.addf %178, %177 : vector<2x32xf32>
    %180 = arith.divf %178, %179 : vector<2x32xf32>
    %181 = vector.extract_strided_slice %169 {offsets = [0, 32], sizes = [2, 32], strides = [1, 1]} : vector<2x96xf32> to vector<2x32xf32>
    %182 = vector.extract_strided_slice %172 {offsets = [0, 32], sizes = [2, 32], strides = [1, 1]} : vector<2x96xf32> to vector<2x32xf32>
    %183 = arith.addf %181, %182 : vector<2x32xf32>
    %184 = arith.negf %183 : vector<2x32xf32>
    %185 = math.exp %184 : vector<2x32xf32>
    %cst_70 = arith.constant 1.000000e+00 : f32
    %186 = vector.broadcast %cst_70 : f32 to vector<2x32xf32>
    %187 = arith.addf %186, %185 : vector<2x32xf32>
    %188 = arith.divf %186, %187 : vector<2x32xf32>
    %189 = vector.extract_strided_slice %169 {offsets = [0, 64], sizes = [2, 32], strides = [1, 1]} : vector<2x96xf32> to vector<2x32xf32>
    %190 = vector.extract_strided_slice %172 {offsets = [0, 64], sizes = [2, 32], strides = [1, 1]} : vector<2x96xf32> to vector<2x32xf32>
    %191 = arith.mulf %180, %190 : vector<2x32xf32>
    %192 = arith.addf %189, %191 : vector<2x32xf32>
    %193 = math.tanh %192 : vector<2x32xf32>
    %cst_71 = arith.constant 1.000000e+00 : f32
    %194 = vector.broadcast %cst_71 : f32 to vector<2x32xf32>
    %195 = arith.subf %194, %188 : vector<2x32xf32>
    %196 = arith.mulf %195, %193 : vector<2x32xf32>
    %197 = arith.mulf %188, %124 : vector<2x32xf32>
    %198 = arith.addf %196, %197 : vector<2x32xf32>
    %199 = vector.extract_strided_slice %10 {offsets = [10, 0], sizes = [2, 96], strides = [1, 1]} : vector<16x96xf32> to vector<2x96xf32>
    %cst_72 = arith.constant dense<0.000000e+00> : vector<2x96xf32>
    %200 = tpu.matmul %154, %12, %cst_72 {dimension_numbers = #tpu.dot_dimension_numbers<[1], [0], [0], [1], [0, 0, 1, 1], [], []>} : vector<2x32xf32>, vector<32x96xf32>, vector<2x96xf32> -> vector<2x96xf32>
    %201 = vector.broadcast %14 : vector<1x96xf32> to vector<2x96xf32>
    %202 = arith.addf %200, %201 : vector<2x96xf32>
    %203 = vector.extract_strided_slice %199 {offsets = [0, 0], sizes = [2, 32], strides = [1, 1]} : vector<2x96xf32> to vector<2x32xf32>
    %204 = vector.extract_strided_slice %202 {offsets = [0, 0], sizes = [2, 32], strides = [1, 1]} : vector<2x96xf32> to vector<2x32xf32>
    %205 = arith.addf %203, %204 : vector<2x32xf32>
    %206 = arith.negf %205 : vector<2x32xf32>
    %207 = math.exp %206 : vector<2x32xf32>
    %cst_73 = arith.constant 1.000000e+00 : f32
    %208 = vector.broadcast %cst_73 : f32 to vector<2x32xf32>
    %209 = arith.addf %208, %207 : vector<2x32xf32>
    %210 = arith.divf %208, %209 : vector<2x32xf32>
    %211 = vector.extract_strided_slice %199 {offsets = [0, 32], sizes = [2, 32], strides = [1, 1]} : vector<2x96xf32> to vector<2x32xf32>
    %212 = vector.extract_strided_slice %202 {offsets = [0, 32], sizes = [2, 32], strides = [1, 1]} : vector<2x96xf32> to vector<2x32xf32>
    %213 = arith.addf %211, %212 : vector<2x32xf32>
    %214 = arith.negf %213 : vector<2x32xf32>
    %215 = math.exp %214 : vector<2x32xf32>
    %cst_74 = arith.constant 1.000000e+00 : f32
    %216 = vector.broadcast %cst_74 : f32 to vector<2x32xf32>
    %217 = arith.addf %216, %215 : vector<2x32xf32>
    %218 = arith.divf %216, %217 : vector<2x32xf32>
    %219 = vector.extract_strided_slice %199 {offsets = [0, 64], sizes = [2, 32], strides = [1, 1]} : vector<2x96xf32> to vector<2x32xf32>
    %220 = vector.extract_strided_slice %202 {offsets = [0, 64], sizes = [2, 32], strides = [1, 1]} : vector<2x96xf32> to vector<2x32xf32>
    %221 = arith.mulf %210, %220 : vector<2x32xf32>
    %222 = arith.addf %219, %221 : vector<2x32xf32>
    %223 = math.tanh %222 : vector<2x32xf32>
    %cst_75 = arith.constant 1.000000e+00 : f32
    %224 = vector.broadcast %cst_75 : f32 to vector<2x32xf32>
    %225 = arith.subf %224, %218 : vector<2x32xf32>
    %226 = arith.mulf %225, %223 : vector<2x32xf32>
    %227 = arith.mulf %218, %154 : vector<2x32xf32>
    %228 = arith.addf %226, %227 : vector<2x32xf32>
    %c2 = arith.constant 2 : index
    %c0_76 = arith.constant 0 : index
    %c0_77 = arith.constant 0 : index
    %229 = vector.load %arg11[%c2, %c0_76, %c0_77] : memref<8x2x16xf32, #tpu.memory_space<vmem>>, vector<1x2x16xf32>
    %230 = vector.shape_cast %229 : vector<1x2x16xf32> to vector<2x16xf32>
    %cst_78 = arith.constant dense<0.000000e+00> : vector<2x16xf32>
    %231 = tpu.matmul %198, %15, %cst_78 {dimension_numbers = #tpu.dot_dimension_numbers<[1], [0], [0], [1], [0, 0, 1, 1], [], []>} : vector<2x32xf32>, vector<32x16xf32>, vector<2x16xf32> -> vector<2x16xf32>
    %232 = arith.addf %230, %231 : vector<2x16xf32>
    %c2_79 = arith.constant 2 : index
    %c0_80 = arith.constant 0 : index
    %c0_81 = arith.constant 0 : index
    %233 = vector.load %arg11[%c2_79, %c0_80, %c0_81] : memref<8x2x16xf32, #tpu.memory_space<vmem>>, vector<1x2x16xf32>
    %234 = vector.shape_cast %233 : vector<1x2x16xf32> to vector<2x16xf32>
    %235 = vector.shape_cast %232 : vector<2x16xf32> to vector<1x2x16xf32>
    tpu.vector_store %arg11[%c2_79, %c0_80, %c0_81], %235 {strides = array<i32>} : memref<8x2x16xf32, #tpu.memory_space<vmem>>, vector<1x2x16xf32>,
    %c5 = arith.constant 5 : index
    %c0_82 = arith.constant 0 : index
    %c0_83 = arith.constant 0 : index
    %236 = vector.load %arg11[%c5, %c0_82, %c0_83] : memref<8x2x16xf32, #tpu.memory_space<vmem>>, vector<1x2x16xf32>
    %237 = vector.shape_cast %236 : vector<1x2x16xf32> to vector<2x16xf32>
    %cst_84 = arith.constant dense<0.000000e+00> : vector<2x16xf32>
    %238 = tpu.matmul %228, %16, %cst_84 {dimension_numbers = #tpu.dot_dimension_numbers<[1], [0], [0], [1], [0, 0, 1, 1], [], []>} : vector<2x32xf32>, vector<32x16xf32>, vector<2x16xf32> -> vector<2x16xf32>
    %239 = arith.addf %237, %238 : vector<2x16xf32>
    %c5_85 = arith.constant 5 : index
    %c0_86 = arith.constant 0 : index
    %c0_87 = arith.constant 0 : index
    %240 = vector.load %arg11[%c5_85, %c0_86, %c0_87] : memref<8x2x16xf32, #tpu.memory_space<vmem>>, vector<1x2x16xf32>
    %241 = vector.shape_cast %240 : vector<1x2x16xf32> to vector<2x16xf32>
    %242 = vector.shape_cast %239 : vector<2x16xf32> to vector<1x2x16xf32>
    tpu.vector_store %arg11[%c5_85, %c0_86, %c0_87], %242 {strides = array<i32>} : memref<8x2x16xf32, #tpu.memory_space<vmem>>, vector<1x2x16xf32>,
    %243 = vector.extract_strided_slice %5 {offsets = [6, 0], sizes = [2, 96], strides = [1, 1]} : vector<16x96xf32> to vector<2x96xf32>
    %cst_88 = arith.constant dense<0.000000e+00> : vector<2x96xf32>
    %244 = tpu.matmul %198, %11, %cst_88 {dimension_numbers = #tpu.dot_dimension_numbers<[1], [0], [0], [1], [0, 0, 1, 1], [], []>} : vector<2x32xf32>, vector<32x96xf32>, vector<2x96xf32> -> vector<2x96xf32>
    %245 = vector.broadcast %13 : vector<1x96xf32> to vector<2x96xf32>
    %246 = arith.addf %244, %245 : vector<2x96xf32>
    %247 = vector.extract_strided_slice %243 {offsets = [0, 0], sizes = [2, 32], strides = [1, 1]} : vector<2x96xf32> to vector<2x32xf32>
    %248 = vector.extract_strided_slice %246 {offsets = [0, 0], sizes = [2, 32], strides = [1, 1]} : vector<2x96xf32> to vector<2x32xf32>
    %249 = arith.addf %247, %248 : vector<2x32xf32>
    %250 = arith.negf %249 : vector<2x32xf32>
    %251 = math.exp %250 : vector<2x32xf32>
    %cst_89 = arith.constant 1.000000e+00 : f32
    %252 = vector.broadcast %cst_89 : f32 to vector<2x32xf32>
    %253 = arith.addf %252, %251 : vector<2x32xf32>
    %254 = arith.divf %252, %253 : vector<2x32xf32>
    %255 = vector.extract_strided_slice %243 {offsets = [0, 32], sizes = [2, 32], strides = [1, 1]} : vector<2x96xf32> to vector<2x32xf32>
    %256 = vector.extract_strided_slice %246 {offsets = [0, 32], sizes = [2, 32], strides = [1, 1]} : vector<2x96xf32> to vector<2x32xf32>
    %257 = arith.addf %255, %256 : vector<2x32xf32>
    %258 = arith.negf %257 : vector<2x32xf32>
    %259 = math.exp %258 : vector<2x32xf32>
    %cst_90 = arith.constant 1.000000e+00 : f32
    %260 = vector.broadcast %cst_90 : f32 to vector<2x32xf32>
    %261 = arith.addf %260, %259 : vector<2x32xf32>
    %262 = arith.divf %260, %261 : vector<2x32xf32>
    %263 = vector.extract_strided_slice %243 {offsets = [0, 64], sizes = [2, 32], strides = [1, 1]} : vector<2x96xf32> to vector<2x32xf32>
    %264 = vector.extract_strided_slice %246 {offsets = [0, 64], sizes = [2, 32], strides = [1, 1]} : vector<2x96xf32> to vector<2x32xf32>
    %265 = arith.mulf %254, %264 : vector<2x32xf32>
    %266 = arith.addf %263, %265 : vector<2x32xf32>
    %267 = math.tanh %266 : vector<2x32xf32>
    %cst_91 = arith.constant 1.000000e+00 : f32
    %268 = vector.broadcast %cst_91 : f32 to vector<2x32xf32>
    %269 = arith.subf %268, %262 : vector<2x32xf32>
    %270 = arith.mulf %269, %267 : vector<2x32xf32>
    %271 = arith.mulf %262, %198 : vector<2x32xf32>
    %272 = arith.addf %270, %271 : vector<2x32xf32>
    %273 = vector.extract_strided_slice %10 {offsets = [8, 0], sizes = [2, 96], strides = [1, 1]} : vector<16x96xf32> to vector<2x96xf32>
    %cst_92 = arith.constant dense<0.000000e+00> : vector<2x96xf32>
    %274 = tpu.matmul %228, %12, %cst_92 {dimension_numbers = #tpu.dot_dimension_numbers<[1], [0], [0], [1], [0, 0, 1, 1], [], []>} : vector<2x32xf32>, vector<32x96xf32>, vector<2x96xf32> -> vector<2x96xf32>
    %275 = vector.broadcast %14 : vector<1x96xf32> to vector<2x96xf32>
    %276 = arith.addf %274, %275 : vector<2x96xf32>
    %277 = vector.extract_strided_slice %273 {offsets = [0, 0], sizes = [2, 32], strides = [1, 1]} : vector<2x96xf32> to vector<2x32xf32>
    %278 = vector.extract_strided_slice %276 {offsets = [0, 0], sizes = [2, 32], strides = [1, 1]} : vector<2x96xf32> to vector<2x32xf32>
    %279 = arith.addf %277, %278 : vector<2x32xf32>
    %280 = arith.negf %279 : vector<2x32xf32>
    %281 = math.exp %280 : vector<2x32xf32>
    %cst_93 = arith.constant 1.000000e+00 : f32
    %282 = vector.broadcast %cst_93 : f32 to vector<2x32xf32>
    %283 = arith.addf %282, %281 : vector<2x32xf32>
    %284 = arith.divf %282, %283 : vector<2x32xf32>
    %285 = vector.extract_strided_slice %273 {offsets = [0, 32], sizes = [2, 32], strides = [1, 1]} : vector<2x96xf32> to vector<2x32xf32>
    %286 = vector.extract_strided_slice %276 {offsets = [0, 32], sizes = [2, 32], strides = [1, 1]} : vector<2x96xf32> to vector<2x32xf32>
    %287 = arith.addf %285, %286 : vector<2x32xf32>
    %288 = arith.negf %287 : vector<2x32xf32>
    %289 = math.exp %288 : vector<2x32xf32>
    %cst_94 = arith.constant 1.000000e+00 : f32
    %290 = vector.broadcast %cst_94 : f32 to vector<2x32xf32>
    %291 = arith.addf %290, %289 : vector<2x32xf32>
    %292 = arith.divf %290, %291 : vector<2x32xf32>
    %293 = vector.extract_strided_slice %273 {offsets = [0, 64], sizes = [2, 32], strides = [1, 1]} : vector<2x96xf32> to vector<2x32xf32>
    %294 = vector.extract_strided_slice %276 {offsets = [0, 64], sizes = [2, 32], strides = [1, 1]} : vector<2x96xf32> to vector<2x32xf32>
    %295 = arith.mulf %284, %294 : vector<2x32xf32>
    %296 = arith.addf %293, %295 : vector<2x32xf32>
    %297 = math.tanh %296 : vector<2x32xf32>
    %cst_95 = arith.constant 1.000000e+00 : f32
    %298 = vector.broadcast %cst_95 : f32 to vector<2x32xf32>
    %299 = arith.subf %298, %292 : vector<2x32xf32>
    %300 = arith.mulf %299, %297 : vector<2x32xf32>
    %301 = arith.mulf %292, %228 : vector<2x32xf32>
    %302 = arith.addf %300, %301 : vector<2x32xf32>
    %c3 = arith.constant 3 : index
    %c0_96 = arith.constant 0 : index
    %c0_97 = arith.constant 0 : index
    %303 = vector.load %arg11[%c3, %c0_96, %c0_97] : memref<8x2x16xf32, #tpu.memory_space<vmem>>, vector<1x2x16xf32>
    %304 = vector.shape_cast %303 : vector<1x2x16xf32> to vector<2x16xf32>
    %cst_98 = arith.constant dense<0.000000e+00> : vector<2x16xf32>
    %305 = tpu.matmul %272, %15, %cst_98 {dimension_numbers = #tpu.dot_dimension_numbers<[1], [0], [0], [1], [0, 0, 1, 1], [], []>} : vector<2x32xf32>, vector<32x16xf32>, vector<2x16xf32> -> vector<2x16xf32>
    %306 = arith.addf %304, %305 : vector<2x16xf32>
    %c3_99 = arith.constant 3 : index
    %c0_100 = arith.constant 0 : index
    %c0_101 = arith.constant 0 : index
    %307 = vector.load %arg11[%c3_99, %c0_100, %c0_101] : memref<8x2x16xf32, #tpu.memory_space<vmem>>, vector<1x2x16xf32>
    %308 = vector.shape_cast %307 : vector<1x2x16xf32> to vector<2x16xf32>
    %309 = vector.shape_cast %306 : vector<2x16xf32> to vector<1x2x16xf32>
    tpu.vector_store %arg11[%c3_99, %c0_100, %c0_101], %309 {strides = array<i32>} : memref<8x2x16xf32, #tpu.memory_space<vmem>>, vector<1x2x16xf32>,
    %c4 = arith.constant 4 : index
    %c0_102 = arith.constant 0 : index
    %c0_103 = arith.constant 0 : index
    %310 = vector.load %arg11[%c4, %c0_102, %c0_103] : memref<8x2x16xf32, #tpu.memory_space<vmem>>, vector<1x2x16xf32>
    %311 = vector.shape_cast %310 : vector<1x2x16xf32> to vector<2x16xf32>
    %cst_104 = arith.constant dense<0.000000e+00> : vector<2x16xf32>
    %312 = tpu.matmul %302, %16, %cst_104 {dimension_numbers = #tpu.dot_dimension_numbers<[1], [0], [0], [1], [0, 0, 1, 1], [], []>} : vector<2x32xf32>, vector<32x16xf32>, vector<2x16xf32> -> vector<2x16xf32>
    %313 = arith.addf %311, %312 : vector<2x16xf32>
    %c4_105 = arith.constant 4 : index
    %c0_106 = arith.constant 0 : index
    %c0_107 = arith.constant 0 : index
    %314 = vector.load %arg11[%c4_105, %c0_106, %c0_107] : memref<8x2x16xf32, #tpu.memory_space<vmem>>, vector<1x2x16xf32>
    %315 = vector.shape_cast %314 : vector<1x2x16xf32> to vector<2x16xf32>
    %316 = vector.shape_cast %313 : vector<2x16xf32> to vector<1x2x16xf32>
    tpu.vector_store %arg11[%c4_105, %c0_106, %c0_107], %316 {strides = array<i32>} : memref<8x2x16xf32, #tpu.memory_space<vmem>>, vector<1x2x16xf32>,
    %317 = vector.extract_strided_slice %5 {offsets = [8, 0], sizes = [2, 96], strides = [1, 1]} : vector<16x96xf32> to vector<2x96xf32>
    %cst_108 = arith.constant dense<0.000000e+00> : vector<2x96xf32>
    %318 = tpu.matmul %272, %11, %cst_108 {dimension_numbers = #tpu.dot_dimension_numbers<[1], [0], [0], [1], [0, 0, 1, 1], [], []>} : vector<2x32xf32>, vector<32x96xf32>, vector<2x96xf32> -> vector<2x96xf32>
    %319 = vector.broadcast %13 : vector<1x96xf32> to vector<2x96xf32>
    %320 = arith.addf %318, %319 : vector<2x96xf32>
    %321 = vector.extract_strided_slice %317 {offsets = [0, 0], sizes = [2, 32], strides = [1, 1]} : vector<2x96xf32> to vector<2x32xf32>
    %322 = vector.extract_strided_slice %320 {offsets = [0, 0], sizes = [2, 32], strides = [1, 1]} : vector<2x96xf32> to vector<2x32xf32>
    %323 = arith.addf %321, %322 : vector<2x32xf32>
    %324 = arith.negf %323 : vector<2x32xf32>
    %325 = math.exp %324 : vector<2x32xf32>
    %cst_109 = arith.constant 1.000000e+00 : f32
    %326 = vector.broadcast %cst_109 : f32 to vector<2x32xf32>
    %327 = arith.addf %326, %325 : vector<2x32xf32>
    %328 = arith.divf %326, %327 : vector<2x32xf32>
    %329 = vector.extract_strided_slice %317 {offsets = [0, 32], sizes = [2, 32], strides = [1, 1]} : vector<2x96xf32> to vector<2x32xf32>
    %330 = vector.extract_strided_slice %320 {offsets = [0, 32], sizes = [2, 32], strides = [1, 1]} : vector<2x96xf32> to vector<2x32xf32>
    %331 = arith.addf %329, %330 : vector<2x32xf32>
    %332 = arith.negf %331 : vector<2x32xf32>
    %333 = math.exp %332 : vector<2x32xf32>
    %cst_110 = arith.constant 1.000000e+00 : f32
    %334 = vector.broadcast %cst_110 : f32 to vector<2x32xf32>
    %335 = arith.addf %334, %333 : vector<2x32xf32>
    %336 = arith.divf %334, %335 : vector<2x32xf32>
    %337 = vector.extract_strided_slice %317 {offsets = [0, 64], sizes = [2, 32], strides = [1, 1]} : vector<2x96xf32> to vector<2x32xf32>
    %338 = vector.extract_strided_slice %320 {offsets = [0, 64], sizes = [2, 32], strides = [1, 1]} : vector<2x96xf32> to vector<2x32xf32>
    %339 = arith.mulf %328, %338 : vector<2x32xf32>
    %340 = arith.addf %337, %339 : vector<2x32xf32>
    %341 = math.tanh %340 : vector<2x32xf32>
    %cst_111 = arith.constant 1.000000e+00 : f32
    %342 = vector.broadcast %cst_111 : f32 to vector<2x32xf32>
    %343 = arith.subf %342, %336 : vector<2x32xf32>
    %344 = arith.mulf %343, %341 : vector<2x32xf32>
    %345 = arith.mulf %336, %272 : vector<2x32xf32>
    %346 = arith.addf %344, %345 : vector<2x32xf32>
    %347 = vector.extract_strided_slice %10 {offsets = [6, 0], sizes = [2, 96], strides = [1, 1]} : vector<16x96xf32> to vector<2x96xf32>
    %cst_112 = arith.constant dense<0.000000e+00> : vector<2x96xf32>
    %348 = tpu.matmul %302, %12, %cst_112 {dimension_numbers = #tpu.dot_dimension_numbers<[1], [0], [0], [1], [0, 0, 1, 1], [], []>} : vector<2x32xf32>, vector<32x96xf32>, vector<2x96xf32> -> vector<2x96xf32>
    %349 = vector.broadcast %14 : vector<1x96xf32> to vector<2x96xf32>
    %350 = arith.addf %348, %349 : vector<2x96xf32>
    %351 = vector.extract_strided_slice %347 {offsets = [0, 0], sizes = [2, 32], strides = [1, 1]} : vector<2x96xf32> to vector<2x32xf32>
    %352 = vector.extract_strided_slice %350 {offsets = [0, 0], sizes = [2, 32], strides = [1, 1]} : vector<2x96xf32> to vector<2x32xf32>
    %353 = arith.addf %351, %352 : vector<2x32xf32>
    %354 = arith.negf %353 : vector<2x32xf32>
    %355 = math.exp %354 : vector<2x32xf32>
    %cst_113 = arith.constant 1.000000e+00 : f32
    %356 = vector.broadcast %cst_113 : f32 to vector<2x32xf32>
    %357 = arith.addf %356, %355 : vector<2x32xf32>
    %358 = arith.divf %356, %357 : vector<2x32xf32>
    %359 = vector.extract_strided_slice %347 {offsets = [0, 32], sizes = [2, 32], strides = [1, 1]} : vector<2x96xf32> to vector<2x32xf32>
    %360 = vector.extract_strided_slice %350 {offsets = [0, 32], sizes = [2, 32], strides = [1, 1]} : vector<2x96xf32> to vector<2x32xf32>
    %361 = arith.addf %359, %360 : vector<2x32xf32>
    %362 = arith.negf %361 : vector<2x32xf32>
    %363 = math.exp %362 : vector<2x32xf32>
    %cst_114 = arith.constant 1.000000e+00 : f32
    %364 = vector.broadcast %cst_114 : f32 to vector<2x32xf32>
    %365 = arith.addf %364, %363 : vector<2x32xf32>
    %366 = arith.divf %364, %365 : vector<2x32xf32>
    %367 = vector.extract_strided_slice %347 {offsets = [0, 64], sizes = [2, 32], strides = [1, 1]} : vector<2x96xf32> to vector<2x32xf32>
    %368 = vector.extract_strided_slice %350 {offsets = [0, 64], sizes = [2, 32], strides = [1, 1]} : vector<2x96xf32> to vector<2x32xf32>
    %369 = arith.mulf %358, %368 : vector<2x32xf32>
    %370 = arith.addf %367, %369 : vector<2x32xf32>
    %371 = math.tanh %370 : vector<2x32xf32>
    %cst_115 = arith.constant 1.000000e+00 : f32
    %372 = vector.broadcast %cst_115 : f32 to vector<2x32xf32>
    %373 = arith.subf %372, %366 : vector<2x32xf32>
    %374 = arith.mulf %373, %371 : vector<2x32xf32>
    %375 = arith.mulf %366, %302 : vector<2x32xf32>
    %376 = arith.addf %374, %375 : vector<2x32xf32>
    %c4_116 = arith.constant 4 : index
    %c0_117 = arith.constant 0 : index
    %c0_118 = arith.constant 0 : index
    %377 = vector.load %arg11[%c4_116, %c0_117, %c0_118] : memref<8x2x16xf32, #tpu.memory_space<vmem>>, vector<1x2x16xf32>
    %378 = vector.shape_cast %377 : vector<1x2x16xf32> to vector<2x16xf32>
    %cst_119 = arith.constant dense<0.000000e+00> : vector<2x16xf32>
    %379 = tpu.matmul %346, %15, %cst_119 {dimension_numbers = #tpu.dot_dimension_numbers<[1], [0], [0], [1], [0, 0, 1, 1], [], []>} : vector<2x32xf32>, vector<32x16xf32>, vector<2x16xf32> -> vector<2x16xf32>
    %380 = arith.addf %378, %379 : vector<2x16xf32>
    %c4_120 = arith.constant 4 : index
    %c0_121 = arith.constant 0 : index
    %c0_122 = arith.constant 0 : index
    %381 = vector.load %arg11[%c4_120, %c0_121, %c0_122] : memref<8x2x16xf32, #tpu.memory_space<vmem>>, vector<1x2x16xf32>
    %382 = vector.shape_cast %381 : vector<1x2x16xf32> to vector<2x16xf32>
    %383 = vector.shape_cast %380 : vector<2x16xf32> to vector<1x2x16xf32>
    tpu.vector_store %arg11[%c4_120, %c0_121, %c0_122], %383 {strides = array<i32>} : memref<8x2x16xf32, #tpu.memory_space<vmem>>, vector<1x2x16xf32>,
    %c3_123 = arith.constant 3 : index
    %c0_124 = arith.constant 0 : index
    %c0_125 = arith.constant 0 : index
    %384 = vector.load %arg11[%c3_123, %c0_124, %c0_125] : memref<8x2x16xf32, #tpu.memory_space<vmem>>, vector<1x2x16xf32>
    %385 = vector.shape_cast %384 : vector<1x2x16xf32> to vector<2x16xf32>
    %cst_126 = arith.constant dense<0.000000e+00> : vector<2x16xf32>
    %386 = tpu.matmul %376, %16, %cst_126 {dimension_numbers = #tpu.dot_dimension_numbers<[1], [0], [0], [1], [0, 0, 1, 1], [], []>} : vector<2x32xf32>, vector<32x16xf32>, vector<2x16xf32> -> vector<2x16xf32>
    %387 = arith.addf %385, %386 : vector<2x16xf32>
    %c3_127 = arith.constant 3 : index
    %c0_128 = arith.constant 0 : index
    %c0_129 = arith.constant 0 : index
    %388 = vector.load %arg11[%c3_127, %c0_128, %c0_129] : memref<8x2x16xf32, #tpu.memory_space<vmem>>, vector<1x2x16xf32>
    %389 = vector.shape_cast %388 : vector<1x2x16xf32> to vector<2x16xf32>
    %390 = vector.shape_cast %387 : vector<2x16xf32> to vector<1x2x16xf32>
    tpu.vector_store %arg11[%c3_127, %c0_128, %c0_129], %390 {strides = array<i32>} : memref<8x2x16xf32, #tpu.memory_space<vmem>>, vector<1x2x16xf32>,
    %391 = vector.extract_strided_slice %5 {offsets = [10, 0], sizes = [2, 96], strides = [1, 1]} : vector<16x96xf32> to vector<2x96xf32>
    %cst_130 = arith.constant dense<0.000000e+00> : vector<2x96xf32>
    %392 = tpu.matmul %346, %11, %cst_130 {dimension_numbers = #tpu.dot_dimension_numbers<[1], [0], [0], [1], [0, 0, 1, 1], [], []>} : vector<2x32xf32>, vector<32x96xf32>, vector<2x96xf32> -> vector<2x96xf32>
    %393 = vector.broadcast %13 : vector<1x96xf32> to vector<2x96xf32>
    %394 = arith.addf %392, %393 : vector<2x96xf32>
    %395 = vector.extract_strided_slice %391 {offsets = [0, 0], sizes = [2, 32], strides = [1, 1]} : vector<2x96xf32> to vector<2x32xf32>
    %396 = vector.extract_strided_slice %394 {offsets = [0, 0], sizes = [2, 32], strides = [1, 1]} : vector<2x96xf32> to vector<2x32xf32>
    %397 = arith.addf %395, %396 : vector<2x32xf32>
    %398 = arith.negf %397 : vector<2x32xf32>
    %399 = math.exp %398 : vector<2x32xf32>
    %cst_131 = arith.constant 1.000000e+00 : f32
    %400 = vector.broadcast %cst_131 : f32 to vector<2x32xf32>
    %401 = arith.addf %400, %399 : vector<2x32xf32>
    %402 = arith.divf %400, %401 : vector<2x32xf32>
    %403 = vector.extract_strided_slice %391 {offsets = [0, 32], sizes = [2, 32], strides = [1, 1]} : vector<2x96xf32> to vector<2x32xf32>
    %404 = vector.extract_strided_slice %394 {offsets = [0, 32], sizes = [2, 32], strides = [1, 1]} : vector<2x96xf32> to vector<2x32xf32>
    %405 = arith.addf %403, %404 : vector<2x32xf32>
    %406 = arith.negf %405 : vector<2x32xf32>
    %407 = math.exp %406 : vector<2x32xf32>
    %cst_132 = arith.constant 1.000000e+00 : f32
    %408 = vector.broadcast %cst_132 : f32 to vector<2x32xf32>
    %409 = arith.addf %408, %407 : vector<2x32xf32>
    %410 = arith.divf %408, %409 : vector<2x32xf32>
    %411 = vector.extract_strided_slice %391 {offsets = [0, 64], sizes = [2, 32], strides = [1, 1]} : vector<2x96xf32> to vector<2x32xf32>
    %412 = vector.extract_strided_slice %394 {offsets = [0, 64], sizes = [2, 32], strides = [1, 1]} : vector<2x96xf32> to vector<2x32xf32>
    %413 = arith.mulf %402, %412 : vector<2x32xf32>
    %414 = arith.addf %411, %413 : vector<2x32xf32>
    %415 = math.tanh %414 : vector<2x32xf32>
    %cst_133 = arith.constant 1.000000e+00 : f32
    %416 = vector.broadcast %cst_133 : f32 to vector<2x32xf32>
    %417 = arith.subf %416, %410 : vector<2x32xf32>
    %418 = arith.mulf %417, %415 : vector<2x32xf32>
    %419 = arith.mulf %410, %346 : vector<2x32xf32>
    %420 = arith.addf %418, %419 : vector<2x32xf32>
    %421 = vector.extract_strided_slice %10 {offsets = [4, 0], sizes = [2, 96], strides = [1, 1]} : vector<16x96xf32> to vector<2x96xf32>
    %cst_134 = arith.constant dense<0.000000e+00> : vector<2x96xf32>
    %422 = tpu.matmul %376, %12, %cst_134 {dimension_numbers = #tpu.dot_dimension_numbers<[1], [0], [0], [1], [0, 0, 1, 1], [], []>} : vector<2x32xf32>, vector<32x96xf32>, vector<2x96xf32> -> vector<2x96xf32>
    %423 = vector.broadcast %14 : vector<1x96xf32> to vector<2x96xf32>
    %424 = arith.addf %422, %423 : vector<2x96xf32>
    %425 = vector.extract_strided_slice %421 {offsets = [0, 0], sizes = [2, 32], strides = [1, 1]} : vector<2x96xf32> to vector<2x32xf32>
    %426 = vector.extract_strided_slice %424 {offsets = [0, 0], sizes = [2, 32], strides = [1, 1]} : vector<2x96xf32> to vector<2x32xf32>
    %427 = arith.addf %425, %426 : vector<2x32xf32>
    %428 = arith.negf %427 : vector<2x32xf32>
    %429 = math.exp %428 : vector<2x32xf32>
    %cst_135 = arith.constant 1.000000e+00 : f32
    %430 = vector.broadcast %cst_135 : f32 to vector<2x32xf32>
    %431 = arith.addf %430, %429 : vector<2x32xf32>
    %432 = arith.divf %430, %431 : vector<2x32xf32>
    %433 = vector.extract_strided_slice %421 {offsets = [0, 32], sizes = [2, 32], strides = [1, 1]} : vector<2x96xf32> to vector<2x32xf32>
    %434 = vector.extract_strided_slice %424 {offsets = [0, 32], sizes = [2, 32], strides = [1, 1]} : vector<2x96xf32> to vector<2x32xf32>
    %435 = arith.addf %433, %434 : vector<2x32xf32>
    %436 = arith.negf %435 : vector<2x32xf32>
    %437 = math.exp %436 : vector<2x32xf32>
    %cst_136 = arith.constant 1.000000e+00 : f32
    %438 = vector.broadcast %cst_136 : f32 to vector<2x32xf32>
    %439 = arith.addf %438, %437 : vector<2x32xf32>
    %440 = arith.divf %438, %439 : vector<2x32xf32>
    %441 = vector.extract_strided_slice %421 {offsets = [0, 64], sizes = [2, 32], strides = [1, 1]} : vector<2x96xf32> to vector<2x32xf32>
    %442 = vector.extract_strided_slice %424 {offsets = [0, 64], sizes = [2, 32], strides = [1, 1]} : vector<2x96xf32> to vector<2x32xf32>
    %443 = arith.mulf %432, %442 : vector<2x32xf32>
    %444 = arith.addf %441, %443 : vector<2x32xf32>
    %445 = math.tanh %444 : vector<2x32xf32>
    %cst_137 = arith.constant 1.000000e+00 : f32
    %446 = vector.broadcast %cst_137 : f32 to vector<2x32xf32>
    %447 = arith.subf %446, %440 : vector<2x32xf32>
    %448 = arith.mulf %447, %445 : vector<2x32xf32>
    %449 = arith.mulf %440, %376 : vector<2x32xf32>
    %450 = arith.addf %448, %449 : vector<2x32xf32>
    %c5_138 = arith.constant 5 : index
    %c0_139 = arith.constant 0 : index
    %c0_140 = arith.constant 0 : index
    %451 = vector.load %arg11[%c5_138, %c0_139, %c0_140] : memref<8x2x16xf32, #tpu.memory_space<vmem>>, vector<1x2x16xf32>
    %452 = vector.shape_cast %451 : vector<1x2x16xf32> to vector<2x16xf32>
    %cst_141 = arith.constant dense<0.000000e+00> : vector<2x16xf32>
    %453 = tpu.matmul %420, %15, %cst_141 {dimension_numbers = #tpu.dot_dimension_numbers<[1], [0], [0], [1], [0, 0, 1, 1], [], []>} : vector<2x32xf32>, vector<32x16xf32>, vector<2x16xf32> -> vector<2x16xf32>
    %454 = arith.addf %452, %453 : vector<2x16xf32>
    %c5_142 = arith.constant 5 : index
    %c0_143 = arith.constant 0 : index
    %c0_144 = arith.constant 0 : index
    %455 = vector.load %arg11[%c5_142, %c0_143, %c0_144] : memref<8x2x16xf32, #tpu.memory_space<vmem>>, vector<1x2x16xf32>
    %456 = vector.shape_cast %455 : vector<1x2x16xf32> to vector<2x16xf32>
    %457 = vector.shape_cast %454 : vector<2x16xf32> to vector<1x2x16xf32>
    tpu.vector_store %arg11[%c5_142, %c0_143, %c0_144], %457 {strides = array<i32>} : memref<8x2x16xf32, #tpu.memory_space<vmem>>, vector<1x2x16xf32>,
    %c2_145 = arith.constant 2 : index
    %c0_146 = arith.constant 0 : index
    %c0_147 = arith.constant 0 : index
    %458 = vector.load %arg11[%c2_145, %c0_146, %c0_147] : memref<8x2x16xf32, #tpu.memory_space<vmem>>, vector<1x2x16xf32>
    %459 = vector.shape_cast %458 : vector<1x2x16xf32> to vector<2x16xf32>
    %cst_148 = arith.constant dense<0.000000e+00> : vector<2x16xf32>
    %460 = tpu.matmul %450, %16, %cst_148 {dimension_numbers = #tpu.dot_dimension_numbers<[1], [0], [0], [1], [0, 0, 1, 1], [], []>} : vector<2x32xf32>, vector<32x16xf32>, vector<2x16xf32> -> vector<2x16xf32>
    %461 = arith.addf %459, %460 : vector<2x16xf32>
    %c2_149 = arith.constant 2 : index
    %c0_150 = arith.constant 0 : index
    %c0_151 = arith.constant 0 : index
    %462 = vector.load %arg11[%c2_149, %c0_150, %c0_151] : memref<8x2x16xf32, #tpu.memory_space<vmem>>, vector<1x2x16xf32>
    %463 = vector.shape_cast %462 : vector<1x2x16xf32> to vector<2x16xf32>
    %464 = vector.shape_cast %461 : vector<2x16xf32> to vector<1x2x16xf32>
    tpu.vector_store %arg11[%c2_149, %c0_150, %c0_151], %464 {strides = array<i32>} : memref<8x2x16xf32, #tpu.memory_space<vmem>>, vector<1x2x16xf32>,
    %465 = vector.extract_strided_slice %5 {offsets = [12, 0], sizes = [2, 96], strides = [1, 1]} : vector<16x96xf32> to vector<2x96xf32>
    %cst_152 = arith.constant dense<0.000000e+00> : vector<2x96xf32>
    %466 = tpu.matmul %420, %11, %cst_152 {dimension_numbers = #tpu.dot_dimension_numbers<[1], [0], [0], [1], [0, 0, 1, 1], [], []>} : vector<2x32xf32>, vector<32x96xf32>, vector<2x96xf32> -> vector<2x96xf32>
    %467 = vector.broadcast %13 : vector<1x96xf32> to vector<2x96xf32>
    %468 = arith.addf %466, %467 : vector<2x96xf32>
    %469 = vector.extract_strided_slice %465 {offsets = [0, 0], sizes = [2, 32], strides = [1, 1]} : vector<2x96xf32> to vector<2x32xf32>
    %470 = vector.extract_strided_slice %468 {offsets = [0, 0], sizes = [2, 32], strides = [1, 1]} : vector<2x96xf32> to vector<2x32xf32>
    %471 = arith.addf %469, %470 : vector<2x32xf32>
    %472 = arith.negf %471 : vector<2x32xf32>
    %473 = math.exp %472 : vector<2x32xf32>
    %cst_153 = arith.constant 1.000000e+00 : f32
    %474 = vector.broadcast %cst_153 : f32 to vector<2x32xf32>
    %475 = arith.addf %474, %473 : vector<2x32xf32>
    %476 = arith.divf %474, %475 : vector<2x32xf32>
    %477 = vector.extract_strided_slice %465 {offsets = [0, 32], sizes = [2, 32], strides = [1, 1]} : vector<2x96xf32> to vector<2x32xf32>
    %478 = vector.extract_strided_slice %468 {offsets = [0, 32], sizes = [2, 32], strides = [1, 1]} : vector<2x96xf32> to vector<2x32xf32>
    %479 = arith.addf %477, %478 : vector<2x32xf32>
    %480 = arith.negf %479 : vector<2x32xf32>
    %481 = math.exp %480 : vector<2x32xf32>
    %cst_154 = arith.constant 1.000000e+00 : f32
    %482 = vector.broadcast %cst_154 : f32 to vector<2x32xf32>
    %483 = arith.addf %482, %481 : vector<2x32xf32>
    %484 = arith.divf %482, %483 : vector<2x32xf32>
    %485 = vector.extract_strided_slice %465 {offsets = [0, 64], sizes = [2, 32], strides = [1, 1]} : vector<2x96xf32> to vector<2x32xf32>
    %486 = vector.extract_strided_slice %468 {offsets = [0, 64], sizes = [2, 32], strides = [1, 1]} : vector<2x96xf32> to vector<2x32xf32>
    %487 = arith.mulf %476, %486 : vector<2x32xf32>
    %488 = arith.addf %485, %487 : vector<2x32xf32>
    %489 = math.tanh %488 : vector<2x32xf32>
    %cst_155 = arith.constant 1.000000e+00 : f32
    %490 = vector.broadcast %cst_155 : f32 to vector<2x32xf32>
    %491 = arith.subf %490, %484 : vector<2x32xf32>
    %492 = arith.mulf %491, %489 : vector<2x32xf32>
    %493 = arith.mulf %484, %420 : vector<2x32xf32>
    %494 = arith.addf %492, %493 : vector<2x32xf32>
    %495 = vector.extract_strided_slice %10 {offsets = [2, 0], sizes = [2, 96], strides = [1, 1]} : vector<16x96xf32> to vector<2x96xf32>
    %cst_156 = arith.constant dense<0.000000e+00> : vector<2x96xf32>
    %496 = tpu.matmul %450, %12, %cst_156 {dimension_numbers = #tpu.dot_dimension_numbers<[1], [0], [0], [1], [0, 0, 1, 1], [], []>} : vector<2x32xf32>, vector<32x96xf32>, vector<2x96xf32> -> vector<2x96xf32>
    %497 = vector.broadcast %14 : vector<1x96xf32> to vector<2x96xf32>
    %498 = arith.addf %496, %497 : vector<2x96xf32>
    %499 = vector.extract_strided_slice %495 {offsets = [0, 0], sizes = [2, 32], strides = [1, 1]} : vector<2x96xf32> to vector<2x32xf32>
    %500 = vector.extract_strided_slice %498 {offsets = [0, 0], sizes = [2, 32], strides = [1, 1]} : vector<2x96xf32> to vector<2x32xf32>
    %501 = arith.addf %499, %500 : vector<2x32xf32>
    %502 = arith.negf %501 : vector<2x32xf32>
    %503 = math.exp %502 : vector<2x32xf32>
    %cst_157 = arith.constant 1.000000e+00 : f32
    %504 = vector.broadcast %cst_157 : f32 to vector<2x32xf32>
    %505 = arith.addf %504, %503 : vector<2x32xf32>
    %506 = arith.divf %504, %505 : vector<2x32xf32>
    %507 = vector.extract_strided_slice %495 {offsets = [0, 32], sizes = [2, 32], strides = [1, 1]} : vector<2x96xf32> to vector<2x32xf32>
    %508 = vector.extract_strided_slice %498 {offsets = [0, 32], sizes = [2, 32], strides = [1, 1]} : vector<2x96xf32> to vector<2x32xf32>
    %509 = arith.addf %507, %508 : vector<2x32xf32>
    %510 = arith.negf %509 : vector<2x32xf32>
    %511 = math.exp %510 : vector<2x32xf32>
    %cst_158 = arith.constant 1.000000e+00 : f32
    %512 = vector.broadcast %cst_158 : f32 to vector<2x32xf32>
    %513 = arith.addf %512, %511 : vector<2x32xf32>
    %514 = arith.divf %512, %513 : vector<2x32xf32>
    %515 = vector.extract_strided_slice %495 {offsets = [0, 64], sizes = [2, 32], strides = [1, 1]} : vector<2x96xf32> to vector<2x32xf32>
    %516 = vector.extract_strided_slice %498 {offsets = [0, 64], sizes = [2, 32], strides = [1, 1]} : vector<2x96xf32> to vector<2x32xf32>
    %517 = arith.mulf %506, %516 : vector<2x32xf32>
    %518 = arith.addf %515, %517 : vector<2x32xf32>
    %519 = math.tanh %518 : vector<2x32xf32>
    %cst_159 = arith.constant 1.000000e+00 : f32
    %520 = vector.broadcast %cst_159 : f32 to vector<2x32xf32>
    %521 = arith.subf %520, %514 : vector<2x32xf32>
    %522 = arith.mulf %521, %519 : vector<2x32xf32>
    %523 = arith.mulf %514, %450 : vector<2x32xf32>
    %524 = arith.addf %522, %523 : vector<2x32xf32>
    %c6_160 = arith.constant 6 : index
    %c0_161 = arith.constant 0 : index
    %c0_162 = arith.constant 0 : index
    %525 = vector.load %arg11[%c6_160, %c0_161, %c0_162] : memref<8x2x16xf32, #tpu.memory_space<vmem>>, vector<1x2x16xf32>
    %526 = vector.shape_cast %525 : vector<1x2x16xf32> to vector<2x16xf32>
    %cst_163 = arith.constant dense<0.000000e+00> : vector<2x16xf32>
    %527 = tpu.matmul %494, %15, %cst_163 {dimension_numbers = #tpu.dot_dimension_numbers<[1], [0], [0], [1], [0, 0, 1, 1], [], []>} : vector<2x32xf32>, vector<32x16xf32>, vector<2x16xf32> -> vector<2x16xf32>
    %528 = arith.addf %526, %527 : vector<2x16xf32>
    %c6_164 = arith.constant 6 : index
    %c0_165 = arith.constant 0 : index
    %c0_166 = arith.constant 0 : index
    %529 = vector.load %arg11[%c6_164, %c0_165, %c0_166] : memref<8x2x16xf32, #tpu.memory_space<vmem>>, vector<1x2x16xf32>
    %530 = vector.shape_cast %529 : vector<1x2x16xf32> to vector<2x16xf32>
    %531 = vector.shape_cast %528 : vector<2x16xf32> to vector<1x2x16xf32>
    tpu.vector_store %arg11[%c6_164, %c0_165, %c0_166], %531 {strides = array<i32>} : memref<8x2x16xf32, #tpu.memory_space<vmem>>, vector<1x2x16xf32>,
    %c1_167 = arith.constant 1 : index
    %c0_168 = arith.constant 0 : index
    %c0_169 = arith.constant 0 : index
    %532 = vector.load %arg11[%c1_167, %c0_168, %c0_169] : memref<8x2x16xf32, #tpu.memory_space<vmem>>, vector<1x2x16xf32>
    %533 = vector.shape_cast %532 : vector<1x2x16xf32> to vector<2x16xf32>
    %cst_170 = arith.constant dense<0.000000e+00> : vector<2x16xf32>
    %534 = tpu.matmul %524, %16, %cst_170 {dimension_numbers = #tpu.dot_dimension_numbers<[1], [0], [0], [1], [0, 0, 1, 1], [], []>} : vector<2x32xf32>, vector<32x16xf32>, vector<2x16xf32> -> vector<2x16xf32>
    %535 = arith.addf %533, %534 : vector<2x16xf32>
    %c1_171 = arith.constant 1 : index
    %c0_172 = arith.constant 0 : index
    %c0_173 = arith.constant 0 : index
    %536 = vector.load %arg11[%c1_171, %c0_172, %c0_173] : memref<8x2x16xf32, #tpu.memory_space<vmem>>, vector<1x2x16xf32>
    %537 = vector.shape_cast %536 : vector<1x2x16xf32> to vector<2x16xf32>
    %538 = vector.shape_cast %535 : vector<2x16xf32> to vector<1x2x16xf32>
    tpu.vector_store %arg11[%c1_171, %c0_172, %c0_173], %538 {strides = array<i32>} : memref<8x2x16xf32, #tpu.memory_space<vmem>>, vector<1x2x16xf32>,
    %539 = vector.extract_strided_slice %5 {offsets = [14, 0], sizes = [2, 96], strides = [1, 1]} : vector<16x96xf32> to vector<2x96xf32>
    %cst_174 = arith.constant dense<0.000000e+00> : vector<2x96xf32>
    %540 = tpu.matmul %494, %11, %cst_174 {dimension_numbers = #tpu.dot_dimension_numbers<[1], [0], [0], [1], [0, 0, 1, 1], [], []>} : vector<2x32xf32>, vector<32x96xf32>, vector<2x96xf32> -> vector<2x96xf32>
    %541 = vector.broadcast %13 : vector<1x96xf32> to vector<2x96xf32>
    %542 = arith.addf %540, %541 : vector<2x96xf32>
    %543 = vector.extract_strided_slice %539 {offsets = [0, 0], sizes = [2, 32], strides = [1, 1]} : vector<2x96xf32> to vector<2x32xf32>
    %544 = vector.extract_strided_slice %542 {offsets = [0, 0], sizes = [2, 32], strides = [1, 1]} : vector<2x96xf32> to vector<2x32xf32>
    %545 = arith.addf %543, %544 : vector<2x32xf32>
    %546 = arith.negf %545 : vector<2x32xf32>
    %547 = math.exp %546 : vector<2x32xf32>
    %cst_175 = arith.constant 1.000000e+00 : f32
    %548 = vector.broadcast %cst_175 : f32 to vector<2x32xf32>
    %549 = arith.addf %548, %547 : vector<2x32xf32>
    %550 = arith.divf %548, %549 : vector<2x32xf32>
    %551 = vector.extract_strided_slice %539 {offsets = [0, 32], sizes = [2, 32], strides = [1, 1]} : vector<2x96xf32> to vector<2x32xf32>
    %552 = vector.extract_strided_slice %542 {offsets = [0, 32], sizes = [2, 32], strides = [1, 1]} : vector<2x96xf32> to vector<2x32xf32>
    %553 = arith.addf %551, %552 : vector<2x32xf32>
    %554 = arith.negf %553 : vector<2x32xf32>
    %555 = math.exp %554 : vector<2x32xf32>
    %cst_176 = arith.constant 1.000000e+00 : f32
    %556 = vector.broadcast %cst_176 : f32 to vector<2x32xf32>
    %557 = arith.addf %556, %555 : vector<2x32xf32>
    %558 = arith.divf %556, %557 : vector<2x32xf32>
    %559 = vector.extract_strided_slice %539 {offsets = [0, 64], sizes = [2, 32], strides = [1, 1]} : vector<2x96xf32> to vector<2x32xf32>
    %560 = vector.extract_strided_slice %542 {offsets = [0, 64], sizes = [2, 32], strides = [1, 1]} : vector<2x96xf32> to vector<2x32xf32>
    %561 = arith.mulf %550, %560 : vector<2x32xf32>
    %562 = arith.addf %559, %561 : vector<2x32xf32>
    %563 = math.tanh %562 : vector<2x32xf32>
    %cst_177 = arith.constant 1.000000e+00 : f32
    %564 = vector.broadcast %cst_177 : f32 to vector<2x32xf32>
    %565 = arith.subf %564, %558 : vector<2x32xf32>
    %566 = arith.mulf %565, %563 : vector<2x32xf32>
    %567 = arith.mulf %558, %494 : vector<2x32xf32>
    %568 = arith.addf %566, %567 : vector<2x32xf32>
    %569 = vector.extract_strided_slice %10 {offsets = [0, 0], sizes = [2, 96], strides = [1, 1]} : vector<16x96xf32> to vector<2x96xf32>
    %cst_178 = arith.constant dense<0.000000e+00> : vector<2x96xf32>
    %570 = tpu.matmul %524, %12, %cst_178 {dimension_numbers = #tpu.dot_dimension_numbers<[1], [0], [0], [1], [0, 0, 1, 1], [], []>} : vector<2x32xf32>, vector<32x96xf32>, vector<2x96xf32> -> vector<2x96xf32>
    %571 = vector.broadcast %14 : vector<1x96xf32> to vector<2x96xf32>
    %572 = arith.addf %570, %571 : vector<2x96xf32>
    %573 = vector.extract_strided_slice %569 {offsets = [0, 0], sizes = [2, 32], strides = [1, 1]} : vector<2x96xf32> to vector<2x32xf32>
    %574 = vector.extract_strided_slice %572 {offsets = [0, 0], sizes = [2, 32], strides = [1, 1]} : vector<2x96xf32> to vector<2x32xf32>
    %575 = arith.addf %573, %574 : vector<2x32xf32>
    %576 = arith.negf %575 : vector<2x32xf32>
    %577 = math.exp %576 : vector<2x32xf32>
    %cst_179 = arith.constant 1.000000e+00 : f32
    %578 = vector.broadcast %cst_179 : f32 to vector<2x32xf32>
    %579 = arith.addf %578, %577 : vector<2x32xf32>
    %580 = arith.divf %578, %579 : vector<2x32xf32>
    %581 = vector.extract_strided_slice %569 {offsets = [0, 32], sizes = [2, 32], strides = [1, 1]} : vector<2x96xf32> to vector<2x32xf32>
    %582 = vector.extract_strided_slice %572 {offsets = [0, 32], sizes = [2, 32], strides = [1, 1]} : vector<2x96xf32> to vector<2x32xf32>
    %583 = arith.addf %581, %582 : vector<2x32xf32>
    %584 = arith.negf %583 : vector<2x32xf32>
    %585 = math.exp %584 : vector<2x32xf32>
    %cst_180 = arith.constant 1.000000e+00 : f32
    %586 = vector.broadcast %cst_180 : f32 to vector<2x32xf32>
    %587 = arith.addf %586, %585 : vector<2x32xf32>
    %588 = arith.divf %586, %587 : vector<2x32xf32>
    %589 = vector.extract_strided_slice %569 {offsets = [0, 64], sizes = [2, 32], strides = [1, 1]} : vector<2x96xf32> to vector<2x32xf32>
    %590 = vector.extract_strided_slice %572 {offsets = [0, 64], sizes = [2, 32], strides = [1, 1]} : vector<2x96xf32> to vector<2x32xf32>
    %591 = arith.mulf %580, %590 : vector<2x32xf32>
    %592 = arith.addf %589, %591 : vector<2x32xf32>
    %593 = math.tanh %592 : vector<2x32xf32>
    %cst_181 = arith.constant 1.000000e+00 : f32
    %594 = vector.broadcast %cst_181 : f32 to vector<2x32xf32>
    %595 = arith.subf %594, %588 : vector<2x32xf32>
    %596 = arith.mulf %595, %593 : vector<2x32xf32>
    %597 = arith.mulf %588, %524 : vector<2x32xf32>
    %598 = arith.addf %596, %597 : vector<2x32xf32>
    %c7_182 = arith.constant 7 : index
    %c0_183 = arith.constant 0 : index
    %c0_184 = arith.constant 0 : index
    %599 = vector.load %arg11[%c7_182, %c0_183, %c0_184] : memref<8x2x16xf32, #tpu.memory_space<vmem>>, vector<1x2x16xf32>
    %600 = vector.shape_cast %599 : vector<1x2x16xf32> to vector<2x16xf32>
    %cst_185 = arith.constant dense<0.000000e+00> : vector<2x16xf32>
    %601 = tpu.matmul %568, %15, %cst_185 {dimension_numbers = #tpu.dot_dimension_numbers<[1], [0], [0], [1], [0, 0, 1, 1], [], []>} : vector<2x32xf32>, vector<32x16xf32>, vector<2x16xf32> -> vector<2x16xf32>
    %602 = arith.addf %600, %601 : vector<2x16xf32>
    %c7_186 = arith.constant 7 : index
    %c0_187 = arith.constant 0 : index
    %c0_188 = arith.constant 0 : index
    %603 = vector.load %arg11[%c7_186, %c0_187, %c0_188] : memref<8x2x16xf32, #tpu.memory_space<vmem>>, vector<1x2x16xf32>
    %604 = vector.shape_cast %603 : vector<1x2x16xf32> to vector<2x16xf32>
    %605 = vector.shape_cast %602 : vector<2x16xf32> to vector<1x2x16xf32>
    tpu.vector_store %arg11[%c7_186, %c0_187, %c0_188], %605 {strides = array<i32>} : memref<8x2x16xf32, #tpu.memory_space<vmem>>, vector<1x2x16xf32>,
    %c0_189 = arith.constant 0 : index
    %c0_190 = arith.constant 0 : index
    %c0_191 = arith.constant 0 : index
    %606 = vector.load %arg11[%c0_189, %c0_190, %c0_191] : memref<8x2x16xf32, #tpu.memory_space<vmem>>, vector<1x2x16xf32>
    %607 = vector.shape_cast %606 : vector<1x2x16xf32> to vector<2x16xf32>
    %cst_192 = arith.constant dense<0.000000e+00> : vector<2x16xf32>
    %608 = tpu.matmul %598, %16, %cst_192 {dimension_numbers = #tpu.dot_dimension_numbers<[1], [0], [0], [1], [0, 0, 1, 1], [], []>} : vector<2x32xf32>, vector<32x16xf32>, vector<2x16xf32> -> vector<2x16xf32>
    %609 = arith.addf %607, %608 : vector<2x16xf32>
    %c0_193 = arith.constant 0 : index
    %c0_194 = arith.constant 0 : index
    %c0_195 = arith.constant 0 : index
    %610 = vector.load %arg11[%c0_193, %c0_194, %c0_195] : memref<8x2x16xf32, #tpu.memory_space<vmem>>, vector<1x2x16xf32>
    %611 = vector.shape_cast %610 : vector<1x2x16xf32> to vector<2x16xf32>
    %612 = vector.shape_cast %609 : vector<2x16xf32> to vector<1x2x16xf32>
    tpu.vector_store %arg11[%c0_193, %c0_194, %c0_195], %612 {strides = array<i32>} : memref<8x2x16xf32, #tpu.memory_space<vmem>>, vector<1x2x16xf32>,
    %c0_196 = arith.constant 0 : index
    %c0_197 = arith.constant 0 : index
    %c0_198 = arith.constant 0 : index
    %613 = vector.load %arg11[%c0_196, %c0_197, %c0_198] : memref<8x2x16xf32, #tpu.memory_space<vmem>>, vector<8x2x16xf32>
    %c0_199 = arith.constant 0 : index
    %c0_200 = arith.constant 0 : index
    %c0_201 = arith.constant 0 : index
    %614 = vector.load %arg10[%c0_199, %c0_200, %c0_201] : memref<1x1x16xf32, #tpu.memory_space<vmem>>, vector<1x1x16xf32>
    %615 = vector.broadcast %614 : vector<1x1x16xf32> to vector<8x2x16xf32>
    %616 = arith.addf %613, %615 : vector<8x2x16xf32>
    %cst_202 = arith.constant dense<0xFF800000> : vector<8x2xf32>
    %617 = vector.multi_reduction <maximumf>, %616, %cst_202 [2] : vector<8x2x16xf32> to vector<8x2xf32>
    %618 = vector.shape_cast %617 : vector<8x2xf32> to vector<8x2x1xf32>
    %619 = vector.broadcast %618 : vector<8x2x1xf32> to vector<8x2x16xf32>
    %620 = arith.subf %616, %619 : vector<8x2x16xf32>
    %621 = math.exp %620 : vector<8x2x16xf32>
    %cst_203 = arith.constant dense<0.000000e+00> : vector<8x2xf32>
    %622 = vector.multi_reduction <add>, %621, %cst_203 [2] : vector<8x2x16xf32> to vector<8x2xf32>
    %623 = vector.shape_cast %622 : vector<8x2xf32> to vector<8x2x1xf32>
    %624 = math.log %623 : vector<8x2x1xf32>
    %625 = vector.broadcast %624 : vector<8x2x1xf32> to vector<8x2x16xf32>
    %626 = arith.subf %620, %625 : vector<8x2x16xf32>
    %c0_204 = arith.constant 0 : index
    %c0_205 = arith.constant 0 : index
    %c0_206 = arith.constant 0 : index
    %627 = vector.load %arg11[%c0_204, %c0_205, %c0_206] : memref<8x2x16xf32, #tpu.memory_space<vmem>>, vector<8x2x16xf32>
    tpu.vector_store %arg11[%c0_204, %c0_205, %c0_206], %626 {strides = array<i32>} : memref<8x2x16xf32, #tpu.memory_space<vmem>>, vector<8x2x16xf32>,
    return
  }
}

</mosaic_0001>

<bundles_post_ra>
// kernel: crnn_forward.3
= control target key start
LH: loop header
LB: loop body
LE: loop exit
PB: predicated region body
PF: predicated region fallthrough
CT: control target
= control target key end

     0   :  { %vm40_vm0 = vcmask 1043456   ;;  %vm41_vm1 = vcmask 1044480   ;;  %v588_v1 = vmov 0   ;;  %v589_v2 = vmov 65535   ;;  %s707_s0 = inlined_call_operand.vmem [shape: bf16[4,9,504], index: 0, kind: input, shape index: {}]   ;;  %s708_s1 = inlined_call_operand.vmem [shape: bf16[4,9], index: 1, kind: input, shape index: {}]   ;;  %s709_s2 = inlined_call_operand.vmem [shape: f32[4,1], index: 2, kind: input, shape index: {}]   ;;  %s710_s3 = inlined_call_operand.vmem [shape: f32[4,504], index: 3, kind: output, shape index: {}]  }
   0x1   :  { %v564_v0 = vld [vmem:[%s707_s0 + $0x4] ss:$16 sps:$4 sm:$0x1f]   ;;  %88 = vmatprep.mubr.bf16.mxu0 %v588_v1  ;;  %129 = vmatprep.mubr.bf16.mxu1 %v588_v1  ;;  %v42_v3 = vsel %vm40_vm0, 4294967295, %v589_v2  ;;  %v15_v16 = vld [vmem:[%s708_s1] sm:$0x3] }
   0x2   :  { %563 = vset.pattern.permute.xlu0 %v588_v1  ;;  %v617_v4 = vsel %vm41_vm1, %v42_v3, 0  ;;  %v566_v5 = vld [vmem:[%s707_s0 + $0xc] ss:$16 sps:$4 sm:$0x1f]   ;;  %vm36_vm2 = vcmask 72704   ;;  %vm518_vm3 = vcmask 982020  }
   0x3   :  { %v48_v6 = vand.u32 %v564_v0, %v617_v4  ;;  %v568_v7 = vld [vmem:[%s707_s0] ss:$16 sps:$4 sm:$0x1f]   ;;  %v569_v8 = vld [vmem:[%s707_s0 + $0x8] ss:$16 sps:$4 sm:$0x1f]   ;;  %v54_v9 = vand.u32 %v566_v5, %v617_v4  ;;  %vm519_vm4 = vmor %vm518_vm3, %vm40_vm0 }
   0x4   :  { %v570_v10 = vld [vmem:[%s707_s0 + $0x20] ss:$16 sps:$4 sm:$0x1f]   ;;  %v45_v11 = vand.u32 %v568_v7, %v617_v4  ;;  %v51_v12 = vand.u32 %v569_v8, %v617_v4  ;;  %v572_v13 = vld [vmem:[%s707_s0 + $0x24] ss:$16 sps:$4 sm:$0x1f]  }
   0x5   :  { %70 = vmatprep.subr.bf16.mxu0 %v48_v6  ;;  %111 = vmatprep.subr.bf16.mxu1 %v54_v9  ;;  %v573_v14 = vld [vmem:[%s707_s0 + $0x28] ss:$16 sps:$4 sm:$0x1f]   ;;  %v575_v15 = vld [vmem:[%s707_s0 + $0x2c] ss:$16 sps:$4 sm:$0x1f]   ;;  %v163_v17 = vand.u32 %v572_v13, %v617_v4  ;;  %v160_v18 = vand.u32 %v570_v10, %v617_v4 }
   0x6   :  { %71 = vmatpush1.bf16.msra.mxu0 %v45_v11  ;;  %112 = vmatpush1.bf16.msra.mxu1 %v51_v12  ;;  %v169_v19 = vand.u32 %v575_v15, %v617_v4  ;;  %v166_v20 = vand.u32 %v573_v14, %v617_v4  ;;  %v578_v21 = vld [vmem:[%s707_s0 + $0x44] ss:$16 sps:$4 sm:$0x1f]   ;;  %v581_v22 = vld [vmem:[%s707_s0 + $0x4c] ss:$16 sps:$4 sm:$0x1f]  }
   0x7   :  { %185 = vmatprep.subr.bf16.mxu0 %v163_v17  ;;  %v576_v23 = vld [vmem:[%s707_s0 + $0x40] ss:$16 sps:$4 sm:$0x1f]   ;;  %v278_v24 = vand.u32 %v578_v21, %v617_v4  ;;  %v579_v25 = vld [vmem:[%s707_s0 + $0x48] ss:$16 sps:$4 sm:$0x1f]   ;;  %v284_v26 = vand.u32 %v581_v22, %v617_v4 }
   0x8   :  { %226 = vmatprep.subr.bf16.mxu1 %v169_v19  ;;  %v584_v27 = vld [vmem:[%s707_s0 + $0x64] ss:$16 sps:$4 sm:$0x1f]   ;;  %v587_v28 = vld [vmem:[%s707_s0 + $0x6c] ss:$16 sps:$4 sm:$0x1f]   ;;  %v275_v30 = vand.u32 %v576_v23, %v617_v4  ;;  %v281_v31 = vand.u32 %v579_v25, %v617_v4 }
   0x9   :  { %529 = vmatmul.mubr.msk.bf16.vlgmr.msra.gmra.mxu0 %vm36_vm2, %v15_v16  ;;  %530 = vmatmul.mubr.msk.bf16.vlgmr.msra.gmra.mxu1 %vm36_vm2, %v15_v16  ;;  %v495_v29 = vld [vmem:[%s709_s2] sm:$0xf]  ;;  %v393_v32 = vand.u32 %v584_v27, %v617_v4  ;;  %v399_v33 = vand.u32 %v587_v28, %v617_v4  ;;  %v585_v35 = vld [vmem:[%s707_s0 + $0x68] ss:$16 sps:$4 sm:$0x1f]  }
   0xa   :  { %186 = vmatpush1.bf16.msra.mxu0 %v160_v18  ;;  %227 = vmatpush1.bf16.msra.mxu1 %v166_v20  ;;  %v582_v34 = vld [vmem:[%s707_s0 + $0x60] ss:$16 sps:$4 sm:$0x1f]   ;;  %v396_v37 = vand.u32 %v585_v35, %v617_v4 }
   0xb   :  { %203 = vmatprep.mubr.bf16.mxu0 %v588_v1  ;;  %244 = vmatprep.mubr.bf16.mxu1 %v588_v1  ;;  %v390_v36 = vand.u32 %v582_v34, %v617_v4 }
   0xc   :  { %300 = vmatprep.subr.bf16.mxu0 %v278_v24  ;;  %341 = vmatprep.subr.bf16.mxu1 %v284_v26 }
   0xd   :  { %498 = vperm.xlu0 %563, %v495_v29  }
  0x11   :  { %539 = vmatmul.mubr.msk.bf16.vlgmr.msra.gmra.mxu0 %vm36_vm2, %v15_v16  ;;  %540 = vmatmul.mubr.msk.bf16.vlgmr.msra.gmra.mxu1 %vm36_vm2, %v15_v16 }
  0x12   :  { %301 = vmatpush1.bf16.msra.mxu0 %v275_v30  ;;  %342 = vmatpush1.bf16.msra.mxu1 %v281_v31 }
  0x13   :  { %318 = vmatprep.mubr.bf16.mxu0 %v588_v1  ;;  %359 = vmatprep.mubr.bf16.mxu1 %v588_v1 }
  0x14   :  { %415 = vmatprep.subr.bf16.mxu0 %v393_v32  ;;  %456 = vmatprep.subr.bf16.mxu1 %v399_v33 }
  0x19   :  { %549 = vmatmul.mubr.msk.bf16.vlgmr.msra.gmra.mxu0 %vm36_vm2, %v15_v16  ;;  %550 = vmatmul.mubr.msk.bf16.vlgmr.msra.gmra.mxu1 %vm36_vm2, %v15_v16 }
  0x1a   :  { %416 = vmatpush1.bf16.msra.mxu0 %v390_v36  ;;  %457 = vmatpush1.bf16.msra.mxu1 %v396_v37 }
  0x1b   :  { %433 = vmatprep.mubr.bf16.mxu0 %v588_v1  ;;  %474 = vmatprep.mubr.bf16.mxu1 %v588_v1 }
  0x21   :  { %559 = vmatmul.mubr.msk.bf16.vlgmr.msra.gmra.mxu0 %vm36_vm2, %v15_v16  ;;  %560 = vmatmul.mubr.msk.bf16.vlgmr.msra.gmra.mxu1 %vm36_vm2, %v15_v16 }
  0x88   :  { %v499_v4 = vpop.permute.xlu0 %498 }
  0xc9   :  { %v90_v38 = vpop.f32.mrf.mxu0  ;;  %v131_v39 = vpop.f32.mrf.mxu1 }
  0xcb   :  { %v92_v40 = vpop.f32.mrf.mxu0  ;;  %v133_v41 = vpop.f32.mrf.mxu1 }
  0xcd   :  { %v94_v42 = vpop.f32.mrf.mxu0  ;;  %v135_v43 = vpop.f32.mrf.mxu1 }
  0xcf   :  { %v95_v44 = vpop.f32.mrf.mxu0  ;;  %v136_v45 = vpop.f32.mrf.mxu1 }
  0xd1   :  { %v205_v46 = vpop.f32.mrf.mxu0  ;;  %v246_v47 = vpop.f32.mrf.mxu1 }
  0xd2   :  { %v483_v0 = vmax.f32 %v90_v38, %v205_v46  ;;  %v485_v1 = vmax.f32 %v131_v39, %v246_v47 }
  0xd3   :  { %v207_v48 = vpop.f32.mrf.mxu0  ;;  %v248_v49 = vpop.f32.mrf.mxu1 }
  0xd4   :  { %v484_v5 = vmax.f32 %v92_v40, %v207_v48  ;;  %v486_v6 = vmax.f32 %v133_v41, %v248_v49 }
  0xd5   :  { %v209_v50 = vpop.f32.mrf.mxu0  ;;  %v250_v51 = vpop.f32.mrf.mxu1 }
  0xd7   :  { %v210_v52 = vpop.f32.mrf.mxu0  ;;  %v251_v53 = vpop.f32.mrf.mxu1 }
  0xd9   :  { %v320_v54 = vpop.f32.mrf.mxu0  ;;  %v361_v55 = vpop.f32.mrf.mxu1 }
  0xdb   :  { %v322_v56 = vpop.f32.mrf.mxu0  ;;  %v363_v57 = vpop.f32.mrf.mxu1 }
  0xdd   :  { %v324_v58 = vpop.f32.mrf.mxu0  ;;  %v365_v59 = vpop.f32.mrf.mxu1 }
  0xdf   :  { %v325_v60 = vpop.f32.mrf.mxu0  ;;  %v366_v61 = vpop.f32.mrf.mxu1 }
  0xe1   :  { %v435_v62 = vpop.f32.mrf.mxu0  ;;  %v476_v63 = vpop.f32.mrf.mxu1 }
  0xe2   :  { %v487_v2 = vmax.f32 %v320_v54, %v435_v62  ;;  %v489_v3 = vmax.f32 %v361_v55, %v476_v63 }
  0xe3   :  { %v437_v7 = vpop.f32.mrf.mxu0  ;;  %v478_v8 = vpop.f32.mrf.mxu1 }
  0xe4   :  { %v491_v9 = vmax.f32 %v483_v0, %v487_v2  ;;  %v493_v10 = vmax.f32 %v485_v1, %v489_v3  ;;  %v488_v11 = vmax.f32 %v322_v56, %v437_v7  ;;  %v490_v12 = vmax.f32 %v363_v57, %v478_v8 }
  0xe5   :  { %v439_v13 = vpop.f32.mrf.mxu0  ;;  %v480_v14 = vpop.f32.mrf.mxu1 }
  0xe6   :  { %v492_v15 = vmax.f32 %v484_v5, %v488_v11  ;;  %v494_v16 = vmax.f32 %v486_v6, %v490_v12  ;;  %v501_v17 = vadd.f32 %v499_v4, %v491_v9  ;;  %v503_v18 = vadd.f32 %v499_v4, %v493_v10 }
  0xe7   :  { %v440_v19 = vpop.f32.mrf.mxu0  ;;  %v481_v20 = vpop.f32.mrf.mxu1 }
  0xe8   :  { %v502_v21 = vadd.f32 %v499_v4, %v492_v15  ;;  %v504_v22 = vadd.f32 %v499_v4, %v494_v16  ;;  %v505_v23 = vmax.f32 %v501_v17, 0.0  ;;  %v507_v25 = vmax.f32 %v503_v18, 0.0 }
  0xea   :  { %v506_v24 = vmax.f32 %v502_v21, 0.0  ;;  %v508_v26 = vmax.f32 %v504_v22, 0.0 }
  0xec   :  { %v513_v27 = vcombine.low %v505_v23, %v506_v24  ;;  %v514_v28 = vcombine.low %v507_v25, %v508_v26 }
  0xee   :  { %517 = vst [vmem:[%s710_s3] sm:$0xff] %v513_v27  ;;  %520 = vst.msk [vmem:[%s710_s3 + $0x8] sm:$0xff] %vm519_vm4, %v514_v28 }

// kernel: crnn_forward.4
= control target key start
LH: loop header
LB: loop body
LE: loop exit
PB: predicated region body
PF: predicated region fallthrough
CT: control target
= control target key end

     0   :  { %vm40_vm0 = vcmask 1041408   ;;  %v396_v0 = vmov 0.0   ;;  %vm397_vm1 = vmmov 0   ;;  %vm36_vm2 = vcmask 293888   ;;  %s476_s0 = inlined_call_operand.vmem [shape: bf16[4,36,96], index: 0, kind: input, shape index: {}]   ;;  %s477_s1 = inlined_call_operand.vmem [shape: bf16[8,36], index: 1, kind: input, shape index: {}]   ;;  %s478_s2 = inlined_call_operand.vmem [shape: f32[8,1], index: 2, kind: input, shape index: {}]   ;;  %s479_s3 = inlined_call_operand.vmem [shape: f32[8,96], index: 3, kind: output, shape index: {}]  }
   0x1   :  { %340 = vmatprep.subr.bf16.mxu0 %v396_v0  ;;  %350 = vmatprep.subr.bf16.mxu1 %v396_v0  ;;  %v384_v1 = vld [vmem:[%s476_s0 + $0x10] ss:$0 sps:$4 sm:$0x33]   ;;  %v385_v2 = vld [vmem:[%s476_s0 + $0x24] ss:$0 sps:$4 sm:$0x33]  }
   0x2   :  { %346 = vmatprep.mubr.msk.bf16.mxu0 %vm397_vm1, %v396_v0  ;;  %356 = vmatprep.mubr.msk.bf16.mxu1 %vm397_vm1, %v396_v0  ;;  %v42_v3 = vsel %vm40_vm0, %v384_v1, 0  ;;  %v386_v4 = vld [vmem:[%s476_s0 + $0x8] sm:$0xff]   ;;  %v106_v5 = vsel %vm40_vm0, %v385_v2, 0  ;;  %v387_v6 = vld [vmem:[%s476_s0 + $0x1c] sm:$0xff]   ;;  %v389_v10 = vld [vmem:[%s476_s0 + $0x14] sm:$0xff]   ;;  %v398_v15 = vmov 0  }
   0x3   :  { %341 = vmatpush3.bf16.msra.mxu0 %v42_v3  ;;  %351 = vmatpush3.bf16.msra.mxu1 %v106_v5  ;;  %v390_v7 = vld [vmem:[%s476_s0 + $0x38] ss:$0 sps:$4 sm:$0x33]   ;;  %v388_v8 = vld [vmem:[%s476_s0] sm:$0xff]   ;;  %v392_v16 = vld [vmem:[%s476_s0 + $0x30] sm:$0xff]   ;;  %vm287_vm3 = vcmask 785408  }
   0x4   :  { %342 = vmatprep.subr.bf16.mxu0 %v396_v0  ;;  %352 = vmatprep.subr.bf16.mxu1 %v396_v0  ;;  %v391_v9 = vld [vmem:[%s476_s0 + $0x4c] ss:$0 sps:$4 sm:$0x33]   ;;  %v15_v11 = vld [vmem:[%s477_s1] sm:$0xf]  ;;  %v170_v13 = vsel %vm40_vm0, %v390_v7, 0 }
   0x5   :  { %v279_v12 = vld [vmem:[%s478_s2] sm:$0xff]  ;;  %v234_v14 = vsel %vm40_vm0, %v391_v9, 0  ;;  %383 = vset.pattern.permute.xlu0 %v398_v15  ;;  %v394_v18 = vld [vmem:[%s476_s0 + $0x28] sm:$0xff]  }
   0x6   :  { %282 = vperm.xlu0 %383, %v279_v12   ;;  %v393_v17 = vld [vmem:[%s476_s0 + $0x44] sm:$0xff]   ;;  %v395_v19 = vld [vmem:[%s476_s0 + $0x3c] sm:$0xff]  }
   0x7   :  { %343 = vmatpush3.bf16.msra.mxu0 %v386_v4  ;;  %353 = vmatpush3.bf16.msra.mxu1 %v387_v6 }
   0x8   :  { %344 = vmatprep.subr.bf16.mxu0 %v396_v0  ;;  %354 = vmatprep.subr.bf16.mxu1 %v396_v0 }
   0xb   :  { %345 = vmatpush3.bf16.msra.mxu0 %v388_v8  ;;  %355 = vmatpush3.bf16.msra.mxu1 %v389_v10 }
   0xc   :  { %360 = vmatprep.subr.bf16.mxu0 %v396_v0  ;;  %370 = vmatprep.subr.bf16.mxu1 %v396_v0 }
   0xe   :  { %347 = vmatmul.mubr.msk.bf16.vlgmr.msra.gmra.mxu0 %vm36_vm2, %v15_v11  ;;  %357 = vmatmul.mubr.msk.bf16.vlgmr.msra.gmra.mxu1 %vm36_vm2, %v15_v11 }
   0xf   :  { %361 = vmatpush3.bf16.msra.mxu0 %v170_v13  ;;  %371 = vmatpush3.bf16.msra.mxu1 %v234_v14 }
  0x10   :  { %362 = vmatprep.subr.bf16.mxu0 %v396_v0  ;;  %372 = vmatprep.subr.bf16.mxu1 %v396_v0 }
  0x11   :  { %366 = vmatprep.mubr.msk.bf16.mxu0 %vm397_vm1, %v396_v0  ;;  %376 = vmatprep.mubr.msk.bf16.mxu1 %vm397_vm1, %v396_v0 }
  0x13   :  { %363 = vmatpush3.bf16.msra.mxu0 %v392_v16  ;;  %373 = vmatpush3.bf16.msra.mxu1 %v393_v17 }
  0x14   :  { %364 = vmatprep.subr.bf16.mxu0 %v396_v0  ;;  %374 = vmatprep.subr.bf16.mxu1 %v396_v0 }
  0x17   :  { %365 = vmatpush3.bf16.msra.mxu0 %v394_v18  ;;  %375 = vmatpush3.bf16.msra.mxu1 %v395_v19 }
  0x1a   :  { %367 = vmatmul.mubr.msk.bf16.vlgmr.msra.gmra.mxu0 %vm36_vm2, %v15_v11  ;;  %377 = vmatmul.mubr.msk.bf16.vlgmr.msra.gmra.mxu1 %vm36_vm2, %v15_v11 }
  0x81   :  { %v283_v34 = vpop.permute.xlu0 %282 }
  0xce   :  { %v78_v20 = vpop.f32.mrf.mxu0  ;;  %v142_v21 = vpop.f32.mrf.mxu1 }
  0xcf   :  { %v276_v30 = vmax.f32 %v78_v20, %v142_v21 }
  0xd0   :  { %v348_v22 = vpop.f32.mrf.mxu0  ;;  %v358_v23 = vpop.f32.mrf.mxu1 }
  0xd2   :  { %v81_v24 = vpop.f32.mrf.mxu0  ;;  %v145_v25 = vpop.f32.mrf.mxu1 }
  0xd4   :  { %v349_v26 = vpop.f32.mrf.mxu0  ;;  %v359_v27 = vpop.f32.mrf.mxu1 }
  0xda   :  { %v206_v28 = vpop.f32.mrf.mxu0  ;;  %v270_v29 = vpop.f32.mrf.mxu1 }
  0xdb   :  { %v277_v31 = vmax.f32 %v206_v28, %v270_v29 }
  0xdc   :  { %v368_v32 = vpop.f32.mrf.mxu0  ;;  %v378_v33 = vpop.f32.mrf.mxu1 }
  0xdd   :  { %v278_v35 = vmax.f32 %v276_v30, %v277_v31 }
  0xde   :  { %v209_v36 = vpop.f32.mrf.mxu0  ;;  %v273_v37 = vpop.f32.mrf.mxu1 }
  0xdf   :  { %v285_v38 = vadd.f32 %v283_v34, %v278_v35 }
  0xe0   :  { %v369_v39 = vpop.f32.mrf.mxu0  ;;  %v379_v40 = vpop.f32.mrf.mxu1 }
  0xe1   :  { %v286_v41 = vmax.f32 %v285_v38, 0.0 }
  0xe3   :  { %288 = vst.msk [vmem:[%s479_s3] sm:$0xff] %vm287_vm3, %v286_v41 }

// kernel: crnn_forward.5
= control target key start
LH: loop header
LB: loop body
LE: loop exit
PB: predicated region body
PF: predicated region fallthrough
CT: control target
= control target key end

     0   :  { %v4015_v1 = vmov 0.0   ;;  %vm4016_vm0 = vmmov 0   ;;  %vm78_vm1 = vcmask 392192   ;;  %s4924_s0 = inlined_call_operand.vmem [shape: bf16[16,48], index: 0, kind: input, shape index: {}]   ;;  %s4925_s1 = inlined_call_operand.vmem [shape: bf16[48,96], index: 1, kind: input, shape index: {}]   ;;  %s4926_s2 = inlined_call_operand.vmem [shape: bf16[48,96], index: 2, kind: input, shape index: {}]   ;;  %s4927_s3 = inlined_call_operand.vmem [shape: f32[1,96], index: 3, kind: input, shape index: {}]   ;;  %s4928_s4 = inlined_call_operand.vmem [shape: f32[1,96], index: 4, kind: input, shape index: {}]   ;;  %s4929_s5 = inlined_call_operand.vmem [shape: f32[32,96], index: 5, kind: input, shape index: {}]   ;;  %s4930_s6 = inlined_call_operand.vmem [shape: f32[32,96], index: 6, kind: input, shape index: {}]   ;;  %s4931_s7 = inlined_call_operand.vmem [shape: f32[1,96], index: 7, kind: input, shape index: {}]   ;;  %s4932_s8 = inlined_call_operand.vmem [shape: f32[1,96], index: 8, kind: input, shape index: {}]   ;;  %s4933_s9 = inlined_call_operand.vmem [shape: f32[64,16], index: 9, kind: input, shape index: {}]   ;;  %s4934_s10 = inlined_call_operand.vmem [shape: f32[1,1,16], index: 10, kind: input, shape index: {}]   ;;  %s4935_s11 = inlined_call_operand.hbm [shape: f32[8,2,16], index: 11, kind: output, shape index: {}]  }
   0x1   :  { %v3840_v0 = vld [vmem:[%s4925_s1 + $0x10] sm:$0xff]   ;;  %3461 = vmatprep.subr.bf16.mxu0 %v4015_v1  ;;  %3471 = vmatprep.subr.bf16.mxu1 %v4015_v1  ;;  %v3842_v3 = vld [vmem:[%s4925_s1 + $0x8] sm:$0xff]   ;;  %v3844_v5 = vld [vmem:[%s4925_s1] sm:$0xff]  }
   0x2   :  { %v3841_v2 = vld [vmem:[%s4926_s2 + $0x10] sm:$0xff]   ;;  %3462 = vmatpush3.bf16.msra.mxu0 %v3840_v0  ;;  %3467 = vmatprep.mubr.msk.bf16.mxu0 %vm4016_vm0, %v4015_v1  ;;  %v3843_v4 = vld [vmem:[%s4926_s2 + $0x8] sm:$0xff]   ;;  %v3845_v6 = vld [vmem:[%s4926_s2] sm:$0xff]  }
   0x3   :  { %3472 = vmatpush3.bf16.msra.mxu1 %v3841_v2  ;;  %3463 = vmatprep.subr.bf16.mxu0 %v4015_v1  ;;  %v3846_v7 = vld [vmem:[%s4924_s0] sm:$0xff]  }
   0x4   :  { %3473 = vmatprep.subr.bf16.mxu1 %v4015_v1  ;;  %3477 = vmatprep.mubr.msk.bf16.mxu1 %vm4016_vm0, %v4015_v1 }
   0x6   :  { %3464 = vmatpush3.bf16.msra.mxu0 %v3842_v3 }
   0x7   :  { %3474 = vmatpush3.bf16.msra.mxu1 %v3843_v4  ;;  %3465 = vmatprep.subr.bf16.mxu0 %v4015_v1 }
   0x8   :  { %3475 = vmatprep.subr.bf16.mxu1 %v4015_v1 }
   0xa   :  { %3466 = vmatpush3.bf16.msra.mxu0 %v3844_v5 }
   0xb   :  { %16 = vsyncpa [#allocation3], 0  ;;  %3476 = vmatpush3.bf16.msra.mxu1 %v3845_v6  ;;  %3481 = vmatprep.subr.mxu0 %v4015_v1  ;;  %v4117_v8 = vld [vmem:[%s4929_s5 + $0x18] sm:$0xff]  ;;  %v4128_v10 = vld [vmem:[%s4929_s5 + $0x10] sm:$0xff]  ;;  %s4018_s18 = smov 96   ;;  %vm213_vm2 = vcmask 123904  }
   0xc   :  { %3492 = vmatprep.subr.mxu1 %v4015_v1  ;;  %v4123_v9 = vld [vmem:[%s4930_s6 + $0x18] sm:$0xff]  ;;  %v4134_v11 = vld [vmem:[%s4930_s6 + $0x10] sm:$0xff]  ;;  %v4141_v12 = vld [vmem:[%s4929_s5 + $0x8] sm:$0xff]  ;;  %214 = vst.msk [vmem:[#allocation2] sm:$0x3] %vm213_vm2, %v4015_v1  ;;  %vm228_vm3 = vcmask 261120  }
   0xd   :  { %3468 = vmatmul.mubr.msk.bf16.vlgmr.msra.gmra.mxu0 %vm78_vm1, %v3846_v7  ;;  %v4148_v13 = vld [vmem:[%s4930_s6 + $0x8] sm:$0xff]  ;;  %v4155_v14 = vld [vmem:[%s4929_s5] sm:$0xff]  ;;  %v4218_v57 = vld [vmem:[%s4933_s9 + $0x18] sm:$0xff]  ;;  %215 = vst.msk [vmem:[#allocation2 + $0x2] sm:$0x3] %vm213_vm2, %v4015_v1 }
   0xe   :  { %3478 = vmatmul.mubr.msk.bf16.vlgmr.msra.gmra.mxu1 %vm78_vm1, %v3846_v7  ;;  %3482 = vmatpush3.msra.mxu0 %v4117_v8  ;;  %v4162_v15 = vld [vmem:[%s4930_s6] sm:$0xff]  ;;  %v4223_v58 = vld [vmem:[%s4933_s9 + $0x10] sm:$0xff]  ;;  %v4229_v59 = vld [vmem:[%s4933_s9 + $0x38] sm:$0xff]  ;;  %216 = vst.msk [vmem:[#allocation2 + $0x4] sm:$0x3] %vm213_vm2, %v4015_v1 }
   0xf   :  { %3493 = vmatpush3.msra.mxu1 %v4123_v9  ;;  %3483 = vmatprep.subr.mxu0 %v4015_v1  ;;  %v3239_v16 = vld [vmem:[%s4928_s4] ss:$0 sm:$0xff]  ;;  %v4235_v61 = vld [vmem:[%s4933_s9 + $0x8] sm:$0xff]  ;;  %v4255_v0 = vld [vmem:[%s4933_s9 + $0x30] sm:$0xff]  ;;  %217 = vst.msk [vmem:[#allocation2 + $0x6] sm:$0x3] %vm213_vm2, %v4015_v1 }
  0x10   :  { %3494 = vmatprep.subr.mxu1 %v4015_v1  ;;  %3484 = vmatpush3.msra.mxu0 %v4128_v10  ;;  %v3233_v22 = vld [vmem:[%s4927_s3] ss:$0 sm:$0xff]  ;;  %s4017_s3 = smov 64   ;;  %v4262_v2 = vld [vmem:[%s4933_s9 + $0x28] sm:$0xff]  ;;  %218 = vst.msk [vmem:[#allocation2 + $0x8] sm:$0x3] %vm213_vm2, %v4015_v1 }
  0x11   :  { %3495 = vmatpush3.msra.mxu1 %v4134_v11  ;;  %3485 = vmatprep.subr.mxu0 %v4015_v1  ;;  %v4194_v28 = vld [vmem:[%s4931_s7] ss:$0 sm:$0xff]  ;;  %219 = vst.msk [vmem:[#allocation2 + $0xa] sm:$0x3] %vm213_vm2, %v4015_v1  ;;  %220 = vst.msk [vmem:[#allocation2 + $0xc] sm:$0x3] %vm213_vm2, %v4015_v1 }
  0x12   :  { %3496 = vmatprep.subr.mxu1 %v4015_v1  ;;  %3486 = vmatpush3.msra.mxu0 %v4141_v12  ;;  %v4199_v29 = vld [vmem:[%s4932_s8] ss:$0 sm:$0xff]  ;;  %221 = vst.msk [vmem:[#allocation2 + $0xe] sm:$0x3] %vm213_vm2, %v4015_v1 }
  0x13   :  { %3497 = vmatpush3.msra.mxu1 %v4148_v13  ;;  %3487 = vmatprep.subr.mxu0 %v4015_v1  ;;  %v4244_v62 = vld [vmem:[%s4933_s9] sm:$0xff] }
  0x14   :  { %3498 = vmatprep.subr.mxu1 %v4015_v1  ;;  %3488 = vmatpush3.msra.mxu0 %v4155_v14  ;;  %v4269_v3 = vld [vmem:[%s4933_s9 + $0x20] sm:$0xff] }
  0x15   :  { %3489 = vmatprep.mubr.msk.f32.mxu0 %vm4016_vm0, %v4015_v1  ;;  %3499 = vmatpush3.msra.mxu1 %v4162_v15 }
  0x16   :  { %3500 = vmatprep.mubr.msk.f32.mxu1 %vm4016_vm0, %v4015_v1  ;;  %3490 = vmatmul.mubr.f32.vlgmr.msra.gmra.mxu0 %v4015_v1 }
  0x17   :  { %3501 = vmatmul.mubr.f32.vlgmr.msra.gmra.mxu1 %v4015_v1  ;;  %3503 = vmatprep.subr.mxu0 %v4015_v1 }
  0x18   :  { %3514 = vmatprep.subr.mxu1 %v4015_v1  ;;  %3511 = vmatprep.mubr.msk.f32.mxu0 %vm4016_vm0, %v4015_v1 }
  0x19   :  { %3522 = vmatprep.mubr.msk.f32.mxu1 %vm4016_vm0, %v4015_v1  ;;  %3504 = vmatpush3.msra.mxu0 %v4218_v57 }
  0x1a   :  { %3505 = vmatprep.subr.mxu0 %v4015_v1  ;;  %3515 = vmatpush3.msra.mxu1 %v4229_v59 }
  0x1b   :  { %3506 = vmatpush3.msra.mxu0 %v4223_v58  ;;  %3516 = vmatprep.subr.mxu1 %v4015_v1 }
  0x1c   :  { %3507 = vmatprep.subr.mxu0 %v4015_v1  ;;  %3517 = vmatpush3.msra.mxu1 %v4255_v0 }
  0x1d   :  { %3508 = vmatpush3.msra.mxu0 %v4235_v61  ;;  %3518 = vmatprep.subr.mxu1 %v4015_v1 }
  0x1e   :  { %3509 = vmatprep.subr.mxu0 %v4015_v1  ;;  %3519 = vmatpush3.msra.mxu1 %v4262_v2 }
  0x1f   :  { %3510 = vmatpush3.msra.mxu0 %v4244_v62  ;;  %3520 = vmatprep.subr.mxu1 %v4015_v1 }
  0x20   :  { %3525 = vmatprep.subr.mxu0 %v4015_v1  ;;  %3521 = vmatpush3.msra.mxu1 %v4269_v3 }
  0x21   :  { %3536 = vmatprep.subr.mxu1 %v4015_v1 }
  0xcd   :  { %v116_v17 = vpop.f32.mrf.mxu0 }
  0xce   :  { %v188_v18 = vpop.f32.mrf.mxu1  ;;  %v4205_v37 = vadd.f32 %v3233_v22, %v116_v17 }
  0xcf   :  { %v4184_v19 = vadd.f32 %v3239_v16, %v188_v18  ;;  %v3469_v20 = vpop.f32.mrf.mxu0 }
  0xd0   :  { %v3479_v21 = vpop.f32.mrf.mxu1 }
  0xd1   :  { %v119_v23 = vpop.f32.mrf.mxu0 }
  0xd2   :  { %v4189_v24 = vadd.f32 %v3233_v22, %v119_v23  ;;  %v191_v25 = vpop.f32.mrf.mxu1 }
  0xd3   :  { %v3470_v26 = vpop.f32.mrf.mxu0  ;;  %v4208_v39 = vadd.f32 %v3239_v16, %v191_v25 }
  0xd4   :  { %v3480_v27 = vpop.f32.mrf.mxu1 }
  0xd5   :  { %v432_v27 = vld [vmem:[#allocation2] sm:$0x3] }
  0xd6   :  { %v298_v30 = vpop.f32.mrf.mxu0 }
  0xd7   :  { %v299_v31 = vadd.f32 %v4194_v28, %v298_v30  ;;  %v400_v32 = vpop.f32.mrf.mxu1 }
  0xd8   :  { %v401_v33 = vadd.f32 %v4199_v29, %v400_v32  ;;  %v3491_v34 = vpop.f32.mrf.mxu0 }
  0xd9   :  { %v3502_v35 = vpop.f32.mrf.mxu1  ;;  %310 = vrot.lane.b32.xlu0 %v299_v31, %s4017_s3  ;;  %v302_v38 = vadd.f32 %v299_v31, %v4205_v37 }
  0xda   :  { %v405_v36 = vrot.slane %v401_v33, 2  ;;  %v511_v33 = vld [vmem:[#allocation2 + $0xe] sm:$0x3] }
  0xdb   :  { %v3245_v40 = vmul.f32 -1.442695, %v302_v38 }
  0xdc   :  { %v407_v41 = vadd.f32 %v405_v36, %v4208_v39 }
  0xdd   :  { %414 = vrot.lane.b32.xlu0 %v405_v36, %s4017_s3  ;;  %3847 = vpow2.f32 %v3245_v40 }
  0xde   :  { %v3247_v42 = vmul.f32 -1.442695, %v407_v41 }
  0xe0   :  { %3849 = vpow2.f32 %v3247_v42 }
  0xea   :  { %v3848_v43 = vpop.eup %3847 }
  0xeb   :  { %v306_v44 = vadd.f32 1.0, %v3848_v43 }
  0xed   :  { %v3850_v45 = vpop.eup %3849  ;;  %3851 = vrcp.f32 %v306_v44 }
  0xee   :  { %v411_v46 = vadd.f32 1.0, %v3850_v45 }
  0xf0   :  { %3853 = vrcp.f32 %v411_v46 }
  0xfa   :  { %v3852_v47 = vpop.eup %3851 }
  0xfb   :  { %v320_v4 = vsub.f32 1.0, %v3852_v47  ;;  %v326_v6 = vmul.f32 0.0, %v3852_v47 }
  0xfd   :  { %v3854_v50 = vpop.eup %3853 }
  0xfe   :  { %v424_v17 = vsub.f32 1.0, %v3854_v50  ;;  %v430_v20 = vmul.f32 0.0, %v3854_v50 }
 0x14b   :  { %v311_v48 = vpop.permute.xlu0 %310 }
 0x14c   :  { %v313_v49 = vmul.f32 %v3852_v47, %v311_v48 }
 0x14e   :  { %315 = vrot.lane.b32.xlu1 %v313_v49, %s4017_s3 }
 0x14f   :  { %v415_v51 = vpop.permute.xlu0 %414 }
 0x150   :  { %v417_v52 = vmul.f32 %v3854_v50, %v415_v51 }
 0x152   :  { %419 = vrot.lane.b32.xlu1 %v417_v52, %s4017_s3 }
 0x1c0   :  { %v316_v53 = vpop.permute.xlu1 %315 }
 0x1c1   :  { %v318_v54 = vadd.f32 %v316_v53, %v4205_v37 }
 0x1c3   :  { %3855 = vtanh.f32 %v318_v54 }
 0x1c4   :  { %v420_v55 = vpop.permute.xlu1 %419 }
 0x1c5   :  { %v422_v56 = vadd.f32 %v420_v55, %v4208_v39 }
 0x1c7   :  { %3857 = vtanh.f32 %v422_v56 }
 0x1d0   :  { %v3856_v60 = vpop.eup %3855 }
 0x1d1   :  { %322 = vrot.lane.b32.xlu0 %v3856_v60, %s4018_s18 }
 0x1d4   :  { %v3858_v63 = vpop.eup %3857 }
 0x1d5   :  { %426 = vrot.lane.b32.xlu1 %v3858_v63, %s4018_s18 }
 0x243   :  { %v323_v5 = vpop.permute.xlu0 %322 }
 0x244   :  { %v325_v7 = vmul.f32 %v323_v5, %v320_v4 }
 0x246   :  { %v4273_v16 = vadd.f32 %v326_v6, %v325_v7 }
 0x247   :  { %v427_v18 = vpop.permute.xlu1 %426 }
 0x248   :  { %v429_v21 = vmul.f32 %v427_v18, %v424_v17  ;;  %434 = vrot.lane.b32.xlu0 %v4273_v16, %s4018_s18 }
 0x24a   :  { %v4277_v22 = vadd.f32 %v430_v20, %v429_v21 }
 0x24c   :  { %v513_v23 = vrot.slane %v4277_v22, 6 }
 0x24e   :  { %514 = vrot.lane.b32.xlu1 %v513_v23, %s4018_s18  ;;  %v686_v23 = vrot.slane %v4273_v16, 6 }
 0x2ba   :  { %v435_v25 = vpop.permute.xlu0 %434 }
 0x2bb   :  { %3512 = vmatmul.mubr.msk.f32.vlgmr.msra.gmra.mxu0 %vm228_vm3, %v435_v25 }
 0x2bc   :  { %3526 = vmatpush3.msra.mxu0 %v4117_v8  ;;  %3533 = vmatprep.mubr.msk.f32.mxu0 %vm4016_vm0, %v4015_v1 }
 0x2bd   :  { %3527 = vmatprep.subr.mxu0 %v4015_v1 }
 0x2be   :  { %3528 = vmatpush3.msra.mxu0 %v4128_v10 }
 0x2bf   :  { %3529 = vmatprep.subr.mxu0 %v4015_v1 }
 0x2c0   :  { %3530 = vmatpush3.msra.mxu0 %v4141_v12  ;;  %v515_v26 = vpop.permute.xlu1 %514 }
 0x2c1   :  { %3531 = vmatprep.subr.mxu0 %v4015_v1  ;;  %3523 = vmatmul.mubr.msk.f32.vlgmr.msra.gmra.mxu1 %vm228_vm3, %v515_v26 }
 0x2c2   :  { %3532 = vmatpush3.msra.mxu0 %v4155_v14  ;;  %3537 = vmatpush3.msra.mxu1 %v4123_v9 }
 0x2c3   :  { %3534 = vmatmul.mubr.msk.f32.vlgmr.msra.gmra.mxu0 %vm228_vm3, %v435_v25  ;;  %3538 = vmatprep.subr.mxu1 %v4015_v1 }
 0x2c4   :  { %3539 = vmatpush3.msra.mxu1 %v4134_v11  ;;  %3544 = vmatprep.mubr.msk.f32.mxu1 %vm4016_vm0, %v4015_v1 }
 0x2c5   :  { %3540 = vmatprep.subr.mxu1 %v4015_v1  ;;  %3547 = vmatprep.subr.mxu0 %v4015_v1 }
 0x2c6   :  { %3541 = vmatpush3.msra.mxu1 %v4148_v13  ;;  %3548 = vmatpush3.msra.mxu0 %v4218_v57 }
 0x2c7   :  { %3542 = vmatprep.subr.mxu1 %v4015_v1  ;;  %3549 = vmatprep.subr.mxu0 %v4015_v1 }
 0x2c8   :  { %3543 = vmatpush3.msra.mxu1 %v4162_v15  ;;  %3550 = vmatpush3.msra.mxu0 %v4223_v58 }
 0x2c9   :  { %3545 = vmatmul.mubr.msk.f32.vlgmr.msra.gmra.mxu1 %vm228_vm3, %v515_v26  ;;  %3551 = vmatprep.subr.mxu0 %v4015_v1 }
 0x2ca   :  { %3552 = vmatpush3.msra.mxu0 %v4235_v61  ;;  %3558 = vmatprep.subr.mxu1 %v4015_v1 }
 0x2cb   :  { %3553 = vmatprep.subr.mxu0 %v4015_v1  ;;  %3559 = vmatpush3.msra.mxu1 %v4229_v59 }
 0x2cc   :  { %3554 = vmatpush3.msra.mxu0 %v4244_v62  ;;  %3555 = vmatprep.mubr.msk.f32.mxu0 %vm4016_vm0, %v4015_v1 }
 0x2cd   :  { %3560 = vmatprep.subr.mxu1 %v4015_v1  ;;  %3569 = vmatprep.subr.mxu0 %v4015_v1 }
 0x2ce   :  { %3561 = vmatpush3.msra.mxu1 %v4255_v0  ;;  %3566 = vmatprep.mubr.msk.f32.mxu1 %vm4016_vm0, %v4015_v1 }
 0x2cf   :  { %3562 = vmatprep.subr.mxu1 %v4015_v1 }
 0x2d0   :  { %3563 = vmatpush3.msra.mxu1 %v4262_v2 }
 0x2d1   :  { %3564 = vmatprep.subr.mxu1 %v4015_v1 }
 0x2d2   :  { %3565 = vmatpush3.msra.mxu1 %v4269_v3 }
 0x2d3   :  { %3580 = vmatprep.subr.mxu1 %v4015_v1 }
 0x37b   :  { %v504_v30 = vpop.f32.mrf.mxu0 }
 0x37c   :  { %v508_v31 = vadd.f32 %v504_v30, %v432_v27 }
 0x37d   :  { %v3513_v32 = vpop.f32.mrf.mxu0 }
 0x37e   :  { %509 = vst.msk [vmem:[#allocation2] sm:$0x3] %vm213_vm2, %v508_v31  ;;  %v786_v32 = vrot.slane %v4277_v22, 2 }
 0x381   :  { %v584_v34 = vpop.f32.mrf.mxu1 }
 0x382   :  { %v588_v35 = vadd.f32 %v584_v34, %v511_v33 }
 0x383   :  { %v656_v36 = vpop.f32.mrf.mxu0  ;;  %v3524_v38 = vpop.f32.mrf.mxu1 }
 0x384   :  { %589 = vst.msk [vmem:[#allocation2 + $0xe] sm:$0x3] %vm213_vm2, %v588_v35  ;;  %v657_v40 = vadd.f32 %v4194_v28, %v656_v36 }
 0x385   :  { %v3535_v41 = vpop.f32.mrf.mxu0 }
 0x386   :  { %v661_v42 = vrot.slane %v657_v40, 6 }
 0x388   :  { %670 = vrot.lane.b32.xlu0 %v661_v42, %s4017_s3  ;;  %v663_v47 = vadd.f32 %v661_v42, %v4205_v37  ;;  %v791_v42 = vld [vmem:[#allocation2 + $0x2] sm:$0x3] }
 0x389   :  { %v756_v43 = vpop.f32.mrf.mxu1 }
 0x38a   :  { %v757_v44 = vadd.f32 %v4199_v29, %v756_v43  ;;  %v3251_v48 = vmul.f32 -1.442695, %v663_v47 }
 0x38b   :  { %v3546_v45 = vpop.f32.mrf.mxu1 }
 0x38c   :  { %v761_v46 = vrot.slane %v757_v44, 4  ;;  %3859 = vpow2.f32 %v3251_v48 }
 0x38e   :  { %770 = vrot.lane.b32.xlu1 %v761_v46, %s4017_s3  ;;  %v763_v49 = vadd.f32 %v761_v46, %v4208_v39  ;;  %v871_v46 = vld [vmem:[#allocation2 + $0xc] sm:$0x3] }
 0x390   :  { %v3253_v50 = vmul.f32 -1.442695, %v763_v49 }
 0x392   :  { %3861 = vpow2.f32 %v3253_v50 }
 0x399   :  { %v3860_v51 = vpop.eup %3859 }
 0x39a   :  { %v667_v52 = vadd.f32 1.0, %v3860_v51 }
 0x39c   :  { %3863 = vrcp.f32 %v667_v52 }
 0x39f   :  { %v3862_v53 = vpop.eup %3861 }
 0x3a0   :  { %v767_v54 = vadd.f32 1.0, %v3862_v53 }
 0x3a2   :  { %3865 = vrcp.f32 %v767_v54 }
 0x3a9   :  { %v3864_v55 = vpop.eup %3863 }
 0x3aa   :  { %v680_v25 = vsub.f32 1.0, %v3864_v55  ;;  %v688_v27 = vmul.f32 %v3864_v55, %v686_v23 }
 0x3af   :  { %v3866_v63 = vpop.eup %3865 }
 0x3b0   :  { %v780_v33 = vsub.f32 1.0, %v3866_v63  ;;  %v788_v36 = vmul.f32 %v3866_v63, %v786_v32 }
 0x3fa   :  { %v671_v56 = vpop.permute.xlu0 %670 }
 0x3fb   :  { %v673_v60 = vmul.f32 %v3864_v55, %v671_v56 }
 0x3fd   :  { %675 = vrot.lane.b32.xlu0 %v673_v60, %s4017_s3 }
 0x400   :  { %v771_v4 = vpop.permute.xlu1 %770 }
 0x401   :  { %v773_v5 = vmul.f32 %v3866_v63, %v771_v4 }
 0x403   :  { %775 = vrot.lane.b32.xlu1 %v773_v5, %s4017_s3 }
 0x46f   :  { %v676_v6 = vpop.permute.xlu0 %675 }
 0x470   :  { %v678_v7 = vadd.f32 %v676_v6, %v4205_v37 }
 0x472   :  { %3867 = vtanh.f32 %v678_v7 }
 0x475   :  { %v776_v17 = vpop.permute.xlu1 %775 }
 0x476   :  { %v778_v18 = vadd.f32 %v776_v17, %v4208_v39 }
 0x478   :  { %3869 = vtanh.f32 %v778_v18 }
 0x47f   :  { %v3868_v20 = vpop.eup %3867 }
 0x480   :  { %682 = vrot.lane.b32.xlu0 %v3868_v20, %s4018_s18 }
 0x485   :  { %v3870_v21 = vpop.eup %3869 }
 0x486   :  { %782 = vrot.lane.b32.xlu1 %v3870_v21, %s4018_s18 }
 0x4f2   :  { %v683_v26 = vpop.permute.xlu0 %682 }
 0x4f3   :  { %v685_v30 = vmul.f32 %v683_v26, %v680_v25 }
 0x4f5   :  { %v4356_v31 = vadd.f32 %v688_v27, %v685_v30 }
 0x4f7   :  { %v793_v34 = vrot.slane %v4356_v31, 2 }
 0x4f8   :  { %v783_v35 = vpop.permute.xlu1 %782 }
 0x4f9   :  { %v785_v38 = vmul.f32 %v783_v35, %v780_v33  ;;  %794 = vrot.lane.b32.xlu0 %v793_v34, %s4018_s18 }
 0x4fb   :  { %v4361_v40 = vadd.f32 %v788_v36, %v785_v38 }
 0x4fd   :  { %v873_v16 = vrot.slane %v4361_v40, 4 }
 0x4ff   :  { %874 = vrot.lane.b32.xlu1 %v873_v16, %s4018_s18  ;;  %v1046_v16 = vrot.slane %v4356_v31, 6 }
 0x56b   :  { %v795_v41 = vpop.permute.xlu0 %794 }
 0x56c   :  { %3556 = vmatmul.mubr.msk.f32.vlgmr.msra.gmra.mxu0 %vm228_vm3, %v795_v41 }
 0x56d   :  { %3570 = vmatpush3.msra.mxu0 %v4117_v8  ;;  %3577 = vmatprep.mubr.msk.f32.mxu0 %vm4016_vm0, %v4015_v1 }
 0x56e   :  { %3571 = vmatprep.subr.mxu0 %v4015_v1 }
 0x56f   :  { %3572 = vmatpush3.msra.mxu0 %v4128_v10 }
 0x570   :  { %3573 = vmatprep.subr.mxu0 %v4015_v1 }
 0x571   :  { %3574 = vmatpush3.msra.mxu0 %v4141_v12  ;;  %v875_v22 = vpop.permute.xlu1 %874 }
 0x572   :  { %3575 = vmatprep.subr.mxu0 %v4015_v1  ;;  %3567 = vmatmul.mubr.msk.f32.vlgmr.msra.gmra.mxu1 %vm228_vm3, %v875_v22 }
 0x573   :  { %3576 = vmatpush3.msra.mxu0 %v4155_v14  ;;  %3581 = vmatpush3.msra.mxu1 %v4123_v9 }
 0x574   :  { %3578 = vmatmul.mubr.msk.f32.vlgmr.msra.gmra.mxu0 %vm228_vm3, %v795_v41  ;;  %3582 = vmatprep.subr.mxu1 %v4015_v1 }
 0x575   :  { %3583 = vmatpush3.msra.mxu1 %v4134_v11  ;;  %3588 = vmatprep.mubr.msk.f32.mxu1 %vm4016_vm0, %v4015_v1 }
 0x576   :  { %3584 = vmatprep.subr.mxu1 %v4015_v1  ;;  %3591 = vmatprep.subr.mxu0 %v4015_v1 }
 0x577   :  { %3585 = vmatpush3.msra.mxu1 %v4148_v13  ;;  %3592 = vmatpush3.msra.mxu0 %v4218_v57 }
 0x578   :  { %3586 = vmatprep.subr.mxu1 %v4015_v1  ;;  %3593 = vmatprep.subr.mxu0 %v4015_v1 }
 0x579   :  { %3587 = vmatpush3.msra.mxu1 %v4162_v15  ;;  %3594 = vmatpush3.msra.mxu0 %v4223_v58 }
 0x57a   :  { %3589 = vmatmul.mubr.msk.f32.vlgmr.msra.gmra.mxu1 %vm228_vm3, %v875_v22  ;;  %3595 = vmatprep.subr.mxu0 %v4015_v1 }
 0x57b   :  { %3596 = vmatpush3.msra.mxu0 %v4235_v61  ;;  %3602 = vmatprep.subr.mxu1 %v4015_v1 }
 0x57c   :  { %3597 = vmatprep.subr.mxu0 %v4015_v1  ;;  %3603 = vmatpush3.msra.mxu1 %v4229_v59 }
 0x57d   :  { %3598 = vmatpush3.msra.mxu0 %v4244_v62  ;;  %3599 = vmatprep.mubr.msk.f32.mxu0 %vm4016_vm0, %v4015_v1 }
 0x57e   :  { %3604 = vmatprep.subr.mxu1 %v4015_v1  ;;  %3613 = vmatprep.subr.mxu0 %v4015_v1 }
 0x57f   :  { %3605 = vmatpush3.msra.mxu1 %v4255_v0  ;;  %3610 = vmatprep.mubr.msk.f32.mxu1 %vm4016_vm0, %v4015_v1 }
 0x580   :  { %3606 = vmatprep.subr.mxu1 %v4015_v1 }
 0x581   :  { %3607 = vmatpush3.msra.mxu1 %v4262_v2 }
 0x582   :  { %3608 = vmatprep.subr.mxu1 %v4015_v1 }
 0x583   :  { %3609 = vmatpush3.msra.mxu1 %v4269_v3 }
 0x584   :  { %3624 = vmatprep.subr.mxu1 %v4015_v1 }
 0x62c   :  { %v864_v43 = vpop.f32.mrf.mxu0 }
 0x62d   :  { %v868_v44 = vadd.f32 %v864_v43, %v791_v42 }
 0x62e   :  { %v3557_v45 = vpop.f32.mrf.mxu0 }
 0x62f   :  { %869 = vst.msk [vmem:[#allocation2 + $0x2] sm:$0x3] %vm213_vm2, %v868_v44  ;;  %v1146_v45 = vrot.slane %v4361_v40, 2 }
 0x632   :  { %v944_v47 = vpop.f32.mrf.mxu1 }
 0x633   :  { %v948_v48 = vadd.f32 %v944_v47, %v871_v46 }
 0x634   :  { %v1016_v49 = vpop.f32.mrf.mxu0  ;;  %v3568_v50 = vpop.f32.mrf.mxu1 }
 0x635   :  { %949 = vst.msk [vmem:[#allocation2 + $0xc] sm:$0x3] %vm213_vm2, %v948_v48  ;;  %v1017_v51 = vadd.f32 %v4194_v28, %v1016_v49 }
 0x636   :  { %v3579_v52 = vpop.f32.mrf.mxu0 }
 0x637   :  { %v1021_v53 = vrot.slane %v1017_v51, 4 }
 0x639   :  { %1030 = vrot.lane.b32.xlu0 %v1021_v53, %s4017_s3  ;;  %v1023_v63 = vadd.f32 %v1021_v53, %v4205_v37  ;;  %v1151_v53 = vld [vmem:[#allocation2 + $0x4] sm:$0x3] }
 0x63a   :  { %v1116_v54 = vpop.f32.mrf.mxu1 }
 0x63b   :  { %v1117_v55 = vadd.f32 %v4199_v29, %v1116_v54  ;;  %v3257_v4 = vmul.f32 -1.442695, %v1023_v63 }
 0x63c   :  { %v3590_v56 = vpop.f32.mrf.mxu1 }
 0x63d   :  { %v1121_v60 = vrot.slane %v1117_v55, 6  ;;  %3871 = vpow2.f32 %v3257_v4 }
 0x63f   :  { %1130 = vrot.lane.b32.xlu1 %v1121_v60, %s4017_s3  ;;  %v1123_v5 = vadd.f32 %v1121_v60, %v4208_v39  ;;  %v1231_v60 = vld [vmem:[#allocation2 + $0xa] sm:$0x3] }
 0x641   :  { %v3259_v6 = vmul.f32 -1.442695, %v1123_v5 }
 0x643   :  { %3873 = vpow2.f32 %v3259_v6 }
 0x64a   :  { %v3872_v7 = vpop.eup %3871 }
 0x64b   :  { %v1027_v17 = vadd.f32 1.0, %v3872_v7 }
 0x64d   :  { %3875 = vrcp.f32 %v1027_v17 }
 0x650   :  { %v3874_v18 = vpop.eup %3873 }
 0x651   :  { %v1127_v20 = vadd.f32 1.0, %v3874_v18 }
 0x653   :  { %3877 = vrcp.f32 %v1127_v20 }
 0x65a   :  { %v3876_v21 = vpop.eup %3875 }
 0x65b   :  { %v1040_v41 = vsub.f32 1.0, %v3876_v21  ;;  %v1048_v42 = vmul.f32 %v3876_v21, %v1046_v16 }
 0x660   :  { %v3878_v26 = vpop.eup %3877 }
 0x661   :  { %v1140_v46 = vsub.f32 1.0, %v3878_v26  ;;  %v1148_v49 = vmul.f32 %v3878_v26, %v1146_v45 }
 0x6ab   :  { %v1031_v23 = vpop.permute.xlu0 %1030 }
 0x6ac   :  { %v1033_v25 = vmul.f32 %v3876_v21, %v1031_v23 }
 0x6ae   :  { %1035 = vrot.lane.b32.xlu0 %v1033_v25, %s4017_s3 }
 0x6b1   :  { %v1131_v27 = vpop.permute.xlu1 %1130 }
 0x6b2   :  { %v1133_v30 = vmul.f32 %v3878_v26, %v1131_v27 }
 0x6b4   :  { %1135 = vrot.lane.b32.xlu1 %v1133_v30, %s4017_s3 }
 0x720   :  { %v1036_v32 = vpop.permute.xlu0 %1035 }
 0x721   :  { %v1038_v33 = vadd.f32 %v1036_v32, %v4205_v37 }
 0x723   :  { %3879 = vtanh.f32 %v1038_v33 }
 0x726   :  { %v1136_v34 = vpop.permute.xlu1 %1135 }
 0x727   :  { %v1138_v35 = vadd.f32 %v1136_v34, %v4208_v39 }
 0x729   :  { %3881 = vtanh.f32 %v1138_v35 }
 0x730   :  { %v3880_v36 = vpop.eup %3879 }
 0x731   :  { %1042 = vrot.lane.b32.xlu0 %v3880_v36, %s4018_s18 }
 0x736   :  { %v3882_v38 = vpop.eup %3881 }
 0x737   :  { %1142 = vrot.lane.b32.xlu1 %v3882_v38, %s4018_s18 }
 0x7a3   :  { %v1043_v22 = vpop.permute.xlu0 %1042 }
 0x7a4   :  { %v1045_v43 = vmul.f32 %v1043_v22, %v1040_v41 }
 0x7a6   :  { %v4424_v44 = vadd.f32 %v1048_v42, %v1045_v43 }
 0x7a8   :  { %v1153_v47 = vrot.slane %v4424_v44, 4 }
 0x7a9   :  { %v1143_v48 = vpop.permute.xlu1 %1142 }
 0x7aa   :  { %v1145_v50 = vmul.f32 %v1143_v48, %v1140_v46  ;;  %1154 = vrot.lane.b32.xlu0 %v1153_v47, %s4018_s18 }
 0x7ac   :  { %v4429_v51 = vadd.f32 %v1148_v49, %v1145_v50  ;;  %v1406_v50 = vrot.slane %v4424_v44, 6 }
 0x7ae   :  { %v1233_v31 = vrot.slane %v4429_v51, 2 }
 0x7b0   :  { %1234 = vrot.lane.b32.xlu1 %v1233_v31, %s4018_s18 }
 0x81c   :  { %v1155_v52 = vpop.permute.xlu0 %1154 }
 0x81d   :  { %3600 = vmatmul.mubr.msk.f32.vlgmr.msra.gmra.mxu0 %vm228_vm3, %v1155_v52 }
 0x81e   :  { %3614 = vmatpush3.msra.mxu0 %v4117_v8  ;;  %3621 = vmatprep.mubr.msk.f32.mxu0 %vm4016_vm0, %v4015_v1 }
 0x81f   :  { %3615 = vmatprep.subr.mxu0 %v4015_v1 }
 0x820   :  { %3616 = vmatpush3.msra.mxu0 %v4128_v10 }
 0x821   :  { %3617 = vmatprep.subr.mxu0 %v4015_v1 }
 0x822   :  { %3618 = vmatpush3.msra.mxu0 %v4141_v12  ;;  %v1235_v40 = vpop.permute.xlu1 %1234 }
 0x823   :  { %3619 = vmatprep.subr.mxu0 %v4015_v1  ;;  %3611 = vmatmul.mubr.msk.f32.vlgmr.msra.gmra.mxu1 %vm228_vm3, %v1235_v40 }
 0x824   :  { %3620 = vmatpush3.msra.mxu0 %v4155_v14  ;;  %3625 = vmatpush3.msra.mxu1 %v4123_v9 }
 0x825   :  { %3622 = vmatmul.mubr.msk.f32.vlgmr.msra.gmra.mxu0 %vm228_vm3, %v1155_v52  ;;  %3626 = vmatprep.subr.mxu1 %v4015_v1 }
 0x826   :  { %3627 = vmatpush3.msra.mxu1 %v4134_v11  ;;  %3632 = vmatprep.mubr.msk.f32.mxu1 %vm4016_vm0, %v4015_v1 }
 0x827   :  { %3628 = vmatprep.subr.mxu1 %v4015_v1  ;;  %3635 = vmatprep.subr.mxu0 %v4015_v1 }
 0x828   :  { %3629 = vmatpush3.msra.mxu1 %v4148_v13  ;;  %3636 = vmatpush3.msra.mxu0 %v4218_v57 }
 0x829   :  { %3630 = vmatprep.subr.mxu1 %v4015_v1  ;;  %3637 = vmatprep.subr.mxu0 %v4015_v1 }
 0x82a   :  { %3631 = vmatpush3.msra.mxu1 %v4162_v15  ;;  %3638 = vmatpush3.msra.mxu0 %v4223_v58 }
 0x82b   :  { %3633 = vmatmul.mubr.msk.f32.vlgmr.msra.gmra.mxu1 %vm228_vm3, %v1235_v40  ;;  %3646 = vmatprep.subr.mxu1 %v4015_v1 }
 0x82c   :  { %3647 = vmatpush3.msra.mxu1 %v4229_v59  ;;  %3639 = vmatprep.subr.mxu0 %v4015_v1 }
 0x82d   :  { %3648 = vmatprep.subr.mxu1 %v4015_v1  ;;  %3640 = vmatpush3.msra.mxu0 %v4235_v61 }
 0x82e   :  { %3649 = vmatpush3.msra.mxu1 %v4255_v0  ;;  %3641 = vmatprep.subr.mxu0 %v4015_v1 }
 0x82f   :  { %3650 = vmatprep.subr.mxu1 %v4015_v1  ;;  %3642 = vmatpush3.msra.mxu0 %v4244_v62 }
 0x830   :  { %3651 = vmatpush3.msra.mxu1 %v4262_v2  ;;  %3643 = vmatprep.mubr.msk.f32.mxu0 %vm4016_vm0, %v4015_v1 }
 0x831   :  { %3652 = vmatprep.subr.mxu1 %v4015_v1  ;;  %3657 = vmatprep.subr.mxu0 %v4015_v1 }
 0x832   :  { %3653 = vmatpush3.msra.mxu1 %v4269_v3  ;;  %3654 = vmatprep.mubr.msk.f32.mxu1 %vm4016_vm0, %v4015_v1 }
 0x833   :  { %3668 = vmatprep.subr.mxu1 %v4015_v1 }
 0x8dd   :  { %v1224_v54 = vpop.f32.mrf.mxu0 }
 0x8de   :  { %v1228_v55 = vadd.f32 %v1224_v54, %v1151_v53 }
 0x8df   :  { %v3601_v56 = vpop.f32.mrf.mxu0 }
 0x8e0   :  { %1229 = vst.msk [vmem:[#allocation2 + $0x4] sm:$0x3] %vm213_vm2, %v1228_v55 }
 0x8e3   :  { %v1304_v63 = vpop.f32.mrf.mxu1 }
 0x8e4   :  { %v1308_v4 = vadd.f32 %v1304_v63, %v1231_v60 }
 0x8e5   :  { %v1376_v5 = vpop.f32.mrf.mxu0  ;;  %v3612_v6 = vpop.f32.mrf.mxu1 }
 0x8e6   :  { %1309 = vst.msk [vmem:[#allocation2 + $0xa] sm:$0x3] %vm213_vm2, %v1308_v4  ;;  %v1377_v7 = vadd.f32 %v4194_v28, %v1376_v5 }
 0x8e7   :  { %v3623_v17 = vpop.f32.mrf.mxu0 }
 0x8e8   :  { %v1381_v18 = vrot.slane %v1377_v7, 2 }
 0x8ea   :  { %1390 = vrot.lane.b32.xlu0 %v1381_v18, %s4017_s3  ;;  %v1383_v25 = vadd.f32 %v1381_v18, %v4205_v37 }
 0x8eb   :  { %v1476_v20 = vpop.f32.mrf.mxu1 }
 0x8ec   :  { %v1477_v21 = vadd.f32 %v4199_v29, %v1476_v20  ;;  %v3263_v26 = vmul.f32 -1.442695, %v1383_v25 }
 0x8ed   :  { %v3634_v23 = vpop.f32.mrf.mxu1 }
 0x8ee   :  { %1488 = vrot.lane.b32.xlu1 %v1477_v21, %s4017_s3  ;;  %v1480_v27 = vadd.f32 %v1477_v21, %v4208_v39  ;;  %3883 = vpow2.f32 %v3263_v26 }
 0x8f0   :  { %v3265_v30 = vmul.f32 -1.442695, %v1480_v27 }
 0x8f2   :  { %3885 = vpow2.f32 %v3265_v30 }
 0x8fb   :  { %v3884_v32 = vpop.eup %3883 }
 0x8fc   :  { %v1387_v33 = vadd.f32 1.0, %v3884_v32 }
 0x8fe   :  { %3887 = vrcp.f32 %v1387_v33 }
 0x8ff   :  { %v3886_v34 = vpop.eup %3885 }
 0x900   :  { %v1484_v35 = vadd.f32 1.0, %v3886_v34 }
 0x902   :  { %3889 = vrcp.f32 %v1484_v35 }
 0x90b   :  { %v3888_v36 = vpop.eup %3887 }
 0x90c   :  { %v1400_v52 = vsub.f32 1.0, %v3888_v36  ;;  %v1408_v53 = vmul.f32 %v3888_v36, %v1406_v50 }
 0x90f   :  { %v3890_v41 = vpop.eup %3889 }
 0x95c   :  { %v1391_v38 = vpop.permute.xlu0 %1390 }
 0x95d   :  { %v1393_v16 = vmul.f32 %v3888_v36, %v1391_v38 }
 0x95f   :  { %1395 = vrot.lane.b32.xlu0 %v1393_v16, %s4017_s3 }
 0x960   :  { %v1489_v22 = vpop.permute.xlu1 %1488 }
 0x961   :  { %v1491_v42 = vmul.f32 %v3890_v41, %v1489_v22 }
 0x963   :  { %1493 = vrot.lane.b32.xlu1 %v1491_v42, %s4017_s3 }
 0x9d1   :  { %v1396_v43 = vpop.permute.xlu0 %1395 }
 0x9d2   :  { %v1398_v45 = vadd.f32 %v1396_v43, %v4205_v37  ;;  %v1498_v37 = vsub.f32 1.0, %v3890_v41 }
 0x9d4   :  { %3891 = vtanh.f32 %v1398_v45 }
 0x9d5   :  { %v1494_v46 = vpop.permute.xlu1 %1493 }
 0x9d6   :  { %v1496_v47 = vadd.f32 %v1494_v46, %v4208_v39  ;;  %v1505_v39 = vmul.f32 %v3890_v41, %v1233_v31 }
 0x9d8   :  { %3893 = vtanh.f32 %v1496_v47 }
 0x9e1   :  { %v3892_v48 = vpop.eup %3891 }
 0x9e2   :  { %1402 = vrot.lane.b32.xlu0 %v3892_v48, %s4018_s18 }
 0x9e5   :  { %v3894_v49 = vpop.eup %3893 }
 0x9e6   :  { %1500 = vrot.lane.b32.xlu1 %v3894_v49, %s4018_s18 }
 0xa54   :  { %v1403_v40 = vpop.permute.xlu0 %1402 }
 0xa55   :  { %v1405_v54 = vmul.f32 %v1403_v40, %v1400_v52 }
 0xa57   :  { %v4494_v55 = vadd.f32 %v1408_v53, %v1405_v54 }
 0xa58   :  { %v1501_v56 = vpop.permute.xlu1 %1500 }
 0xa59   :  { %v1510_v60 = vrot.slane %v4494_v55, 6  ;;  %v1503_v63 = vmul.f32 %v1501_v56, %v1498_v37 }
 0xa5b   :  { %v4499_v4 = vadd.f32 %v1505_v39, %v1503_v63  ;;  %1511 = vrot.lane.b32.xlu0 %v1510_v60, %s4018_s18  ;;  %v4588_v63 = vld [vmem:[%s4929_s5 + $0x10] sm:$0xff] }
 0xa5d   :  { %1590 = vrot.lane.b32.xlu1 %v4499_v4, %s4018_s18  ;;  %v1859_v50 = vrot.slane %v4499_v4, 2  ;;  %v4595_v4 = vld [vmem:[%s4929_s5 + $0x8] sm:$0xff] }
 0xacd   :  { %v1512_v44 = vpop.permute.xlu0 %1511 }
 0xace   :  { %3644 = vmatmul.mubr.msk.f32.vlgmr.msra.gmra.mxu0 %vm228_vm3, %v1512_v44 }
 0xacf   :  { %3658 = vmatpush3.msra.mxu0 %v4117_v8  ;;  %v1591_v5 = vpop.permute.xlu1 %1590  ;;  %3665 = vmatprep.mubr.msk.f32.mxu0 %vm4016_vm0, %v4015_v1  ;;  %v1508_v8 = vld [vmem:[#allocation2 + $0x6] sm:$0x3] }
 0xad0   :  { %3659 = vmatprep.subr.mxu0 %v4015_v1  ;;  %3655 = vmatmul.mubr.msk.f32.vlgmr.msra.gmra.mxu1 %vm228_vm3, %v1591_v5 }
 0xad1   :  { %3660 = vmatpush3.msra.mxu0 %v4128_v10  ;;  %3669 = vmatpush3.msra.mxu1 %v4123_v9  ;;  %v1588_v10 = vld [vmem:[#allocation2 + $0x8] sm:$0x3] }
 0xad2   :  { %3661 = vmatprep.subr.mxu0 %v4015_v1  ;;  %3670 = vmatprep.subr.mxu1 %v4015_v1 }
 0xad3   :  { %3662 = vmatpush3.msra.mxu0 %v4141_v12  ;;  %3671 = vmatpush3.msra.mxu1 %v4134_v11 }
 0xad4   :  { %3663 = vmatprep.subr.mxu0 %v4015_v1  ;;  %3672 = vmatprep.subr.mxu1 %v4015_v1 }
 0xad5   :  { %3664 = vmatpush3.msra.mxu0 %v4155_v14  ;;  %3673 = vmatpush3.msra.mxu1 %v4148_v13 }
 0xad6   :  { %3666 = vmatmul.mubr.msk.f32.vlgmr.msra.gmra.mxu0 %vm228_vm3, %v1512_v44  ;;  %3674 = vmatprep.subr.mxu1 %v4015_v1 }
 0xad7   :  { %3675 = vmatpush3.msra.mxu1 %v4162_v15  ;;  %3676 = vmatprep.mubr.msk.f32.mxu1 %vm4016_vm0, %v4015_v1 }
 0xad8   :  { %3677 = vmatmul.mubr.msk.f32.vlgmr.msra.gmra.mxu1 %vm228_vm3, %v1591_v5  ;;  %3679 = vmatprep.subr.mxu0 %v4015_v1  ;;  %v4603_v5 = vld [vmem:[%s4929_s5] sm:$0xff] }
 0xad9   :  { %3680 = vmatpush3.msra.mxu0 %v4218_v57  ;;  %3690 = vmatprep.subr.mxu1 %v4015_v1 }
 0xada   :  { %3681 = vmatprep.subr.mxu0 %v4015_v1  ;;  %3691 = vmatpush3.msra.mxu1 %v4229_v59 }
 0xadb   :  { %3682 = vmatpush3.msra.mxu0 %v4223_v58  ;;  %3687 = vmatprep.mubr.msk.f32.mxu0 %vm4016_vm0, %v4015_v1 }
 0xadc   :  { %3683 = vmatprep.subr.mxu0 %v4015_v1  ;;  %3692 = vmatprep.subr.mxu1 %v4015_v1 }
 0xadd   :  { %3684 = vmatpush3.msra.mxu0 %v4235_v61  ;;  %3693 = vmatpush3.msra.mxu1 %v4255_v0 }
 0xade   :  { %3685 = vmatprep.subr.mxu0 %v4015_v1  ;;  %3694 = vmatprep.subr.mxu1 %v4015_v1 }
 0xadf   :  { %3686 = vmatpush3.msra.mxu0 %v4244_v62  ;;  %3695 = vmatpush3.msra.mxu1 %v4262_v2 }
 0xae0   :  { %3701 = vmatprep.subr.mxu0 %v4015_v1  ;;  %3696 = vmatprep.subr.mxu1 %v4015_v1 }
 0xae1   :  { %3697 = vmatpush3.msra.mxu1 %v4269_v3  ;;  %3698 = vmatprep.mubr.msk.f32.mxu1 %vm4016_vm0, %v4015_v1 }
 0xae2   :  { %3712 = vmatprep.subr.mxu1 %v4015_v1 }
 0xb8e   :  { %v1581_v9 = vpop.f32.mrf.mxu0 }
 0xb8f   :  { %v1585_v11 = vadd.f32 %v1581_v9, %v1508_v8  ;;  %v4609_v8 = vld [vmem:[%s4930_s6 + $0x18] sm:$0xff]  ;;  %v4617_v9 = vld [vmem:[%s4930_s6 + $0x10] sm:$0xff] }
 0xb90   :  { %v3645_v12 = vpop.f32.mrf.mxu0  ;;  %v1660_v13 = vpop.f32.mrf.mxu1 }
 0xb91   :  { %1586 = vst.msk [vmem:[#allocation2 + $0x6] sm:$0x3] %vm213_vm2, %v1585_v11  ;;  %v1664_v14 = vadd.f32 %v1660_v13, %v1588_v10  ;;  %v4627_v10 = vld [vmem:[%s4930_s6 + $0x8] sm:$0xff]  ;;  %v4636_v11 = vld [vmem:[%s4930_s6] sm:$0xff] }
 0xb92   :  { %v3656_v15 = vpop.f32.mrf.mxu1 }
 0xb93   :  { %1665 = vst.msk [vmem:[#allocation2 + $0x8] sm:$0x3] %vm213_vm2, %v1664_v14 }
 0xb96   :  { %v1732_v51 = vpop.f32.mrf.mxu0 }
 0xb97   :  { %v1733_v31 = vadd.f32 %v4194_v28, %v1732_v51 }
 0xb98   :  { %v3667_v6 = vpop.f32.mrf.mxu0  ;;  %v1829_v7 = vpop.f32.mrf.mxu1 }
 0xb99   :  { %v1830_v17 = vadd.f32 %v4199_v29, %v1829_v7  ;;  %1744 = vrot.lane.b32.xlu0 %v1733_v31, %s4017_s3  ;;  %v1736_v21 = vadd.f32 %v1733_v31, %v4189_v24  ;;  %v4671_v6 = vld [vmem:[%s4932_s8] ss:$0 sm:$0xff] }
 0xb9a   :  { %v3678_v18 = vpop.f32.mrf.mxu1 }
 0xb9b   :  { %v1834_v20 = vrot.slane %v1830_v17, 2  ;;  %v3269_v23 = vmul.f32 -1.442695, %v1736_v21 }
 0xb9d   :  { %1843 = vrot.lane.b32.xlu1 %v1834_v20, %s4017_s3  ;;  %v1836_v25 = vadd.f32 %v1834_v20, %v4184_v19  ;;  %3895 = vpow2.f32 %v3269_v23 }
 0xb9f   :  { %v3271_v26 = vmul.f32 -1.442695, %v1836_v25 }
 0xba1   :  { %3897 = vpow2.f32 %v3271_v26 }
 0xbaa   :  { %v3896_v27 = vpop.eup %3895 }
 0xbab   :  { %v1740_v28 = vadd.f32 1.0, %v3896_v27 }
 0xbad   :  { %3899 = vrcp.f32 %v1740_v28 }
 0xbae   :  { %v3898_v30 = vpop.eup %3897 }
 0xbaf   :  { %v1840_v32 = vadd.f32 1.0, %v3898_v30 }
 0xbb1   :  { %3901 = vrcp.f32 %v1840_v32 }
 0xbba   :  { %v3900_v29 = vpop.eup %3899 }
 0xbbb   :  { %v1754_v46 = vsub.f32 1.0, %v3900_v29  ;;  %v1761_v48 = vmul.f32 %v3900_v29, %v1510_v60  ;;  %v4579_v60 = vld [vmem:[%s4929_s5 + $0x18] sm:$0xff] }
 0xbbe   :  { %v3902_v35 = vpop.eup %3901 }
 0xbbf   :  { %v1853_v40 = vsub.f32 1.0, %v3902_v35  ;;  %v1861_v54 = vmul.f32 %v3902_v35, %v1859_v50 }
 0xc0b   :  { %v1745_v33 = vpop.permute.xlu0 %1744 }
 0xc0c   :  { %v1747_v34 = vmul.f32 %v3900_v29, %v1745_v33 }
 0xc0e   :  { %1749 = vrot.lane.b32.xlu0 %v1747_v34, %s4017_s3 }
 0xc0f   :  { %v1844_v36 = vpop.permute.xlu1 %1843 }
 0xc10   :  { %v1846_v38 = vmul.f32 %v3902_v35, %v1844_v36 }
 0xc12   :  { %1848 = vrot.lane.b32.xlu1 %v1846_v38, %s4017_s3 }
 0xc80   :  { %v1750_v16 = vpop.permute.xlu0 %1749 }
 0xc81   :  { %v1752_v41 = vadd.f32 %v1750_v16, %v4189_v24 }
 0xc83   :  { %3903 = vtanh.f32 %v1752_v41 }
 0xc84   :  { %v1849_v22 = vpop.permute.xlu1 %1848 }
 0xc85   :  { %v1851_v42 = vadd.f32 %v1849_v22, %v4184_v19 }
 0xc87   :  { %3905 = vtanh.f32 %v1851_v42 }
 0xc90   :  { %v3904_v43 = vpop.eup %3903 }
 0xc91   :  { %1756 = vrot.lane.b32.xlu0 %v3904_v43, %s4018_s18 }
 0xc94   :  { %v3906_v45 = vpop.eup %3905 }
 0xc95   :  { %1855 = vrot.lane.b32.xlu1 %v3906_v45, %s4018_s18 }
 0xd03   :  { %v1757_v47 = vpop.permute.xlu0 %1756 }
 0xd04   :  { %v1759_v49 = vmul.f32 %v1757_v47, %v1754_v46 }
 0xd06   :  { %v4567_v52 = vadd.f32 %v1761_v48, %v1759_v49 }
 0xd07   :  { %v1856_v53 = vpop.permute.xlu1 %1855 }
 0xd08   :  { %v1858_v37 = vmul.f32 %v1856_v53, %v1853_v40  ;;  %1865 = vrot.lane.b32.xlu0 %v4567_v52, %s4018_s18  ;;  %v2116_v45 = vrot.slane %v4567_v52, 6 }
 0xd0a   :  { %v4571_v56 = vadd.f32 %v1861_v54, %v1858_v37 }
 0xd0c   :  { %v1943_v39 = vrot.slane %v4571_v56, 6  ;;  %v2216_v40 = vrot.slane %v4571_v56, 2 }
 0xd0e   :  { %1944 = vrot.lane.b32.xlu1 %v1943_v39, %s4018_s18 }
 0xd7a   :  { %v1866_v55 = vpop.permute.xlu0 %1865 }
 0xd7b   :  { %3688 = vmatmul.mubr.msk.f32.vlgmr.msra.gmra.mxu0 %vm228_vm3, %v1866_v55 }
 0xd7c   :  { %3702 = vmatpush3.msra.mxu0 %v4579_v60  ;;  %3709 = vmatprep.mubr.msk.f32.mxu0 %vm4016_vm0, %v4015_v1 }
 0xd7d   :  { %3703 = vmatprep.subr.mxu0 %v4015_v1 }
 0xd7e   :  { %3704 = vmatpush3.msra.mxu0 %v4588_v63 }
 0xd7f   :  { %3705 = vmatprep.subr.mxu0 %v4015_v1 }
 0xd80   :  { %3706 = vmatpush3.msra.mxu0 %v4595_v4  ;;  %v1945_v44 = vpop.permute.xlu1 %1944 }
 0xd81   :  { %3707 = vmatprep.subr.mxu0 %v4015_v1  ;;  %3699 = vmatmul.mubr.msk.f32.vlgmr.msra.gmra.mxu1 %vm228_vm3, %v1945_v44 }
 0xd82   :  { %3708 = vmatpush3.msra.mxu0 %v4603_v5  ;;  %3713 = vmatpush3.msra.mxu1 %v4609_v8 }
 0xd83   :  { %3710 = vmatmul.mubr.msk.f32.vlgmr.msra.gmra.mxu0 %vm228_vm3, %v1866_v55  ;;  %3714 = vmatprep.subr.mxu1 %v4015_v1 }
 0xd84   :  { %3715 = vmatpush3.msra.mxu1 %v4617_v9  ;;  %3720 = vmatprep.mubr.msk.f32.mxu1 %vm4016_vm0, %v4015_v1 }
 0xd85   :  { %3716 = vmatprep.subr.mxu1 %v4015_v1  ;;  %3723 = vmatprep.subr.mxu0 %v4015_v1 }
 0xd86   :  { %3717 = vmatpush3.msra.mxu1 %v4627_v10  ;;  %3724 = vmatpush3.msra.mxu0 %v4218_v57  ;;  %v1863_v57 = vld [vmem:[#allocation2 + $0x8] sm:$0x3] }
 0xd87   :  { %3718 = vmatprep.subr.mxu1 %v4015_v1  ;;  %3725 = vmatprep.subr.mxu0 %v4015_v1 }
 0xd88   :  { %3719 = vmatpush3.msra.mxu1 %v4636_v11  ;;  %3726 = vmatpush3.msra.mxu0 %v4223_v58 }
 0xd89   :  { %3721 = vmatmul.mubr.msk.f32.vlgmr.msra.gmra.mxu1 %vm228_vm3, %v1945_v44  ;;  %3727 = vmatprep.subr.mxu0 %v4015_v1 }
 0xd8a   :  { %3728 = vmatpush3.msra.mxu0 %v4235_v61  ;;  %3734 = vmatprep.subr.mxu1 %v4015_v1 }
 0xd8b   :  { %3729 = vmatprep.subr.mxu0 %v4015_v1  ;;  %3735 = vmatpush3.msra.mxu1 %v4229_v59 }
 0xd8c   :  { %3730 = vmatpush3.msra.mxu0 %v4244_v62  ;;  %3731 = vmatprep.mubr.msk.f32.mxu0 %vm4016_vm0, %v4015_v1  ;;  %v1941_v62 = vld [vmem:[#allocation2 + $0x6] sm:$0x3] }
 0xd8d   :  { %3736 = vmatprep.subr.mxu1 %v4015_v1  ;;  %3745 = vmatprep.subr.mxu0 %v4015_v1 }
 0xd8e   :  { %3737 = vmatpush3.msra.mxu1 %v4255_v0  ;;  %3742 = vmatprep.mubr.msk.f32.mxu1 %vm4016_vm0, %v4015_v1 }
 0xd8f   :  { %3738 = vmatprep.subr.mxu1 %v4015_v1 }
 0xd90   :  { %3739 = vmatpush3.msra.mxu1 %v4262_v2  ;;  %v4664_v2 = vld [vmem:[%s4931_s7] ss:$0 sm:$0xff] }
 0xd91   :  { %3740 = vmatprep.subr.mxu1 %v4015_v1 }
 0xd92   :  { %3741 = vmatpush3.msra.mxu1 %v4269_v3 }
 0xd93   :  { %3756 = vmatprep.subr.mxu1 %v4015_v1 }
 0xe3b   :  { %v1935_v58 = vpop.f32.mrf.mxu0 }
 0xe3c   :  { %v1939_v59 = vadd.f32 %v1935_v58, %v1863_v57  ;;  %v4716_v58 = vld [vmem:[%s4933_s9 + $0x18] sm:$0xff] }
 0xe3d   :  { %v3689_v61 = vpop.f32.mrf.mxu0 }
 0xe3e   :  { %1940 = vst.msk [vmem:[#allocation2 + $0x8] sm:$0x3] %vm213_vm2, %v1939_v59  ;;  %v4725_v59 = vld [vmem:[%s4933_s9 + $0x10] sm:$0xff]  ;;  %v4733_v61 = vld [vmem:[%s4933_s9 + $0x8] sm:$0xff] }
 0xe41   :  { %v2014_v0 = vpop.f32.mrf.mxu1 }
 0xe42   :  { %v2018_v12 = vadd.f32 %v2014_v0, %v1941_v62  ;;  %v4741_v62 = vld [vmem:[%s4933_s9 + $0x38] sm:$0xff]  ;;  %v4747_v0 = vld [vmem:[%s4933_s9] sm:$0xff] }
 0xe43   :  { %v2086_v13 = vpop.f32.mrf.mxu0  ;;  %v3700_v14 = vpop.f32.mrf.mxu1 }
 0xe44   :  { %2019 = vst.msk [vmem:[#allocation2 + $0x6] sm:$0x3] %vm213_vm2, %v2018_v12  ;;  %v2087_v3 = vadd.f32 %v4664_v2, %v2086_v13  ;;  %v4757_v12 = vld [vmem:[%s4933_s9 + $0x30] sm:$0xff]  ;;  %v4766_v13 = vld [vmem:[%s4933_s9 + $0x28] sm:$0xff]  ;;  %v4773_v14 = vld [vmem:[%s4933_s9 + $0x20] sm:$0xff] }
 0xe45   :  { %v3711_v15 = vpop.f32.mrf.mxu0 }
 0xe46   :  { %v2091_v51 = vrot.slane %v2087_v3, 6  ;;  %v2220_v3 = vld [vmem:[#allocation2 + $0xa] sm:$0x3] }
 0xe48   :  { %2100 = vrot.lane.b32.xlu0 %v2091_v51, %s4017_s3  ;;  %v2093_v20 = vadd.f32 %v2091_v51, %v4189_v24 }
 0xe49   :  { %v2186_v31 = vpop.f32.mrf.mxu1 }
 0xe4a   :  { %v2187_v7 = vadd.f32 %v4671_v6, %v2186_v31  ;;  %v3275_v21 = vmul.f32 -1.442695, %v2093_v20 }
 0xe4b   :  { %v3722_v17 = vpop.f32.mrf.mxu1 }
 0xe4c   :  { %v2191_v18 = vrot.slane %v2187_v7, 4  ;;  %3907 = vpow2.f32 %v3275_v21  ;;  %v2299_v7 = vld [vmem:[#allocation2 + $0x4] sm:$0x3] }
 0xe4e   :  { %2200 = vrot.lane.b32.xlu1 %v2191_v18, %s4017_s3  ;;  %v2193_v23 = vadd.f32 %v2191_v18, %v4184_v19 }
 0xe50   :  { %v3277_v25 = vmul.f32 -1.442695, %v2193_v23 }
 0xe52   :  { %3909 = vpow2.f32 %v3277_v25 }
 0xe59   :  { %v3908_v26 = vpop.eup %3907 }
 0xe5a   :  { %v2097_v27 = vadd.f32 1.0, %v3908_v26 }
 0xe5c   :  { %3911 = vrcp.f32 %v2097_v27 }
 0xe5f   :  { %v3910_v28 = vpop.eup %3909 }
 0xe60   :  { %v2197_v30 = vadd.f32 1.0, %v3910_v28 }
 0xe62   :  { %3913 = vrcp.f32 %v2197_v30 }
 0xe69   :  { %v3912_v32 = vpop.eup %3911 }
 0xe6a   :  { %v2110_v46 = vsub.f32 1.0, %v3912_v32  ;;  %v2118_v48 = vmul.f32 %v3912_v32, %v2116_v45 }
 0xe6f   :  { %v3914_v34 = vpop.eup %3913 }
 0xe70   :  { %v2210_v53 = vsub.f32 1.0, %v3914_v34  ;;  %v2218_v39 = vmul.f32 %v3914_v34, %v2216_v40 }
 0xeba   :  { %v2101_v29 = vpop.permute.xlu0 %2100 }
 0xebb   :  { %v2103_v33 = vmul.f32 %v3912_v32, %v2101_v29 }
 0xebd   :  { %2105 = vrot.lane.b32.xlu0 %v2103_v33, %s4017_s3 }
 0xec0   :  { %v2201_v35 = vpop.permute.xlu1 %2200 }
 0xec1   :  { %v2203_v36 = vmul.f32 %v3914_v34, %v2201_v35 }
 0xec3   :  { %2205 = vrot.lane.b32.xlu1 %v2203_v36, %s4017_s3 }
 0xf2f   :  { %v2106_v38 = vpop.permute.xlu0 %2105 }
 0xf30   :  { %v2108_v16 = vadd.f32 %v2106_v38, %v4189_v24 }
 0xf32   :  { %3915 = vtanh.f32 %v2108_v16 }
 0xf35   :  { %v2206_v41 = vpop.permute.xlu1 %2205 }
 0xf36   :  { %v2208_v22 = vadd.f32 %v2206_v41, %v4184_v19 }
 0xf38   :  { %3917 = vtanh.f32 %v2208_v22 }
 0xf3f   :  { %v3916_v42 = vpop.eup %3915 }
 0xf40   :  { %2112 = vrot.lane.b32.xlu0 %v3916_v42, %s4018_s18 }
 0xf45   :  { %v3918_v43 = vpop.eup %3917 }
 0xf46   :  { %2212 = vrot.lane.b32.xlu1 %v3918_v43, %s4018_s18 }
 0xfb2   :  { %v2113_v47 = vpop.permute.xlu0 %2112 }
 0xfb3   :  { %v2115_v49 = vmul.f32 %v2113_v47, %v2110_v46 }
 0xfb5   :  { %v4684_v50 = vadd.f32 %v2118_v48, %v2115_v49 }
 0xfb7   :  { %v2222_v54 = vrot.slane %v4684_v50, 2 }
 0xfb8   :  { %v2213_v37 = vpop.permute.xlu1 %2212 }
 0xfb9   :  { %v2215_v55 = vmul.f32 %v2213_v37, %v2210_v53  ;;  %2223 = vrot.lane.b32.xlu0 %v2222_v54, %s4018_s18 }
 0xfbb   :  { %v4689_v44 = vadd.f32 %v2218_v39, %v2215_v55  ;;  %v2474_v39 = vrot.slane %v4684_v50, 6 }
 0xfbd   :  { %v2301_v52 = vrot.slane %v4689_v44, 4 }
 0xfbf   :  { %2302 = vrot.lane.b32.xlu1 %v2301_v52, %s4018_s18 }
0x102b   :  { %v2224_v57 = vpop.permute.xlu0 %2223 }
0x102c   :  { %3732 = vmatmul.mubr.msk.f32.vlgmr.msra.gmra.mxu0 %vm228_vm3, %v2224_v57 }
0x102d   :  { %3746 = vmatpush3.msra.mxu0 %v4579_v60  ;;  %3753 = vmatprep.mubr.msk.f32.mxu0 %vm4016_vm0, %v4015_v1 }
0x102e   :  { %3747 = vmatprep.subr.mxu0 %v4015_v1 }
0x102f   :  { %3748 = vmatpush3.msra.mxu0 %v4588_v63 }
0x1030   :  { %3749 = vmatprep.subr.mxu0 %v4015_v1 }
0x1031   :  { %3750 = vmatpush3.msra.mxu0 %v4595_v4  ;;  %v2303_v56 = vpop.permute.xlu1 %2302 }
0x1032   :  { %3751 = vmatprep.subr.mxu0 %v4015_v1  ;;  %3743 = vmatmul.mubr.msk.f32.vlgmr.msra.gmra.mxu1 %vm228_vm3, %v2303_v56 }
0x1033   :  { %3752 = vmatpush3.msra.mxu0 %v4603_v5  ;;  %3757 = vmatpush3.msra.mxu1 %v4609_v8 }
0x1034   :  { %3754 = vmatmul.mubr.msk.f32.vlgmr.msra.gmra.mxu0 %vm228_vm3, %v2224_v57  ;;  %3758 = vmatprep.subr.mxu1 %v4015_v1 }
0x1035   :  { %3759 = vmatpush3.msra.mxu1 %v4617_v9  ;;  %3764 = vmatprep.mubr.msk.f32.mxu1 %vm4016_vm0, %v4015_v1 }
0x1036   :  { %3760 = vmatprep.subr.mxu1 %v4015_v1  ;;  %3767 = vmatprep.subr.mxu0 %v4015_v1 }
0x1037   :  { %3761 = vmatpush3.msra.mxu1 %v4627_v10  ;;  %3768 = vmatpush3.msra.mxu0 %v4716_v58 }
0x1038   :  { %3762 = vmatprep.subr.mxu1 %v4015_v1  ;;  %3769 = vmatprep.subr.mxu0 %v4015_v1 }
0x1039   :  { %3763 = vmatpush3.msra.mxu1 %v4636_v11  ;;  %3770 = vmatpush3.msra.mxu0 %v4725_v59 }
0x103a   :  { %3765 = vmatmul.mubr.msk.f32.vlgmr.msra.gmra.mxu1 %vm228_vm3, %v2303_v56  ;;  %3771 = vmatprep.subr.mxu0 %v4015_v1 }
0x103b   :  { %3772 = vmatpush3.msra.mxu0 %v4733_v61  ;;  %3778 = vmatprep.subr.mxu1 %v4015_v1 }
0x103c   :  { %3773 = vmatprep.subr.mxu0 %v4015_v1  ;;  %3779 = vmatpush3.msra.mxu1 %v4741_v62 }
0x103d   :  { %3774 = vmatpush3.msra.mxu0 %v4747_v0  ;;  %3775 = vmatprep.mubr.msk.f32.mxu0 %vm4016_vm0, %v4015_v1 }
0x103e   :  { %3780 = vmatprep.subr.mxu1 %v4015_v1  ;;  %3789 = vmatprep.subr.mxu0 %v4015_v1 }
0x103f   :  { %3781 = vmatpush3.msra.mxu1 %v4757_v12  ;;  %3786 = vmatprep.mubr.msk.f32.mxu1 %vm4016_vm0, %v4015_v1 }
0x1040   :  { %3782 = vmatprep.subr.mxu1 %v4015_v1 }
0x1041   :  { %3783 = vmatpush3.msra.mxu1 %v4766_v13 }
0x1042   :  { %3784 = vmatprep.subr.mxu1 %v4015_v1 }
0x1043   :  { %3785 = vmatpush3.msra.mxu1 %v4773_v14 }
0x1044   :  { %3800 = vmatprep.subr.mxu1 %v4015_v1 }
0x10ec   :  { %v2293_v15 = vpop.f32.mrf.mxu0 }
0x10ed   :  { %v2297_v51 = vadd.f32 %v2293_v15, %v2220_v3  ;;  %v2574_v15 = vrot.slane %v4689_v44, 2 }
0x10ee   :  { %v3733_v31 = vpop.f32.mrf.mxu0 }
0x10ef   :  { %2298 = vst.msk [vmem:[#allocation2 + $0xa] sm:$0x3] %vm213_vm2, %v2297_v51 }
0x10f2   :  { %v2372_v17 = vpop.f32.mrf.mxu1 }
0x10f3   :  { %v2376_v18 = vadd.f32 %v2372_v17, %v2299_v7 }
0x10f4   :  { %v2444_v20 = vpop.f32.mrf.mxu0  ;;  %v3744_v21 = vpop.f32.mrf.mxu1 }
0x10f5   :  { %2377 = vst.msk [vmem:[#allocation2 + $0x4] sm:$0x3] %vm213_vm2, %v2376_v18  ;;  %v2445_v23 = vadd.f32 %v4664_v2, %v2444_v20 }
0x10f6   :  { %v3755_v25 = vpop.f32.mrf.mxu0 }
0x10f7   :  { %v2449_v26 = vrot.slane %v2445_v23, 4 }
0x10f9   :  { %2458 = vrot.lane.b32.xlu0 %v2449_v26, %s4017_s3  ;;  %v2451_v29 = vadd.f32 %v2449_v26, %v4189_v24 }
0x10fa   :  { %v2544_v27 = vpop.f32.mrf.mxu1 }
0x10fb   :  { %v2545_v28 = vadd.f32 %v4671_v6, %v2544_v27  ;;  %v3281_v33 = vmul.f32 -1.442695, %v2451_v29 }
0x10fc   :  { %v3766_v30 = vpop.f32.mrf.mxu1 }
0x10fd   :  { %v2549_v32 = vrot.slane %v2545_v28, 6  ;;  %3919 = vpow2.f32 %v3281_v33 }
0x10ff   :  { %2558 = vrot.lane.b32.xlu1 %v2549_v32, %s4017_s3  ;;  %v2551_v34 = vadd.f32 %v2549_v32, %v4184_v19 }
0x1101   :  { %v3283_v35 = vmul.f32 -1.442695, %v2551_v34 }
0x1103   :  { %3921 = vpow2.f32 %v3283_v35 }
0x110a   :  { %v3920_v36 = vpop.eup %3919 }
0x110b   :  { %v2455_v38 = vadd.f32 1.0, %v3920_v36 }
0x110d   :  { %3923 = vrcp.f32 %v2455_v38 }
0x1110   :  { %v3922_v16 = vpop.eup %3921 }
0x1111   :  { %v2555_v41 = vadd.f32 1.0, %v3922_v16 }
0x1113   :  { %3925 = vrcp.f32 %v2555_v41 }
0x111a   :  { %v3924_v22 = vpop.eup %3923 }
0x111b   :  { %v2468_v55 = vsub.f32 1.0, %v3924_v22  ;;  %v2476_v57 = vmul.f32 %v3924_v22, %v2474_v39  ;;  %v4867_v39 = vld [vmem:[%s4934_s10] ss:$0 sm:$0xff]  ;;  %s4019_s10 = smov [#allocation2]  }
0x1120   :  { %v3926_v45 = vpop.eup %3925 }
0x1121   :  { %v2568_v51 = vsub.f32 1.0, %v3926_v45  ;;  %v2576_v17 = vmul.f32 %v3926_v45, %v2574_v15  ;;  %v3095_v15 = vld [vmem:[#allocation2 + $0xa] sm:$0x3] }
0x116b   :  { %v2459_v42 = vpop.permute.xlu0 %2458 }
0x116c   :  { %v2461_v43 = vmul.f32 %v3924_v22, %v2459_v42 }
0x116e   :  { %2463 = vrot.lane.b32.xlu0 %v2461_v43, %s4017_s3 }
0x1171   :  { %v2559_v46 = vpop.permute.xlu1 %2558 }
0x1172   :  { %v2561_v47 = vmul.f32 %v3926_v45, %v2559_v46 }
0x1174   :  { %2563 = vrot.lane.b32.xlu1 %v2561_v47, %s4017_s3 }
0x11e0   :  { %v2464_v48 = vpop.permute.xlu0 %2463 }
0x11e1   :  { %v2466_v49 = vadd.f32 %v2464_v48, %v4189_v24 }
0x11e3   :  { %3927 = vtanh.f32 %v2466_v49 }
0x11e6   :  { %v2564_v40 = vpop.permute.xlu1 %2563 }
0x11e7   :  { %v2566_v53 = vadd.f32 %v2564_v40, %v4184_v19 }
0x11e9   :  { %3929 = vtanh.f32 %v2566_v53 }
0x11f0   :  { %v3928_v54 = vpop.eup %3927 }
0x11f1   :  { %2470 = vrot.lane.b32.xlu0 %v3928_v54, %s4018_s18 }
0x11f6   :  { %v3930_v37 = vpop.eup %3929 }
0x11f7   :  { %2570 = vrot.lane.b32.xlu1 %v3930_v37, %s4018_s18  ;;  %v3092_v37 = vld [vmem:[#allocation2 + $0x4] sm:$0x3] }
0x1263   :  { %v2471_v52 = vpop.permute.xlu0 %2470 }
0x1264   :  { %v2473_v56 = vmul.f32 %v2471_v52, %v2468_v55  ;;  %v3107_v55 = vadd.f32 %v4867_v39, %v3092_v37  ;;  %v3093_v52 = vld [vmem:[#allocation2 + $0x6] sm:$0x3] }
0x1266   :  { %v4792_v3 = vadd.f32 %v2476_v57, %v2473_v56  ;;  %v3119_v57 = vsel %vm213_vm2, %v3107_v55, -inf  ;;  %v3108_v56 = vadd.f32 %v4867_v39, %v3093_v52 }
0x1268   :  { %v2580_v31 = vrot.slane %v4792_v3, 4  ;;  %v2832_v42 = vrot.slane %v4792_v3, 6 }
0x1269   :  { %v2571_v7 = vpop.permute.xlu1 %2570 }
0x126a   :  { %v2573_v18 = vmul.f32 %v2571_v7, %v2568_v51  ;;  %2581 = vrot.lane.b32.xlu0 %v2580_v31, %s4018_s18  ;;  %v3122_v31 = vsel %vm213_vm2, %v3108_v56, -inf  ;;  %v3110_v7 = vadd.f32 %v4867_v39, %v3095_v15 }
0x126c   :  { %v4797_v20 = vadd.f32 %v2576_v17, %v2573_v18  ;;  %v3094_v17 = vld [vmem:[#allocation2 + $0x8] sm:$0x3] }
0x126e   :  { %v2659_v50 = vrot.slane %v4797_v20, 2  ;;  %v3109_v20 = vadd.f32 %v4867_v39, %v3094_v17 }
0x1270   :  { %2660 = vrot.lane.b32.xlu1 %v2659_v50, %s4018_s18 }
0x12dc   :  { %v2582_v21 = vpop.permute.xlu0 %2581 }
0x12dd   :  { %3776 = vmatmul.mubr.msk.f32.vlgmr.msra.gmra.mxu0 %vm228_vm3, %v2582_v21 }
0x12de   :  { %3790 = vmatpush3.msra.mxu0 %v4579_v60  ;;  %3797 = vmatprep.mubr.msk.f32.mxu0 %vm4016_vm0, %v4015_v1  ;;  %v2578_v60 = vld [vmem:[#allocation2 + $0xc] sm:$0x3] }
0x12df   :  { %3791 = vmatprep.subr.mxu0 %v4015_v1 }
0x12e0   :  { %3792 = vmatpush3.msra.mxu0 %v4588_v63 }
0x12e1   :  { %3793 = vmatprep.subr.mxu0 %v4015_v1 }
0x12e2   :  { %3794 = vmatpush3.msra.mxu0 %v4595_v4  ;;  %v2661_v44 = vpop.permute.xlu1 %2660 }
0x12e3   :  { %3795 = vmatprep.subr.mxu0 %v4015_v1  ;;  %3787 = vmatmul.mubr.msk.f32.vlgmr.msra.gmra.mxu1 %vm228_vm3, %v2661_v44 }
0x12e4   :  { %3796 = vmatpush3.msra.mxu0 %v4603_v5  ;;  %3801 = vmatpush3.msra.mxu1 %v4609_v8  ;;  %v2657_v8 = vld [vmem:[#allocation2 + $0x2] sm:$0x3] }
0x12e5   :  { %3798 = vmatmul.mubr.msk.f32.vlgmr.msra.gmra.mxu0 %vm228_vm3, %v2582_v21  ;;  %3802 = vmatprep.subr.mxu1 %v4015_v1 }
0x12e6   :  { %3803 = vmatpush3.msra.mxu1 %v4617_v9  ;;  %3808 = vmatprep.mubr.msk.f32.mxu1 %vm4016_vm0, %v4015_v1 }
0x12e7   :  { %3804 = vmatprep.subr.mxu1 %v4015_v1  ;;  %3811 = vmatprep.subr.mxu0 %v4015_v1 }
0x12e8   :  { %3805 = vmatpush3.msra.mxu1 %v4627_v10  ;;  %3812 = vmatpush3.msra.mxu0 %v4716_v58 }
0x12e9   :  { %3806 = vmatprep.subr.mxu1 %v4015_v1  ;;  %3813 = vmatprep.subr.mxu0 %v4015_v1 }
0x12ea   :  { %3807 = vmatpush3.msra.mxu1 %v4636_v11  ;;  %3814 = vmatpush3.msra.mxu0 %v4725_v59 }
0x12eb   :  { %3809 = vmatmul.mubr.msk.f32.vlgmr.msra.gmra.mxu1 %vm228_vm3, %v2661_v44  ;;  %3822 = vmatprep.subr.mxu1 %v4015_v1  ;;  %v3125_v44 = vsel %vm213_vm2, %v3109_v20, -inf }
0x12ec   :  { %3823 = vmatpush3.msra.mxu1 %v4741_v62  ;;  %3815 = vmatprep.subr.mxu0 %v4015_v1 }
0x12ed   :  { %3824 = vmatprep.subr.mxu1 %v4015_v1  ;;  %3816 = vmatpush3.msra.mxu0 %v4733_v61 }
0x12ee   :  { %3825 = vmatpush3.msra.mxu1 %v4757_v12  ;;  %3817 = vmatprep.subr.mxu0 %v4015_v1 }
0x12ef   :  { %3826 = vmatprep.subr.mxu1 %v4015_v1  ;;  %3818 = vmatpush3.msra.mxu0 %v4747_v0 }
0x12f0   :  { %3819 = vmatprep.mubr.msk.f32.mxu0 %vm4016_vm0, %v4015_v1  ;;  %3827 = vmatpush3.msra.mxu1 %v4766_v13 }
0x12f1   :  { %3828 = vmatprep.subr.mxu1 %v4015_v1  ;;  %3830 = vmatprep.mubr.msk.f32.mxu1 %vm4016_vm0, %v4015_v1 }
0x12f2   :  { %3829 = vmatpush3.msra.mxu1 %v4773_v14 }
0x139d   :  { %v2651_v63 = vpop.f32.mrf.mxu0 }
0x139e   :  { %v2655_v4 = vadd.f32 %v2651_v63, %v2578_v60 }
0x139f   :  { %v3777_v5 = vpop.f32.mrf.mxu0 }
0x13a0   :  { %2656 = vst.msk [vmem:[#allocation2 + $0xc] sm:$0x3] %vm213_vm2, %v2655_v4 }
0x13a3   :  { %v2730_v9 = vpop.f32.mrf.mxu1 }
0x13a4   :  { %v2734_v10 = vadd.f32 %v2730_v9, %v2657_v8 }
0x13a5   :  { %v2802_v11 = vpop.f32.mrf.mxu0  ;;  %v3788_v58 = vpop.f32.mrf.mxu1 }
0x13a6   :  { %2735 = vst.msk [vmem:[#allocation2 + $0x2] sm:$0x3] %vm213_vm2, %v2734_v10  ;;  %v2803_v59 = vadd.f32 %v4664_v2, %v2802_v11 }
0x13a7   :  { %v3799_v61 = vpop.f32.mrf.mxu0  ;;  %v3096_v21 = vld [vmem:[#allocation2 + $0xc] sm:$0x3] }
0x13a8   :  { %v2807_v62 = vrot.slane %v2803_v59, 2  ;;  %v4880_v60 = vadd.f32 %v4867_v39, %v3096_v21 }
0x13aa   :  { %2816 = vrot.lane.b32.xlu0 %v2807_v62, %s4017_s3  ;;  %v2809_v13 = vadd.f32 %v2807_v62, %v4189_v24  ;;  %v3131_v63 = vsel %vm213_vm2, %v4880_v60, -inf }
0x13ab   :  { %v2902_v1 = vpop.f32.mrf.mxu1 }
0x13ac   :  { %v2903_v0 = vadd.f32 %v4671_v6, %v2902_v1  ;;  %v3287_v14 = vmul.f32 -1.442695, %v2809_v13 }
0x13ad   :  { %v3810_v12 = vpop.f32.mrf.mxu1  ;;  %v3091_v3 = vld [vmem:[#allocation2 + $0x2] sm:$0x3] }
0x13ae   :  { %2914 = vrot.lane.b32.xlu1 %v2903_v0, %s4017_s3  ;;  %v2906_v23 = vadd.f32 %v2903_v0, %v4184_v19  ;;  %3931 = vpow2.f32 %v3287_v14  ;;  %v3106_v51 = vadd.f32 %v4867_v39, %v3091_v3 }
0x13b0   :  { %v3289_v25 = vmul.f32 -1.442695, %v2906_v23  ;;  %v3116_v18 = vsel %vm213_vm2, %v3106_v51, -inf  ;;  %v2933_v23 = vld [vmem:[#allocation2 + $0xe] sm:$0x3] }
0x13b2   :  { %3933 = vpow2.f32 %v3289_v25 }
0x13bb   :  { %v3932_v26 = vpop.eup %3931 }
0x13bc   :  { %v2813_v2 = vadd.f32 1.0, %v3932_v26 }
0x13be   :  { %3935 = vrcp.f32 %v2813_v2 }
0x13bf   :  { %v3934_v27 = vpop.eup %3933 }
0x13c0   :  { %v2910_v28 = vadd.f32 1.0, %v3934_v27  ;;  %v3012_v27 = vld [vmem:[#allocation2] sm:$0x3] }
0x13c2   :  { %3937 = vrcp.f32 %v2910_v28 }
0x13cb   :  { %v3936_v30 = vpop.eup %3935 }
0x13cc   :  { %v2826_v43 = vsub.f32 1.0, %v3936_v30  ;;  %v2834_v46 = vmul.f32 %v3936_v30, %v2832_v42 }
0x13cf   :  { %v3938_v29 = vpop.eup %3937 }
0x13d0   :  { %v2924_v49 = vsub.f32 1.0, %v3938_v29 }
0x141c   :  { %v2817_v32 = vpop.permute.xlu0 %2816 }
0x141d   :  { %v2819_v6 = vmul.f32 %v3936_v30, %v2817_v32 }
0x141f   :  { %2821 = vrot.lane.b32.xlu0 %v2819_v6, %s4017_s3 }
0x1420   :  { %v2915_v33 = vpop.permute.xlu1 %2914 }
0x1421   :  { %v2917_v34 = vmul.f32 %v3938_v29, %v2915_v33 }
0x1423   :  { %2919 = vrot.lane.b32.xlu1 %v2917_v34, %s4017_s3 }
0x1491   :  { %v2822_v35 = vpop.permute.xlu0 %2821 }
0x1492   :  { %v2824_v36 = vadd.f32 %v2822_v35, %v4189_v24 }
0x1494   :  { %3939 = vtanh.f32 %v2824_v36 }
0x1495   :  { %v2920_v38 = vpop.permute.xlu1 %2919 }
0x1496   :  { %v2922_v16 = vadd.f32 %v2920_v38, %v4184_v19  ;;  %v2931_v19 = vmul.f32 %v3938_v29, %v2659_v50  ;;  %v3128_v50 = vsel %vm213_vm2, %v3110_v7, -inf }
0x1498   :  { %3941 = vtanh.f32 %v2922_v16 }
0x14a1   :  { %v3940_v41 = vpop.eup %3939 }
0x14a2   :  { %2828 = vrot.lane.b32.xlu0 %v3940_v41, %s4018_s18 }
0x14a5   :  { %v3942_v22 = vpop.eup %3941 }
0x14a6   :  { %2926 = vrot.lane.b32.xlu1 %v3942_v22, %s4018_s18 }
0x1514   :  { %v2829_v45 = vpop.permute.xlu0 %2828 }
0x1515   :  { %v2831_v47 = vmul.f32 %v2829_v45, %v2826_v43 }
0x1517   :  { %v2835_v48 = vadd.f32 %v2834_v46, %v2831_v47 }
0x1518   :  { %v2927_v24 = vpop.permute.xlu1 %2926 }
0x1519   :  { %v2935_v40 = vrot.slane %v2835_v48, 6  ;;  %v2929_v53 = vmul.f32 %v2927_v24, %v2924_v49 }
0x151b   :  { %v2932_v54 = vadd.f32 %v2931_v19, %v2929_v53  ;;  %2936 = vrot.lane.b32.xlu0 %v2935_v40, %s4018_s18 }
0x151d   :  { %3014 = vrot.lane.b32.xlu1 %v2932_v54, %s4018_s18  ;;  %s3222_s18 = sshll.u32 %s4019_s10, 4  ;;  %s3223_s18 = int_to_ptr.vmem [resolvable:$true] %s3222_s18 }
0x151e   :  { %s3993_s14 = scalar_lea.vmem %s3223_s18, 256  ;;  %p3998_p1 = scmp.lt.s32.totalorder %s3223_s18, %s3223_s18 }
0x151f   :  { %p3994_p0 = scmp.ne.s32.totalorder %s3223_s18, %s3993_s14  ;;  %p3999_p2 = scmp.lt.s32.totalorder %s3993_s14, %s3993_s14 }
0x1521   :  { %p4000_p3 = por %p3999_p2, %p3998_p1 }
0x1523   :  { %p4001_p4 = pnand %p4000_p3, %p3994_p0 }
0x153a   :  { %3120 = vmax.xlane.f32.xlu0 %v3119_v57 }
0x153e   :  { %3123 = vmax.xlane.f32.xlu0 %v3122_v31 }
0x1541   :  { %3117 = vmax.xlane.f32.xlu1 %v3116_v18 }
0x1542   :  { %3129 = vmax.xlane.f32.xlu0 %v3128_v50 }
0x1545   :  { %3126 = vmax.xlane.f32.xlu1 %v3125_v44 }
0x1549   :  { %3132 = vmax.xlane.f32.xlu1 %v3131_v63 }
0x158d   :  { %v2937_v4 = vpop.permute.xlu0 %2936 }
0x158e   :  { %3820 = vmatmul.mubr.msk.f32.vlgmr.msra.gmra.mxu0 %vm228_vm3, %v2937_v4 }
0x158f   :  { %v3015_v5 = vpop.permute.xlu1 %3014 }
0x1590   :  { %3831 = vmatmul.mubr.msk.f32.vlgmr.msra.gmra.mxu1 %vm228_vm3, %v3015_v5 }
0x15c3   :  { %v3121_v8 = vpop.xlane.xlu0 %3120 }
0x15c4   :  { %v3139_v9 = vsub.f32 %v3107_v55, %v3121_v8 }
0x15c6   :  { %v3149_v10 = vmul.f32 1.442695, %v3139_v9 }
0x15c7   :  { %v3124_v13 = vpop.xlane.xlu0 %3123 }
0x15c8   :  { %3943 = vpow2.f32 %v3149_v10  ;;  %v4890_v30 = vsub.f32 %v3108_v56, %v3124_v13 }
0x15ca   :  { %v3118_v11 = vpop.xlane.xlu1 %3117  ;;  %v3151_v34 = vmul.f32 1.442695, %v4890_v30 }
0x15cb   :  { %v4888_v14 = vsub.f32 %v3106_v51, %v3118_v11  ;;  %v3130_v29 = vpop.xlane.xlu0 %3129 }
0x15cc   :  { %v4896_v35 = vsub.f32 %v3110_v7, %v3130_v29 }
0x15cd   :  { %v3147_v32 = vmul.f32 1.442695, %v4888_v14 }
0x15ce   :  { %v3127_v58 = vpop.xlane.xlu1 %3126  ;;  %v3155_v36 = vmul.f32 1.442695, %v4896_v35 }
0x15cf   :  { %v3141_v59 = vsub.f32 %v3109_v20, %v3127_v58 }
0x15d1   :  { %v3153_v61 = vmul.f32 1.442695, %v3141_v59 }
0x15d2   :  { %v3133_v22 = vpop.xlane.xlu1 %3132 }
0x15d3   :  { %3945 = vpow2.f32 %v3153_v61  ;;  %v3143_v56 = vsub.f32 %v4880_v60, %v3133_v22 }
0x15d4   :  { %3947 = vpow2.f32 %v3147_v32 }
0x15d5   :  { %v3944_v62 = vpop.eup %3943  ;;  %3949 = vpow2.f32 %v3151_v34  ;;  %v3157_v51 = vmul.f32 1.442695, %v3143_v56 }
0x15d6   :  { %v3167_v1 = vsel %vm213_vm2, %v3944_v62, 0.0  ;;  %3951 = vpow2.f32 %v3155_v36 }
0x15d7   :  { %3168 = vadd.xlane.f32.xlu1 %v3167_v1 }
0x15e0   :  { %v3946_v0 = vpop.eup %3945 }
0x15e1   :  { %v3173_v12 = vsel %vm213_vm2, %v3946_v0, 0.0  ;;  %v3948_v47 = vpop.eup %3947 }
0x15e2   :  { %3174 = vadd.xlane.f32.xlu1 %v3173_v12  ;;  %v3164_v48 = vsel %vm213_vm2, %v3948_v47, 0.0  ;;  %v3950_v49 = vpop.eup %3949 }
0x15e3   :  { %v3170_v24 = vsel %vm213_vm2, %v3950_v49, 0.0  ;;  %v3952_v40 = vpop.eup %3951 }
0x15e4   :  { %v3176_v53 = vsel %vm213_vm2, %v3952_v40, 0.0 }
0x164e   :  { %v3006_v25 = vpop.f32.mrf.mxu0 }
0x164f   :  { %v3010_v26 = vadd.f32 %v3006_v25, %v2933_v23 }
0x1650   :  { %v3821_v2 = vpop.f32.mrf.mxu0  ;;  %v3084_v28 = vpop.f32.mrf.mxu1 }
0x1651   :  { %3011 = vst.msk [vmem:[#allocation2 + $0xe] sm:$0x3] %vm213_vm2, %v3010_v26  ;;  %v3088_v6 = vadd.f32 %v3084_v28, %v3012_v27 }
0x1652   :  { %v3832_v33 = vpop.f32.mrf.mxu1 }
0x1653   :  { %3089 = vst.msk [vmem:[#allocation2] sm:$0x3] %vm213_vm2, %v3088_v6 }
0x1658   :  { %v3097_v16 = vld [vmem:[#allocation2 + $0xe] sm:$0x3] }
0x1659   :  { %v3112_v43 = vadd.f32 %v4867_v39, %v3097_v16 }
0x165a   :  { %v3090_v38 = vld [vmem:[#allocation2] sm:$0x3] }
0x165b   :  { %v3105_v41 = vadd.f32 %v4867_v39, %v3090_v38  ;;  %v3134_v46 = vsel %vm213_vm2, %v3112_v43, -inf }
0x165d   :  { %v3113_v42 = vsel %vm213_vm2, %v3105_v41, -inf }
0x165e   :  { %3114 = vmax.xlane.f32.xlu0 %v3113_v42 }
0x1660   :  { %v3169_v45 = vpop.xlane.xlu1 %3168 }
0x1661   :  { %3953 = vlog2.f32 %v3169_v45 }
0x1662   :  { %3135 = vmax.xlane.f32.xlu0 %v3134_v46 }
0x1666   :  { %3165 = vadd.xlane.f32.xlu0 %v3164_v48 }
0x166a   :  { %3171 = vadd.xlane.f32.xlu0 %v3170_v24 }
0x166b   :  { %v3175_v19 = vpop.xlane.xlu1 %3174 }
0x166c   :  { %3955 = vlog2.f32 %v3175_v19 }
0x166e   :  { %v3954_v54 = vpop.eup %3953  ;;  %3177 = vadd.xlane.f32.xlu0 %v3176_v53 }
0x166f   :  { %v3190_v37 = vmul.f32 0.6931472, %v3954_v54 }
0x1671   :  { %v3203_v39 = vsub.f32 %v3139_v9, %v3190_v37 }
0x1673   :  { %3211 = vst.msk [vmem:[#allocation2 + $0x4] sm:$0x3] %vm213_vm2, %v3203_v39 }
0x1679   :  { %v3956_v55 = vpop.eup %3955 }
0x167a   :  { %v3194_v52 = vmul.f32 0.6931472, %v3956_v55 }
0x167c   :  { %v3205_v57 = vsub.f32 %v3141_v59, %v3194_v52 }
0x167e   :  { %3213 = vst.msk [vmem:[#allocation2 + $0x8] sm:$0x3] %vm213_vm2, %v3205_v57 }
0x16e7   :  { %v3115_v3 = vpop.xlane.xlu0 %3114 }
0x16e8   :  { %v3137_v15 = vsub.f32 %v3105_v41, %v3115_v3 }
0x16ea   :  { %v3145_v31 = vmul.f32 1.442695, %v3137_v15 }
0x16eb   :  { %v3136_v7 = vpop.xlane.xlu0 %3135 }
0x16ec   :  { %3957 = vpow2.f32 %v3145_v31  ;;  %v3144_v17 = vsub.f32 %v3112_v43, %v3136_v7 }
0x16ed   :  { %3959 = vpow2.f32 %v3157_v51 }
0x16ee   :  { %v3159_v18 = vmul.f32 1.442695, %v3144_v17 }
0x16ef   :  { %v3166_v20 = vpop.xlane.xlu0 %3165 }
0x16f0   :  { %3961 = vpow2.f32 %v3159_v18 }
0x16f1   :  { %3963 = vlog2.f32 %v3166_v20 }
0x16f3   :  { %v3172_v50 = vpop.xlane.xlu0 %3171 }
0x16f4   :  { %3965 = vlog2.f32 %v3172_v50 }
0x16f7   :  { %v3178_v21 = vpop.xlane.xlu0 %3177 }
0x16f8   :  { %3967 = vlog2.f32 %v3178_v21 }
0x16f9   :  { %v3958_v44 = vpop.eup %3957 }
0x16fa   :  { %v3161_v63 = vsel %vm213_vm2, %v3958_v44, 0.0  ;;  %v3960_v60 = vpop.eup %3959 }
0x16fb   :  { %3162 = vadd.xlane.f32.xlu1 %v3161_v63  ;;  %v3179_v8 = vsel %vm213_vm2, %v3960_v60, 0.0 }
0x16fd   :  { %v3962_v4 = vpop.eup %3961 }
0x16fe   :  { %v3964_v5 = vpop.eup %3963  ;;  %v3182_v9 = vsel %vm213_vm2, %v3962_v4, 0.0 }
0x16ff   :  { %v3188_v10 = vmul.f32 0.6931472, %v3964_v5  ;;  %3180 = vadd.xlane.f32.xlu1 %v3179_v8  ;;  %3183 = vadd.xlane.f32.xlu0 %v3182_v9 }
0x1701   :  { %v3966_v11 = vpop.eup %3965  ;;  %v3202_v58 = vsub.f32 %v4888_v14, %v3188_v10 }
0x1702   :  { %v3192_v59 = vmul.f32 0.6931472, %v3966_v11 }
0x1703   :  { %3210 = vst.msk [vmem:[#allocation2 + $0x2] sm:$0x3] %vm213_vm2, %v3202_v58 }
0x1704   :  { %v3204_v61 = vsub.f32 %v4890_v30, %v3192_v59 }
0x1705   :  { %v3968_v62 = vpop.eup %3967 }
0x1706   :  { %3212 = vst.msk [vmem:[#allocation2 + $0x6] sm:$0x3] %vm213_vm2, %v3204_v61  ;;  %v3196_v1 = vmul.f32 0.6931472, %v3968_v62 }
0x1708   :  { %v3206_v0 = vsub.f32 %v4896_v35, %v3196_v1 }
0x170a   :  { %3214 = vst.msk [vmem:[#allocation2 + $0xa] sm:$0x3] %vm213_vm2, %v3206_v0 }
0x1784   :  { %v3163_v12 = vpop.xlane.xlu1 %3162 }
0x1785   :  { %3969 = vlog2.f32 %v3163_v12 }
0x1788   :  { %v3181_v13 = vpop.xlane.xlu1 %3180  ;;  %v3184_v23 = vpop.xlane.xlu0 %3183 }
0x1789   :  { %3971 = vlog2.f32 %v3181_v13 }
0x178a   :  { %3973 = vlog2.f32 %v3184_v23 }
0x1792   :  { %v3970_v14 = vpop.eup %3969 }
0x1793   :  { %v3186_v25 = vmul.f32 0.6931472, %v3970_v14 }
0x1795   :  { %v3201_v26 = vsub.f32 %v3137_v15, %v3186_v25 }
0x1796   :  { %v3972_v2 = vpop.eup %3971 }
0x1797   :  { %v3974_v27 = vpop.eup %3973  ;;  %3209 = vst.msk [vmem:[#allocation2] sm:$0x3] %vm213_vm2, %v3201_v26  ;;  %v3198_v28 = vmul.f32 0.6931472, %v3972_v2 }
0x1798   :  { %v3200_v30 = vmul.f32 0.6931472, %v3974_v27 }
0x1799   :  { %v3207_v32 = vsub.f32 %v3143_v56, %v3198_v28 }
0x179a   :  { %v3208_v6 = vsub.f32 %v3144_v17, %v3200_v30 }
0x179b   :  { %3215 = vst.msk [vmem:[#allocation2 + $0xc] sm:$0x3] %vm213_vm2, %v3207_v32 }
0x179c   :  { %3216 = vst.msk [vmem:[#allocation2 + $0xe] sm:$0x3] %vm213_vm2, %v3208_v6 }
0x179d   :  { %4004 = shalt.err (!%p4001_p4)
}
0x179e   :  { %s4020_s15 = smov 32   ;;  %s4021_s5 = smov 2  }
0x179f   :  { %3228 = dma.vmem_to_hbm [thread:$0]  %s3223_s18, 256, %s4935_s11, [#allocation3], %s4020_s15, %s4020_s15, %s4021_s5  }
0x17a0   :  { %4013 = dma.done.wait [#allocation3], 256  }
0x17a1   :  { %4014 = vsyncadd [#allocation3], 4294967040 }
0x17a2   :  { %3232 = vsyncpa [#allocation3], 1 }

</bundles_post_ra>
